<compile_context>
chip_gen: v7x
topology: tpu7x:2x2x1
jax: 0.10.0
libtpu: 0.0.40
codegen_flags: <defaults>
</compile_context>

<pallas_src>
import functools

import jax
import jax.numpy as jnp
from jax.experimental import pallas as pl
from jax.experimental.pallas import tpu as pltpu


def _round_up(n, m):
    return ((n + m - 1) // m) * m


_GUARD = 128  # lane guard band (multiple of 128); must satisfy p_max * W <= _GUARD


def _conv_layer(a, w_ref, b_ref, K, H, W, Nb, col_masks, relu):
    """'same'-padded KxK conv as ONE im2col matmul, channels-major layout.

    a        : [Cin_pad, Nb*H*W] f32 value (channels on sublanes, pixels on lanes)
    w_ref    : [Cout_pad, K*K*Cin_pad] VMEM ref, columns ordered (ky, kx, ci)
    b_ref    : [Cout_pad, 1]            VMEM ref
    col_masks: K lane masks [1, Nb*H*W] (None for the centre column tap)
    returns  : [Cout_pad, Nb*H*W] f32
    """
    Cin, L = a.shape
    HW = H * W
    p = (K - 1) // 2
    G = _GUARD

    # ---- Horizontal taps: K lane-shifted copies, masked once per dx (hoisted
    # out of the ky loop).  Done batch-wide: the column mask also kills the
    # +/-1,+/-2-lane leakage across image boundaries.
    z = jnp.zeros((Cin, G), a.dtype)
    apad = jnp.concatenate([z, a, z], axis=1)                   # [Cin, L+2G]
    hs = []
    for kx in range(K):
        dx = kx - p
        s = apad[:, G + dx:G + dx + L]                          # shift by dx lanes
        if col_masks[kx] is not None:
            s = jnp.where(col_masks[kx], s, 0.0)
        hs.append(s)
    ah = jnp.concatenate(hs, axis=0)                            # [K*Cin, L]  (kx, ci)

    # ---- Vertical taps: per image, so the +/-W, +/-2W lane shifts never read a
    # neighbouring image; out-of-image rows land in the zero guard bands.
    KC = K * Cin
    zz = jnp.zeros((KC, G), a.dtype)
    slabs = []
    for i in range(Nb):
        ahi = ah[:, i * HW:(i + 1) * HW]                        # aligned slice
        ahp = jnp.concatenate([zz, ahi, zz], axis=1)            # [K*Cin, HW+2G]
        slabs.append(jnp.concatenate(
            [ahp[:, G + (ky - p) * W:G + (ky - p) * W + HW] for ky in range(K)],
            axis=0))                                            # [K*K*Cin, HW] (ky,kx,ci)
    slab = jnp.concatenate(slabs, axis=1) if Nb > 1 else slabs[0]   # [KKC, L]

    # ---- One MXU matmul per layer (contraction = K*K*Cin_pad).
    y = jnp.dot(w_ref[...], slab, preferred_element_type=jnp.float32)
    y = y + b_ref[...]                                          # [Cout,1] broadcast
    return jnp.maximum(y, 0.0) if relu else y


def _csnet_kernel(x_ref, w1_ref, b1_ref, w2_ref, b2_ref, w3_ref, b3_ref,
                  o_ref, *, H, W, ks, Nb):
    """Fused conv1+ReLU -> conv2+ReLU -> conv3 for Nb images per grid step."""
    HW = H * W
    L = Nb * HW

    # Hoisted per-kernel constants (shared by all layers): lane -> column index
    # and the horizontal validity masks per kernel size (K=3 reused twice).
    col = jax.lax.broadcasted_iota(jnp.int32, (1, L), 1) % W
    masks = {}
    for K in sorted(set(ks)):
        p = (K - 1) // 2
        masks[K] = [None if kx == p else
                    ((col + (kx - p) >= 0) & (col + (kx - p) < W))
                    for kx in range(K)]

    # NCHW block -> channels-major [C, Nb*HW]: stack the Nb images along lanes
    # (each piece is 2 lane-tiles wide, so the concat is tile-aligned).
    if Nb > 1:
        a = jnp.concatenate([x_ref[i] for i in range(Nb)], axis=1)
    else:
        a = x_ref[0]

    a = _conv_layer(a, w1_ref, b1_ref, ks[0], H, W, Nb, masks[ks[0]], relu=True)
    a = _conv_layer(a, w2_ref, b2_ref, ks[1], H, W, Nb, masks[ks[1]], relu=True)
    a = _conv_layer(a, w3_ref, b3_ref, ks[2], H, W, Nb, masks[ks[2]], relu=False)

    for i in range(Nb):                                         # dense (8,128) stores
        o_ref[i] = a[:, i * HW:(i + 1) * HW].astype(o_ref.dtype)


def _pick_nb(N, max_nb=4):
    """Images per grid step: as large as possible while keeping Nb | N and the
    grid >= 2 steps (so a v7x megacore can shard work over both TensorCores)."""
    # TODO(synk): for N == 1 on v7x, add a second parallel grid axis over
    # row-halves so the second TensorCore is not idle.
    best = 1
    for nb in range(2, max_nb + 1):
        if N % nb == 0 and N // nb >= 2:
            best = nb
    return best


@jax.jit
def contrast_source_net_16(x_nchw, packed_params):
    """Full forward pass.  x_nchw: (N, 2V, H, W) float32 (PyTorch layout)."""
    (w1, b1), (w2, b2), (w3, b3) = packed_params
    N, C, H, W = x_nchw.shape
    HW = H * W
    ks = (3, 5, 3)                              # fixed by the module definition
    c0_pad = w1.shape[1] // (ks[0] * ks[0])     # conv1 input channels (padded)
    c3_pad = w3.shape[0]                        # conv3 output channels (padded)

    # Static layout assumptions -- fail loudly instead of silently wrong.
    assert HW % 128 == 0, "H*W must be a multiple of 128 lanes"
    assert (max(ks) // 2) * W <= _GUARD, "guard band too small for this W"

    Nb = _pick_nb(N)

    x = x_nchw.reshape(N, C, HW)                # free reshape (NCHW)
    if c0_pad > C:                              # pad input channels to 8-multiple
        x = jnp.pad(x, ((0, 0), (0, c0_pad - C), (0, 0)))

    kernel = functools.partial(_csnet_kernel, H=H, W=W, ks=ks, Nb=Nb)
    out = pl.pallas_call(
        kernel,
        out_shape=jax.ShapeDtypeStruct((N, c3_pad, HW), jnp.float32),
        grid=(N // Nb,),
        in_specs=[
            pl.BlockSpec((Nb, c0_pad, HW), lambda n: (n, 0, 0)),
            # Weights/biases: whole-array blocks with constant index maps, so
            # they are DMA'd once and stay VMEM-resident across grid steps.
            pl.BlockSpec(w1.shape, lambda n: (0, 0)),
            pl.BlockSpec(b1.shape, lambda n: (0, 0)),
            pl.BlockSpec(w2.shape, lambda n: (0, 0)),
            pl.BlockSpec(b2.shape, lambda n: (0, 0)),
            pl.BlockSpec(w3.shape, lambda n: (0, 0)),
            pl.BlockSpec(b3.shape, lambda n: (0, 0)),
        ],
        out_specs=pl.BlockSpec((Nb, c3_pad, HW), lambda n: (n, 0, 0)),
        compiler_params=pltpu.CompilerParams(
            dimension_semantics=("parallel",)),
    )(x, w1, b1, w2, b2, w3, b3)

    # Drop the padded output channels; reshapes are free in NCHW.
    return out[:, :C].reshape(N, C, H, W)


# ---------------------------------------------------------------------------
# Parameter construction / packing
# ---------------------------------------------------------------------------
def init_params(V, key):
    """Deterministic synthetic parameters in PyTorch format (OIHW, bias)."""
    c_in1, c_out1 = 2 * V, 2 * V * 5
    c_in2, c_out2 = 2 * V * 5, 2 * V * 2
    c_in3, c_out3 = 2 * V * 2, 2 * V
    keys = jax.random.split(key, 6)

    def mk(kw, kb, cout, cin, kh, kwid):
        scale = 1.0 / jnp.sqrt(cin * kh * kwid)
        w = jax.random.uniform(kw, (cout, cin, kh, kwid), jnp.float32,
                               -scale, scale)
        b = jax.random.uniform(kb, (cout,), jnp.float32, -scale, scale)
        return w, b

    return (mk(keys[0], keys[1], c_out1, c_in1, 3, 3),
            mk(keys[2], keys[3], c_out2, c_in2, 5, 5),
            mk(keys[4], keys[5], c_out3, c_in3, 3, 3))


def _pack_conv(w_oihw, b, cin_pad, cout_pad):
    """PyTorch (Cout,Cin,KH,KW) -> im2col weight (Cout_pad, KH*KW*Cin_pad).

    Column order (ky, kx, ci) matches the slab row order built in-kernel."""
    cout, cin, kh, kw = w_oihw.shape
    w = jnp.transpose(w_oihw, (0, 2, 3, 1))                     # (O, KH, KW, I)
    w = jnp.pad(w, ((0, cout_pad - cout), (0, 0), (0, 0), (0, cin_pad - cin)))
    w = w.reshape(cout_pad, kh * kw * cin_pad)
    b = jnp.pad(b, (0, cout_pad - cout)).reshape(cout_pad, 1)
    return w, b


def pack_params(torch_params):
    """Pad every channel count to a multiple of 8 (sublane / dense-store
    alignment) and pre-flatten each conv into a single im2col weight matrix."""
    (w1, b1), (w2, b2), (w3, b3) = torch_params
    c0 = _round_up(w1.shape[1], 8)   # network input channels
    c1 = _round_up(w1.shape[0], 8)   # conv1 out / conv2 in
    c2 = _round_up(w2.shape[0], 8)   # conv2 out / conv3 in
    c3 = _round_up(w3.shape[0], 8)   # network output channels (sliced off later)
    return (_pack_conv(w1, b1, c0, c1),
            _pack_conv(w2, b2, c1, c2),
            _pack_conv(w3, b3, c2, c3))


# ---------------------------------------------------------------------------
# Pure-JAX reference (built from the raw PyTorch-format params)
# ---------------------------------------------------------------------------
def _reference_forward(x_nchw, torch_params):
    def conv(x, w_oihw, b, pad, relu):
        y = jax.lax.conv_general_dilated(
            x, w_oihw, window_strides=(1, 1),
            padding=((pad, pad), (pad, pad)),
            dimension_numbers=("NCHW", "OIHW", "NCHW"),
            precision=jax.lax.Precision.HIGHEST)
        y = y + b[None, :, None, None]
        return jnp.maximum(y, 0.0) if relu else y

    (w1, b1), (w2, b2), (w3, b3) = torch_params
    x = conv(x_nchw, w1, b1, 1, True)
    x = conv(x, w2, b2, 2, True)
    return conv(x, w3, b3, 1, False)


if __name__ == "__main__":
    V = 2                      # channels: 4 -> 20 -> 8 -> 4
    N, H, W = 2, 16, 16
    key = jax.random.PRNGKey(0)
    kx, kp = jax.random.split(key)

    x = jax.random.normal(kx, (N, 2 * V, H, W), dtype=jnp.float32)
    torch_params = init_params(V, kp)
    packed_params = pack_params(torch_params)

    out = jax.block_until_ready(contrast_source_net_16(x, packed_params))
    ref = jax.block_until_ready(_reference_forward(x, torch_params))

    assert out.shape == (N, 2 * V, H, W)
    assert jnp.allclose(out, ref, atol=1e-4, rtol=1e-4), \
        float(jnp.max(jnp.abs(out - ref)))

    print("KERNEL_OK")
</pallas_src>

<mosaic_0001>
module attributes {stable_mosaic.version = 11 : i64} {
  func.func @_csnet_kernel(%arg0: i32, %arg1: memref<1x8x256xf32, #tpu.memory_space<vmem>>, %arg2: memref<24x72xf32, #tpu.memory_space<vmem>>, %arg3: memref<24x1xf32, #tpu.memory_space<vmem>>, %arg4: memref<8x600xf32, #tpu.memory_space<vmem>>, %arg5: memref<8x1xf32, #tpu.memory_space<vmem>>, %arg6: memref<8x72xf32, #tpu.memory_space<vmem>>, %arg7: memref<8x1xf32, #tpu.memory_space<vmem>>, %arg8: memref<1x8x256xf32, #tpu.memory_space<vmem>>) attributes {dimension_semantics = [#tpu.dimension_semantics<parallel>], iteration_bounds = array<i64: 2>, scalar_prefetch = 0 : i64, scratch_operands = 0 : i64, tpu.core_type = #tpu.core_type<tc>, window_params = [{transform_indices = @transform_0, window_bounds = array<i64: 1, 8, 256>}, {pipeline_mode = #tpu.pipeline_mode<synchronous>, transform_indices = @transform_1, window_bounds = array<i64: 24, 72>}, {pipeline_mode = #tpu.pipeline_mode<synchronous>, transform_indices = @transform_2, window_bounds = array<i64: 24, 1>}, {pipeline_mode = #tpu.pipeline_mode<synchronous>, transform_indices = @transform_3, window_bounds = array<i64: 8, 600>}, {pipeline_mode = #tpu.pipeline_mode<synchronous>, transform_indices = @transform_4, window_bounds = array<i64: 8, 1>}, {pipeline_mode = #tpu.pipeline_mode<synchronous>, transform_indices = @transform_5, window_bounds = array<i64: 8, 72>}, {pipeline_mode = #tpu.pipeline_mode<synchronous>, transform_indices = @transform_6, window_bounds = array<i64: 8, 1>}, {transform_indices = @transform_7, window_bounds = array<i64: 1, 8, 256>}]} {
    %0 = tpu.iota {dimensions = array<i32: 1>} : vector<1x256xi32>
    %c16_i32 = arith.constant 16 : i32
    %c0_i32 = arith.constant 0 : i32
    %1 = arith.cmpi eq, %c16_i32, %c0_i32 : i32
    %c1_i32 = arith.constant 1 : i32
    %2 = arith.select %1, %c1_i32, %c16_i32 : i32
    %3 = vector.broadcast %2 : i32 to vector<1x256xi32>
    %4 = arith.remsi %0, %3 : vector<1x256xi32>
    %c0_i32_0 = arith.constant 0 : i32
    %5 = vector.broadcast %c0_i32_0 : i32 to vector<1x256xi32>
    %6 = arith.cmpi ne, %4, %5 : vector<1x256xi32>
    %c0_i32_1 = arith.constant 0 : i32
    %7 = vector.broadcast %c0_i32_1 : i32 to vector<1x256xi32>
    %8 = arith.cmpi slt, %4, %7 : vector<1x256xi32>
    %c0_i32_2 = arith.constant 0 : i32
    %9 = arith.cmpi slt, %2, %c0_i32_2 : i32
    %10 = vector.broadcast %9 : i1 to vector<1x256xi1>
    %11 = vector.broadcast %10 : vector<1x256xi1> to vector<1x256xi1>
    %12 = arith.xori %8, %11 : vector<1x256xi1>
    %13 = arith.andi %12, %6 : vector<1x256xi1>
    %14 = vector.broadcast %2 : i32 to vector<1x256xi32>
    %15 = arith.addi %4, %14 : vector<1x256xi32>
    %16 = arith.select %13, %15, %4 : vector<1x256xi1>, vector<1x256xi32>
    %c-1_i32 = arith.constant -1 : i32
    %17 = vector.broadcast %c-1_i32 : i32 to vector<1x256xi32>
    %18 = arith.addi %16, %17 : vector<1x256xi32>
    %c0_i32_3 = arith.constant 0 : i32
    %19 = vector.broadcast %c0_i32_3 : i32 to vector<1x256xi32>
    %20 = arith.cmpi sge, %18, %19 : vector<1x256xi32>
    %c-1_i32_4 = arith.constant -1 : i32
    %21 = vector.broadcast %c-1_i32_4 : i32 to vector<1x256xi32>
    %22 = arith.addi %16, %21 : vector<1x256xi32>
    %c16_i32_5 = arith.constant 16 : i32
    %23 = vector.broadcast %c16_i32_5 : i32 to vector<1x256xi32>
    %24 = arith.cmpi slt, %22, %23 : vector<1x256xi32>
    %25 = arith.andi %20, %24 : vector<1x256xi1>
    %c1_i32_6 = arith.constant 1 : i32
    %26 = vector.broadcast %c1_i32_6 : i32 to vector<1x256xi32>
    %27 = arith.addi %16, %26 : vector<1x256xi32>
    %c0_i32_7 = arith.constant 0 : i32
    %28 = vector.broadcast %c0_i32_7 : i32 to vector<1x256xi32>
    %29 = arith.cmpi sge, %27, %28 : vector<1x256xi32>
    %c1_i32_8 = arith.constant 1 : i32
    %30 = vector.broadcast %c1_i32_8 : i32 to vector<1x256xi32>
    %31 = arith.addi %16, %30 : vector<1x256xi32>
    %c16_i32_9 = arith.constant 16 : i32
    %32 = vector.broadcast %c16_i32_9 : i32 to vector<1x256xi32>
    %33 = arith.cmpi slt, %31, %32 : vector<1x256xi32>
    %34 = arith.andi %29, %33 : vector<1x256xi1>
    %c-2_i32 = arith.constant -2 : i32
    %35 = vector.broadcast %c-2_i32 : i32 to vector<1x256xi32>
    %36 = arith.addi %16, %35 : vector<1x256xi32>
    %c0_i32_10 = arith.constant 0 : i32
    %37 = vector.broadcast %c0_i32_10 : i32 to vector<1x256xi32>
    %38 = arith.cmpi sge, %36, %37 : vector<1x256xi32>
    %c-2_i32_11 = arith.constant -2 : i32
    %39 = vector.broadcast %c-2_i32_11 : i32 to vector<1x256xi32>
    %40 = arith.addi %16, %39 : vector<1x256xi32>
    %c16_i32_12 = arith.constant 16 : i32
    %41 = vector.broadcast %c16_i32_12 : i32 to vector<1x256xi32>
    %42 = arith.cmpi slt, %40, %41 : vector<1x256xi32>
    %43 = arith.andi %38, %42 : vector<1x256xi1>
    %c-1_i32_13 = arith.constant -1 : i32
    %44 = vector.broadcast %c-1_i32_13 : i32 to vector<1x256xi32>
    %45 = arith.addi %16, %44 : vector<1x256xi32>
    %c0_i32_14 = arith.constant 0 : i32
    %46 = vector.broadcast %c0_i32_14 : i32 to vector<1x256xi32>
    %47 = arith.cmpi sge, %45, %46 : vector<1x256xi32>
    %c-1_i32_15 = arith.constant -1 : i32
    %48 = vector.broadcast %c-1_i32_15 : i32 to vector<1x256xi32>
    %49 = arith.addi %16, %48 : vector<1x256xi32>
    %c16_i32_16 = arith.constant 16 : i32
    %50 = vector.broadcast %c16_i32_16 : i32 to vector<1x256xi32>
    %51 = arith.cmpi slt, %49, %50 : vector<1x256xi32>
    %52 = arith.andi %47, %51 : vector<1x256xi1>
    %c1_i32_17 = arith.constant 1 : i32
    %53 = vector.broadcast %c1_i32_17 : i32 to vector<1x256xi32>
    %54 = arith.addi %16, %53 : vector<1x256xi32>
    %c0_i32_18 = arith.constant 0 : i32
    %55 = vector.broadcast %c0_i32_18 : i32 to vector<1x256xi32>
    %56 = arith.cmpi sge, %54, %55 : vector<1x256xi32>
    %c1_i32_19 = arith.constant 1 : i32
    %57 = vector.broadcast %c1_i32_19 : i32 to vector<1x256xi32>
    %58 = arith.addi %16, %57 : vector<1x256xi32>
    %c16_i32_20 = arith.constant 16 : i32
    %59 = vector.broadcast %c16_i32_20 : i32 to vector<1x256xi32>
    %60 = arith.cmpi slt, %58, %59 : vector<1x256xi32>
    %61 = arith.andi %56, %60 : vector<1x256xi1>
    %c2_i32 = arith.constant 2 : i32
    %62 = vector.broadcast %c2_i32 : i32 to vector<1x256xi32>
    %63 = arith.addi %16, %62 : vector<1x256xi32>
    %c0_i32_21 = arith.constant 0 : i32
    %64 = vector.broadcast %c0_i32_21 : i32 to vector<1x256xi32>
    %65 = arith.cmpi sge, %63, %64 : vector<1x256xi32>
    %c2_i32_22 = arith.constant 2 : i32
    %66 = vector.broadcast %c2_i32_22 : i32 to vector<1x256xi32>
    %67 = arith.addi %16, %66 : vector<1x256xi32>
    %c16_i32_23 = arith.constant 16 : i32
    %68 = vector.broadcast %c16_i32_23 : i32 to vector<1x256xi32>
    %69 = arith.cmpi slt, %67, %68 : vector<1x256xi32>
    %70 = arith.andi %65, %69 : vector<1x256xi1>
    %c0 = arith.constant 0 : index
    %c0_24 = arith.constant 0 : index
    %c0_25 = arith.constant 0 : index
    %71 = vector.load %arg1[%c0, %c0_24, %c0_25] : memref<1x8x256xf32, #tpu.memory_space<vmem>>, vector<1x8x256xf32>
    %72 = vector.shape_cast %71 : vector<1x8x256xf32> to vector<8x256xf32>
    %cst = arith.constant 0.000000e+00 : f32
    %73 = vector.broadcast %cst : f32 to vector<8x128xf32>
    %74 = tpu.concatenate %73, %72, %73 in 1 : vector<8x128xf32>, vector<8x256xf32>, vector<8x128xf32> -> vector<8x512xf32>
    %75 = vector.extract_strided_slice %74 {offsets = [0, 127], sizes = [8, 256], strides = [1, 1]} : vector<8x512xf32> to vector<8x256xf32>
    %cst_26 = arith.constant 0.000000e+00 : f32
    %76 = vector.shape_cast %25 : vector<1x256xi1> to vector<1x256xi1>
    %77 = vector.broadcast %76 : vector<1x256xi1> to vector<8x256xi1>
    %78 = vector.broadcast %cst_26 : f32 to vector<8x256xf32>
    %79 = arith.select %77, %75, %78 : vector<8x256xi1>, vector<8x256xf32>
    %80 = vector.extract_strided_slice %74 {offsets = [0, 128], sizes = [8, 256], strides = [1, 1]} : vector<8x512xf32> to vector<8x256xf32>
    %81 = vector.extract_strided_slice %74 {offsets = [0, 129], sizes = [8, 256], strides = [1, 1]} : vector<8x512xf32> to vector<8x256xf32>
    %cst_27 = arith.constant 0.000000e+00 : f32
    %82 = vector.shape_cast %34 : vector<1x256xi1> to vector<1x256xi1>
    %83 = vector.broadcast %82 : vector<1x256xi1> to vector<8x256xi1>
    %84 = vector.broadcast %cst_27 : f32 to vector<8x256xf32>
    %85 = arith.select %83, %81, %84 : vector<8x256xi1>, vector<8x256xf32>
    %86 = tpu.concatenate %79, %80, %85 in 0 : vector<8x256xf32>, vector<8x256xf32>, vector<8x256xf32> -> vector<24x256xf32>
    %cst_28 = arith.constant 0.000000e+00 : f32
    %87 = vector.broadcast %cst_28 : f32 to vector<24x128xf32>
    %88 = tpu.concatenate %87, %86, %87 in 1 : vector<24x128xf32>, vector<24x256xf32>, vector<24x128xf32> -> vector<24x512xf32>
    %89 = vector.extract_strided_slice %88 {offsets = [0, 112], sizes = [24, 256], strides = [1, 1]} : vector<24x512xf32> to vector<24x256xf32>
    %90 = vector.extract_strided_slice %88 {offsets = [0, 128], sizes = [24, 256], strides = [1, 1]} : vector<24x512xf32> to vector<24x256xf32>
    %91 = vector.extract_strided_slice %88 {offsets = [0, 144], sizes = [24, 256], strides = [1, 1]} : vector<24x512xf32> to vector<24x256xf32>
    %92 = tpu.concatenate %89, %90, %91 in 0 : vector<24x256xf32>, vector<24x256xf32>, vector<24x256xf32> -> vector<72x256xf32>
    %c0_29 = arith.constant 0 : index
    %c0_30 = arith.constant 0 : index
    %93 = vector.load %arg2[%c0_29, %c0_30] : memref<24x72xf32, #tpu.memory_space<vmem>>, vector<24x72xf32>
    %cst_31 = arith.constant dense<0.000000e+00> : vector<24x256xf32>
    %94 = tpu.matmul %93, %92, %cst_31 {dimension_numbers = #tpu.dot_dimension_numbers<[1], [0], [0], [1], [0, 0, 1, 1], [], []>} : vector<24x72xf32>, vector<72x256xf32>, vector<24x256xf32> -> vector<24x256xf32>
    %c0_32 = arith.constant 0 : index
    %c0_33 = arith.constant 0 : index
    %95 = vector.load %arg3[%c0_32, %c0_33] : memref<24x1xf32, #tpu.memory_space<vmem>>, vector<24x1xf32>
    %96 = vector.broadcast %95 : vector<24x1xf32> to vector<24x256xf32>
    %97 = arith.addf %94, %96 : vector<24x256xf32>
    %cst_34 = arith.constant 0.000000e+00 : f32
    %98 = vector.broadcast %cst_34 : f32 to vector<24x256xf32>
    %99 = arith.maximumf %97, %98 : vector<24x256xf32>
    %cst_35 = arith.constant 0.000000e+00 : f32
    %100 = vector.broadcast %cst_35 : f32 to vector<24x128xf32>
    %101 = tpu.concatenate %100, %99, %100 in 1 : vector<24x128xf32>, vector<24x256xf32>, vector<24x128xf32> -> vector<24x512xf32>
    %102 = vector.extract_strided_slice %101 {offsets = [0, 126], sizes = [24, 256], strides = [1, 1]} : vector<24x512xf32> to vector<24x256xf32>
    %cst_36 = arith.constant 0.000000e+00 : f32
    %103 = vector.shape_cast %43 : vector<1x256xi1> to vector<1x256xi1>
    %104 = vector.broadcast %103 : vector<1x256xi1> to vector<24x256xi1>
    %105 = vector.broadcast %cst_36 : f32 to vector<24x256xf32>
    %106 = arith.select %104, %102, %105 : vector<24x256xi1>, vector<24x256xf32>
    %107 = vector.extract_strided_slice %101 {offsets = [0, 127], sizes = [24, 256], strides = [1, 1]} : vector<24x512xf32> to vector<24x256xf32>
    %cst_37 = arith.constant 0.000000e+00 : f32
    %108 = vector.shape_cast %52 : vector<1x256xi1> to vector<1x256xi1>
    %109 = vector.broadcast %108 : vector<1x256xi1> to vector<24x256xi1>
    %110 = vector.broadcast %cst_37 : f32 to vector<24x256xf32>
    %111 = arith.select %109, %107, %110 : vector<24x256xi1>, vector<24x256xf32>
    %112 = vector.extract_strided_slice %101 {offsets = [0, 128], sizes = [24, 256], strides = [1, 1]} : vector<24x512xf32> to vector<24x256xf32>
    %113 = vector.extract_strided_slice %101 {offsets = [0, 129], sizes = [24, 256], strides = [1, 1]} : vector<24x512xf32> to vector<24x256xf32>
    %cst_38 = arith.constant 0.000000e+00 : f32
    %114 = vector.shape_cast %61 : vector<1x256xi1> to vector<1x256xi1>
    %115 = vector.broadcast %114 : vector<1x256xi1> to vector<24x256xi1>
    %116 = vector.broadcast %cst_38 : f32 to vector<24x256xf32>
    %117 = arith.select %115, %113, %116 : vector<24x256xi1>, vector<24x256xf32>
    %118 = vector.extract_strided_slice %101 {offsets = [0, 130], sizes = [24, 256], strides = [1, 1]} : vector<24x512xf32> to vector<24x256xf32>
    %cst_39 = arith.constant 0.000000e+00 : f32
    %119 = vector.shape_cast %70 : vector<1x256xi1> to vector<1x256xi1>
    %120 = vector.broadcast %119 : vector<1x256xi1> to vector<24x256xi1>
    %121 = vector.broadcast %cst_39 : f32 to vector<24x256xf32>
    %122 = arith.select %120, %118, %121 : vector<24x256xi1>, vector<24x256xf32>
    %123 = tpu.concatenate %106, %111, %112, %117, %122 in 0 : vector<24x256xf32>, vector<24x256xf32>, vector<24x256xf32>, vector<24x256xf32>, vector<24x256xf32> -> vector<120x256xf32>
    %cst_40 = arith.constant 0.000000e+00 : f32
    %124 = vector.broadcast %cst_40 : f32 to vector<120x128xf32>
    %125 = tpu.concatenate %124, %123, %124 in 1 : vector<120x128xf32>, vector<120x256xf32>, vector<120x128xf32> -> vector<120x512xf32>
    %126 = vector.extract_strided_slice %125 {offsets = [0, 96], sizes = [120, 256], strides = [1, 1]} : vector<120x512xf32> to vector<120x256xf32>
    %127 = vector.extract_strided_slice %125 {offsets = [0, 112], sizes = [120, 256], strides = [1, 1]} : vector<120x512xf32> to vector<120x256xf32>
    %128 = vector.extract_strided_slice %125 {offsets = [0, 128], sizes = [120, 256], strides = [1, 1]} : vector<120x512xf32> to vector<120x256xf32>
    %129 = vector.extract_strided_slice %125 {offsets = [0, 144], sizes = [120, 256], strides = [1, 1]} : vector<120x512xf32> to vector<120x256xf32>
    %130 = vector.extract_strided_slice %125 {offsets = [0, 160], sizes = [120, 256], strides = [1, 1]} : vector<120x512xf32> to vector<120x256xf32>
    %131 = tpu.concatenate %126, %127, %128, %129, %130 in 0 : vector<120x256xf32>, vector<120x256xf32>, vector<120x256xf32>, vector<120x256xf32>, vector<120x256xf32> -> vector<600x256xf32>
    %c0_41 = arith.constant 0 : index
    %c0_42 = arith.constant 0 : index
    %132 = vector.load %arg4[%c0_41, %c0_42] : memref<8x600xf32, #tpu.memory_space<vmem>>, vector<8x600xf32>
    %cst_43 = arith.constant dense<0.000000e+00> : vector<8x256xf32>
    %133 = tpu.matmul %132, %131, %cst_43 {dimension_numbers = #tpu.dot_dimension_numbers<[1], [0], [0], [1], [0, 0, 1, 1], [], []>} : vector<8x600xf32>, vector<600x256xf32>, vector<8x256xf32> -> vector<8x256xf32>
    %c0_44 = arith.constant 0 : index
    %c0_45 = arith.constant 0 : index
    %134 = vector.load %arg5[%c0_44, %c0_45] : memref<8x1xf32, #tpu.memory_space<vmem>>, vector<8x1xf32>
    %135 = vector.broadcast %134 : vector<8x1xf32> to vector<8x256xf32>
    %136 = arith.addf %133, %135 : vector<8x256xf32>
    %cst_46 = arith.constant 0.000000e+00 : f32
    %137 = vector.broadcast %cst_46 : f32 to vector<8x256xf32>
    %138 = arith.maximumf %136, %137 : vector<8x256xf32>
    %cst_47 = arith.constant 0.000000e+00 : f32
    %139 = vector.broadcast %cst_47 : f32 to vector<8x128xf32>
    %140 = tpu.concatenate %139, %138, %139 in 1 : vector<8x128xf32>, vector<8x256xf32>, vector<8x128xf32> -> vector<8x512xf32>
    %141 = vector.extract_strided_slice %140 {offsets = [0, 127], sizes = [8, 256], strides = [1, 1]} : vector<8x512xf32> to vector<8x256xf32>
    %cst_48 = arith.constant 0.000000e+00 : f32
    %142 = vector.shape_cast %25 : vector<1x256xi1> to vector<1x256xi1>
    %143 = vector.broadcast %142 : vector<1x256xi1> to vector<8x256xi1>
    %144 = vector.broadcast %cst_48 : f32 to vector<8x256xf32>
    %145 = arith.select %143, %141, %144 : vector<8x256xi1>, vector<8x256xf32>
    %146 = vector.extract_strided_slice %140 {offsets = [0, 128], sizes = [8, 256], strides = [1, 1]} : vector<8x512xf32> to vector<8x256xf32>
    %147 = vector.extract_strided_slice %140 {offsets = [0, 129], sizes = [8, 256], strides = [1, 1]} : vector<8x512xf32> to vector<8x256xf32>
    %cst_49 = arith.constant 0.000000e+00 : f32
    %148 = vector.shape_cast %34 : vector<1x256xi1> to vector<1x256xi1>
    %149 = vector.broadcast %148 : vector<1x256xi1> to vector<8x256xi1>
    %150 = vector.broadcast %cst_49 : f32 to vector<8x256xf32>
    %151 = arith.select %149, %147, %150 : vector<8x256xi1>, vector<8x256xf32>
    %152 = tpu.concatenate %145, %146, %151 in 0 : vector<8x256xf32>, vector<8x256xf32>, vector<8x256xf32> -> vector<24x256xf32>
    %cst_50 = arith.constant 0.000000e+00 : f32
    %153 = vector.broadcast %cst_50 : f32 to vector<24x128xf32>
    %154 = tpu.concatenate %153, %152, %153 in 1 : vector<24x128xf32>, vector<24x256xf32>, vector<24x128xf32> -> vector<24x512xf32>
    %155 = vector.extract_strided_slice %154 {offsets = [0, 112], sizes = [24, 256], strides = [1, 1]} : vector<24x512xf32> to vector<24x256xf32>
    %156 = vector.extract_strided_slice %154 {offsets = [0, 128], sizes = [24, 256], strides = [1, 1]} : vector<24x512xf32> to vector<24x256xf32>
    %157 = vector.extract_strided_slice %154 {offsets = [0, 144], sizes = [24, 256], strides = [1, 1]} : vector<24x512xf32> to vector<24x256xf32>
    %158 = tpu.concatenate %155, %156, %157 in 0 : vector<24x256xf32>, vector<24x256xf32>, vector<24x256xf32> -> vector<72x256xf32>
    %c0_51 = arith.constant 0 : index
    %c0_52 = arith.constant 0 : index
    %159 = vector.load %arg6[%c0_51, %c0_52] : memref<8x72xf32, #tpu.memory_space<vmem>>, vector<8x72xf32>
    %cst_53 = arith.constant dense<0.000000e+00> : vector<8x256xf32>
    %160 = tpu.matmul %159, %158, %cst_53 {dimension_numbers = #tpu.dot_dimension_numbers<[1], [0], [0], [1], [0, 0, 1, 1], [], []>} : vector<8x72xf32>, vector<72x256xf32>, vector<8x256xf32> -> vector<8x256xf32>
    %c0_54 = arith.constant 0 : index
    %c0_55 = arith.constant 0 : index
    %161 = vector.load %arg7[%c0_54, %c0_55] : memref<8x1xf32, #tpu.memory_space<vmem>>, vector<8x1xf32>
    %162 = vector.broadcast %161 : vector<8x1xf32> to vector<8x256xf32>
    %163 = arith.addf %160, %162 : vector<8x256xf32>
    %c0_56 = arith.constant 0 : index
    %c0_57 = arith.constant 0 : index
    %c0_58 = arith.constant 0 : index
    %164 = vector.load %arg8[%c0_56, %c0_57, %c0_58] : memref<1x8x256xf32, #tpu.memory_space<vmem>>, vector<1x8x256xf32>
    %165 = vector.shape_cast %164 : vector<1x8x256xf32> to vector<8x256xf32>
    %166 = vector.shape_cast %163 : vector<8x256xf32> to vector<1x8x256xf32>
    tpu.vector_store %arg8[%c0_56, %c0_57, %c0_58], %166 {strides = array<i32>} : memref<1x8x256xf32, #tpu.memory_space<vmem>>, vector<1x8x256xf32>,
    return
  }
  func.func @transform_0(%arg0: i32) -> (i32, i32, i32) {
    %c0_i32 = arith.constant 0 : i32
    %c0_i32_0 = arith.constant 0 : i32
    %c0_i32_1 = arith.constant 0 : i32
    return %arg0, %c0_i32, %c0_i32_0 : i32, i32, i32
  }
  func.func @transform_1(%arg0: i32) -> (i32, i32) {
    %c0_i32 = arith.constant 0 : i32
    %c0_i32_0 = arith.constant 0 : i32
    %c0_i32_1 = arith.constant 0 : i32
    return %c0_i32, %c0_i32_0 : i32, i32
  }
  func.func @transform_2(%arg0: i32) -> (i32, i32) {
    %c0_i32 = arith.constant 0 : i32
    %c0_i32_0 = arith.constant 0 : i32
    %c0_i32_1 = arith.constant 0 : i32
    return %c0_i32, %c0_i32_0 : i32, i32
  }
  func.func @transform_3(%arg0: i32) -> (i32, i32) {
    %c0_i32 = arith.constant 0 : i32
    %c0_i32_0 = arith.constant 0 : i32
    %c0_i32_1 = arith.constant 0 : i32
    return %c0_i32, %c0_i32_0 : i32, i32
  }
  func.func @transform_4(%arg0: i32) -> (i32, i32) {
    %c0_i32 = arith.constant 0 : i32
    %c0_i32_0 = arith.constant 0 : i32
    %c0_i32_1 = arith.constant 0 : i32
    return %c0_i32, %c0_i32_0 : i32, i32
  }
  func.func @transform_5(%arg0: i32) -> (i32, i32) {
    %c0_i32 = arith.constant 0 : i32
    %c0_i32_0 = arith.constant 0 : i32
    %c0_i32_1 = arith.constant 0 : i32
    return %c0_i32, %c0_i32_0 : i32, i32
  }
  func.func @transform_6(%arg0: i32) -> (i32, i32) {
    %c0_i32 = arith.constant 0 : i32
    %c0_i32_0 = arith.constant 0 : i32
    %c0_i32_1 = arith.constant 0 : i32
    return %c0_i32, %c0_i32_0 : i32, i32
  }
  func.func @transform_7(%arg0: i32) -> (i32, i32, i32) {
    %c0_i32 = arith.constant 0 : i32
    %c0_i32_0 = arith.constant 0 : i32
    %c0_i32_1 = arith.constant 0 : i32
    return %arg0, %c0_i32, %c0_i32_0 : i32, i32, i32
  }
}

</mosaic_0001>

<bundles_post_ra>
// kernel: contrast_source_net_16.1
= control target key start
LH: loop header
LB: loop body
LE: loop exit
PB: predicated region body
PF: predicated region fallthrough
CT: control target
= control target key end

     0   :  { %s3697_s24 = smov 0   ;;  %s5778_s0 = inlined_call_operand.vmem [shape: f32[2,8,256], index: 0, kind: input, shape index: {}]   ;;  %s5779_s1 = inlined_call_operand.vmem [shape: f32[24,72], index: 1, kind: input, shape index: {}]   ;;  %s5780_s2 = inlined_call_operand.vmem [shape: f32[24,1], index: 2, kind: input, shape index: {}]   ;;  %s5781_s3 = inlined_call_operand.vmem [shape: f32[8,600], index: 3, kind: input, shape index: {}]   ;;  %s5782_s4 = inlined_call_operand.vmem [shape: f32[8,1], index: 4, kind: input, shape index: {}]   ;;  %s5783_s5 = inlined_call_operand.vmem [shape: f32[8,72], index: 5, kind: input, shape index: {}]   ;;  %s5784_s6 = inlined_call_operand.vmem [shape: f32[8,1], index: 6, kind: input, shape index: {}]   ;;  %s5785_s7 = inlined_call_operand.vmem [shape: f32[2,8,256], index: 7, kind: output, shape index: {}]  }
   0x1 LB: > { %s2376_s25 = sadd.s32 4294967295, %s3643_s24   ;;  %p2380_p0 = scmp.ge.s32.totalorder %s3643_s24, 1  ;;  %s3643_s24 = sphi %s3697_s24, %s17_s24  }
   0x2   : > { %p237_p1 = scmp.lt.s32.totalorder %s3643_s24, 3 }
   0x4   : > { %p238_p2 = pnand %p2380_p0, %p237_p1 }
   0x6   : > { %241 = sbr.rel (%p238_p2) target bundleno = 2266 (0x8da), region = 48 }
   0xd   : > { %p269_p3 = scmp.lt.s32.totalorder %s2376_s25, 1  ;;  %v5786_v0 = vmov 0.0   ;;  %s3646_s30 = smov 127   ;;  %v279_v5 = vlaneseq  ;;  %vm353_vm0 = vcmask 7168   ;;  %vm370_vm3 = vcmask 1039360  }
   0xe   : > { %600 = vmatprep.mubr.f32.mxu0 %v5786_v0  ;;  %s3647_s8 = smov 1   ;;  %s3648_s9 = smov 112   ;;  %vm393_vm6 = vcmask 916480   ;;  %vm411_vm7 = vcmask 785408   ;;  %vm489_vm8 = vcmask 130048   ;;  %vm526_vm9 = vcmask 588800  }
   0xf   : > { %s6125_s25 = smov (!%p269_p3, %s2376_s25), 1  ;;  %v280_v6 = vand.u32 127, %v279_v5  ;;  %s3649_s10 = smov 96   ;;  %vm746_vm10 = vcmask 1031168   ;;  %vm649_vm13 = vcmask 15360  }
  0x10   : > { %s2392_s26 = sshll.u32 %s6125_s25, 4  ;;  %s3650_s11 = smov 16  }
  0x11   : > { %s273_s29 = scalar_lea.vmem %s5778_s0, %s2392_s26  ;;  %v281_v7 = vadd.s32 128, %v280_v6  ;;  %v3722_v8 = vand.u32 15, %v280_v6  ;;  %s3652_s27 = smov 126  }
  0x12   : > { %v338_v1 = vld [vmem:[%s273_s29] sm:$0xff]  ;;  %v339_v3 = vld [vmem:[%s273_s29 + $0x8] sm:$0xff]  ;;  %s3653_s28 = smov 2   ;;  %s3654_s29 = smov 32  }
  0x13   : > { %364 = vrot.lane.b32.xlu1 %v338_v1, %s3646_s30  ;;  %v2600_v2 = vpack.i.bf16 %v338_v1, %v5786_v0  ;;  %v2605_v4 = vpack.i.bf16 %v339_v3, %v338_v1  ;;  %v3724_v9 = vand.u32 15, %v281_v7  ;;  %v3730_v12 = vadd.s32 4294967295, %v3722_v8  ;;  %s3655_s12 = smov 80   ;;  %s3656_s13 = smov 64  }
  0x14   : > { %v3735_v16 = vadd.s32 1, %v3722_v8 }
  0x15   : > { %2601 = vrot.lane.b32.xlu0 %v2600_v2, %s3647_s8  ;;  %v3727_v11 = vadd.s32 4294967295, %v3724_v9  ;;  %5908 = vst [vmem:[#allocation3_spill] sm:$0xff] %v3730_v12  ;;  %vm308_vm2 = vcmp.ge.s32.totalorder %v3730_v12, 0  ;;  %v3742_v18 = vadd.s32 1, %v3724_v9 }
  0x16   : > { %5910 = vst [vmem:[#allocation5_spill] sm:$0xff] %v3735_v16  ;;  %vm318_vm4 = vcmp.lt.s32.totalorder %v3735_v16, 16 }
  0x17   : > { %366 = vrot.lane.b32.xlu1 %v339_v3, %s3646_s30  ;;  %5907 = vst [vmem:[#allocation2_spill] sm:$0xff] %v3727_v11  ;;  %vm309_vm1 = vcmp.ge.s32.totalorder %v3727_v11, 0  ;;  %5911 = vst [vmem:[#allocation6_spill] sm:$0xff] %v3742_v18  ;;  %vm319_vm5 = vcmp.lt.s32.totalorder %v3742_v18, 16 }
  0x19   : > { %351 = vrot.lane.b32.xlu0 %v339_v3, %s3647_s8 }
  0x1d   : > { %368 = vrot.lane.b32.xlu0 %v5786_v0, %s3646_s30 }
  0x21   : > { %2606 = vrot.lane.b32.xlu0 %v2605_v4, %s3648_s9 }
  0x85   : > { %v365_v10 = vpop.permute.xlu1 %364 }
  0x87   : > { %v2602_v13 = vpop.permute.xlu0 %2601 }
  0x88   : > { %v2604_v14 = vunpack.i.h.bf16 %v2602_v13  ;;  %v3732_v15 = vunpack.i.l.bf16 %v2602_v13 }
  0x89   : > { %v367_v19 = vpop.permute.xlu1 %366 }
  0x8a   : > { %5909 = vst [vmem:[#allocation4_spill] sm:$0xff] %v3732_v15  ;;  %v354_v17 = vsel %vm353_vm0, %v3732_v15, %v2604_v14  ;;  %v371_v24 = vsel %vm370_vm3, %v365_v10, %v367_v19 }
  0x8b   : > { %v352_v20 = vpop.permute.xlu0 %351  ;;  %v358_v23 = vsel %vm308_vm2, %v354_v17, 0.0  ;;  %v375_v28 = vsel %vm318_vm4, %v371_v24, 0.0  ;;  %v423_v24 = vld [vmem:[%s5780_s2 + $0x10] sm:$0xff] }
  0x8c   : > { %v355_v21 = vsel %vm353_vm0, %v2604_v14, %v352_v20  ;;  %v2645_v36 = vpack.i.bf16 %v375_v28, %v5786_v0 }
  0x8d   : > { %v359_v22 = vsel %vm309_vm1, %v355_v21, 0.0 }
  0x8e   : > { %v2625_v25 = vpack.i.bf16 %v359_v22, %v358_v23 }
  0x8f   : > { %v3752_v26 = vpop.permute.xlu0 %368 }
  0x90   : > { %5912 = vst [vmem:[#allocation7_spill] sm:$0xff] %v3752_v26  ;;  %2626 = vrot.lane.b32.xlu0 %v2625_v25, %s3649_s10  ;;  %2611 = vrot.lane.b32.xlu1 %v2625_v25, %s3648_s9  ;;  %v372_v27 = vsel %vm370_vm3, %v367_v19, %v3752_v26 }
  0x91   : > { %v376_v29 = vsel %vm319_vm5, %v372_v27, 0.0  ;;  %v3651_v27 = vmov 0  }
  0x92   : > { %v2615_v30 = vpack.i.bf16 %v376_v29, %v375_v28  ;;  %2685 = vset.pattern.permute.xlu1 %v3651_v27  ;;  %2686 = vset.pattern.permute.xlu0 %v3651_v27  ;;  %v420_v27 = vld [vmem:[%s5779_s1 + $0x10] sm:$0xff] }
  0x93   : > { %v2607_v31 = vpop.permute.xlu0 %2606 }
  0x94   : > { %405 = vrot.lane.b32.xlu0 %v339_v3, %s3649_s10  ;;  %2616 = vrot.lane.b32.xlu1 %v2615_v30, %s3648_s9  ;;  %v2609_v32 = vunpack.i.h.bf16 %v2607_v31  ;;  %v2608_v33 = vunpack.i.l.bf16 %v2607_v31 }
  0x96   : > { %v395_v34 = vsel %vm393_vm6, %v2608_v33, %v2609_v32 }
  0x97   : > { %v2635_v35 = vpack.i.bf16 %v2609_v32, %v395_v34 }
  0x98   : > { %409 = vrot.lane.b32.xlu0 %v376_v29, %s3649_s10  ;;  %2621 = vrot.lane.b32.xlu1 %v2600_v2, %s3649_s10 }
  0x9c   : > { %407 = vrot.lane.b32.xlu1 %v375_v28, %s3649_s10  ;;  %2631 = vrot.lane.b32.xlu0 %v2605_v4, %s3650_s11  ;;  %v421_v28 = vld [vmem:[%s5780_s2] sm:$0xff] }
  0xa0   : > { %2641 = vrot.lane.b32.xlu1 %v2625_v25, %s3650_s11  ;;  %2636 = vrot.lane.b32.xlu0 %v2635_v35, %s3650_s11 }
  0xa4   : > { %2646 = vrot.lane.b32.xlu1 %v2645_v36, %s3650_s11 }
 0x102   : > { %v2627_v37 = vpop.permute.xlu0 %2626  ;;  %v2612_v38 = vpop.permute.xlu1 %2611 }
 0x103   : > { %v2614_v39 = vunpack.i.h.bf16 %v2612_v38  ;;  %v2613_v40 = vunpack.i.l.bf16 %v2612_v38  ;;  %v2629_v48 = vunpack.i.h.bf16 %v2627_v37  ;;  %v2628_v49 = vunpack.i.l.bf16 %v2627_v37 }
 0x105   : > { %v2650_v41 = vpack.i.bf16 %v2613_v40, %v2614_v39  ;;  %v394_v42 = vsel %vm393_vm6, %v2613_v40, %v2614_v39  ;;  %v412_v59 = vsel %vm411_vm7, %v2628_v49, %v2629_v48 }
 0x106   : > { %v406_v43 = vpop.permute.xlu0 %405  ;;  %v2617_v44 = vpop.permute.xlu1 %2616  ;;  %v2655_v45 = vpack.i.bf16 %v394_v42, %v376_v29  ;;  %v422_v29 = vld [vmem:[%s5780_s2 + $0x8] sm:$0xff] }
 0x107   : > { %v2619_v46 = vunpack.i.h.bf16 %v2617_v44  ;;  %v2618_v47 = vunpack.i.l.bf16 %v2617_v44  ;;  %2651 = vrot.lane.b32.xlu1 %v2650_v41, %s3650_s11 }
 0x108   : > { %2656 = vrot.lane.b32.xlu0 %v2655_v45, %s3650_s11 }
 0x109   : > { %v2660_v50 = vpack.i.bf16 %v2618_v47, %v2608_v33  ;;  %v396_v51 = vsel %vm393_vm6, %v2618_v47, %v2619_v46 }
 0x10a   : > { %v410_v52 = vpop.permute.xlu0 %409  ;;  %v2622_v53 = vpop.permute.xlu1 %2621  ;;  %v2670_v54 = vpack.i.bf16 %v2619_v46, %v396_v51 }
 0x10b   : > { %v2624_v55 = vunpack.i.h.bf16 %v2622_v53  ;;  %v3777_v56 = vunpack.i.l.bf16 %v2622_v53 }
 0x10c   : > { %2661 = vrot.lane.b32.xlu0 %v2660_v50, %s3650_s11  ;;  %2671 = vrot.lane.b32.xlu1 %v2670_v54, %s3650_s11 }
 0x10d   : > { %5913 = vst [vmem:[#allocation8_spill] sm:$0xff] %v3777_v56  ;;  %v414_v57 = vsel %vm411_vm7, %v2624_v55, %v406_v43  ;;  %v415_v58 = vsel %vm411_vm7, %v406_v43, %v3777_v56  ;;  %v413_v60 = vsel %vm411_vm7, %v2629_v48, %v3777_v56  ;;  %v2680_v5 = vpack.i.bf16 %v2624_v55, %v2628_v49 }
 0x10e   : > { %v408_v61 = vpop.permute.xlu1 %407  ;;  %v2665_v62 = vpack.i.bf16 %v415_v58, %v414_v57  ;;  %v2675_v63 = vpack.i.bf16 %v413_v60, %v412_v59  ;;  %v2632_v1 = vpop.permute.xlu0 %2631  ;;  %v417_v21 = vsel %vm411_vm7, %v410_v52, %v3777_v56 }
 0x10f   : > { %v2634_v2 = vunpack.i.h.bf16 %v2632_v1  ;;  %v2633_v3 = vunpack.i.l.bf16 %v2632_v1  ;;  %v416_v10 = vsel %vm411_vm7, %v408_v61, %v410_v52 }
 0x110   : > { %2666 = vrot.lane.b32.xlu0 %v2665_v62, %s3650_s11  ;;  %2676 = vrot.lane.b32.xlu1 %v2675_v63, %s3650_s11 }
 0x111   : > { %v493_v13 = vsel %vm489_vm8, %v2633_v3, %v2634_v2 }
 0x112   : > { %v2642_v4 = vpop.permute.xlu1 %2641  ;;  %v2637_v30 = vpop.permute.xlu0 %2636 }
 0x113   : > { %v2644_v6 = vunpack.i.h.bf16 %v2642_v4  ;;  %v2643_v7 = vunpack.i.l.bf16 %v2642_v4  ;;  %v2639_v38 = vunpack.i.h.bf16 %v2637_v30  ;;  %v2638_v39 = vunpack.i.l.bf16 %v2637_v30 }
 0x114   : > { %485 = vrot.lane.b32.xlu0 %v416_v10, %s3650_s11  ;;  %2681 = vrot.lane.b32.xlu1 %v2680_v5, %s3650_s11 }
 0x115   : > { %v491_v14 = vsel %vm489_vm8, %v2643_v7, %v2644_v6  ;;  %v499_v52 = vsel %vm489_vm8, %v2638_v39, %v2639_v38 }
 0x116   : > { %v2647_v17 = vpop.permute.xlu1 %2646  ;;  %v2394_v19 = vpack.c.bf16 %v493_v13, %v491_v14 }
 0x117   : > { %v3794_v20 = vunpack.i.l.bf16 %v2647_v17  ;;  %v2649_v31 = vunpack.i.h.bf16 %v2647_v17 }
 0x118   : > { %2395 = vmatprep.subr.bf16.mxu0 %v2394_v19  ;;  %483 = vrot.lane.b32.xlu0 %v408_v61, %s3650_s11 }
 0x119   : > { %5914 = vst [vmem:[#allocation9_spill] sm:$0xff] %v3794_v20  ;;  %487 = vrot.lane.b32.xlu1 %v417_v21, %s3650_s11  ;;  %v490_v22 = vsel %vm489_vm8, %v3794_v20, %v2643_v7  ;;  %v492_v23 = vsel %vm489_vm8, %v3794_v20, %v2633_v3  ;;  %v494_v42 = vsel %vm489_vm8, %v3794_v20, %v2649_v31 }
 0x11a   : > { %v2396_v25 = vpack.c.bf16 %v492_v23, %v490_v22  ;;  %v418_v23 = vld [vmem:[%s5779_s1] sm:$0xff] }
 0x11c   : > { %2397 = vmatpush1.bf16.msra.mxu0 %v2396_v25  ;;  %436 = vperm.xlu0 %2686, %v423_v24   ;;  %v419_v25 = vld [vmem:[%s5779_s1 + $0x8] sm:$0xff] }
 0x11d   : > { %426 = vperm.xlu1 %2685, %v421_v28  }
 0x121   : > { %431 = vperm.xlu1 %2685, %v422_v29  }
 0x179   : > { %v2652_v32 = vpop.permute.xlu1 %2651 }
 0x17a   : > { %v2654_v33 = vunpack.i.h.bf16 %v2652_v32  ;;  %v2653_v34 = vunpack.i.l.bf16 %v2652_v32  ;;  %v2657_v35 = vpop.permute.xlu0 %2656 }
 0x17b   : > { %v2659_v36 = vunpack.i.h.bf16 %v2657_v35  ;;  %v2658_v37 = vunpack.i.l.bf16 %v2657_v35 }
 0x17d   : > { %v495_v40 = vsel %vm489_vm8, %v2649_v31, %v2658_v37  ;;  %v497_v41 = vsel %vm489_vm8, %v2659_v36, %v2653_v34  ;;  %v496_v43 = vsel %vm489_vm8, %v2654_v33, %v2659_v36 }
 0x17e   : > { %v2662_v44 = vpop.permute.xlu0 %2661  ;;  %v2672_v45 = vpop.permute.xlu1 %2671  ;;  %v2398_v46 = vpack.c.bf16 %v497_v41, %v495_v40  ;;  %v2400_v47 = vpack.c.bf16 %v496_v43, %v494_v42 }
 0x17f   : > { %v2664_v48 = vunpack.i.h.bf16 %v2662_v44  ;;  %v2663_v49 = vunpack.i.l.bf16 %v2662_v44  ;;  %v2674_v50 = vunpack.i.h.bf16 %v2672_v45  ;;  %v2673_v51 = vunpack.i.l.bf16 %v2672_v45 }
 0x180   : > { %2399 = vmatprep.subr.bf16.mxu0 %v2398_v46 }
 0x181   : > { %2401 = vmatpush1.bf16.msra.mxu0 %v2400_v47  ;;  %v501_v53 = vsel %vm489_vm8, %v2673_v51, %v2674_v50  ;;  %v498_v54 = vsel %vm489_vm8, %v2663_v49, %v2638_v39  ;;  %v500_v55 = vsel %vm489_vm8, %v2664_v48, %v2673_v51 }
 0x182   : > { %v2667_v57 = vpop.permute.xlu0 %2666  ;;  %v2677_v58 = vpop.permute.xlu1 %2676  ;;  %v2402_v59 = vpack.c.bf16 %v501_v53, %v499_v52  ;;  %v2404_v60 = vpack.c.bf16 %v500_v55, %v498_v54 }
 0x183   : > { %v2669_v61 = vunpack.i.h.bf16 %v2667_v57  ;;  %v2668_v62 = vunpack.i.l.bf16 %v2667_v57  ;;  %v2679_v63 = vunpack.i.h.bf16 %v2677_v58  ;;  %v2678_v1 = vunpack.i.l.bf16 %v2677_v58 }
 0x184   : > { %2403 = vmatprep.subr.bf16.mxu0 %v2402_v59 }
 0x185   : > { %2405 = vmatpush1.bf16.msra.mxu0 %v2404_v60  ;;  %v503_v2 = vsel %vm489_vm8, %v2678_v1, %v2679_v63  ;;  %v505_v3 = vsel %vm489_vm8, %v2668_v62, %v2669_v61 }
 0x186   : > { %v486_v4 = vpop.permute.xlu0 %485  ;;  %v2682_v5 = vpop.permute.xlu1 %2681  ;;  %v2406_v6 = vpack.c.bf16 %v505_v3, %v503_v2 }
 0x187   : > { %v2684_v7 = vunpack.i.h.bf16 %v2682_v5  ;;  %v2683_v10 = vunpack.i.l.bf16 %v2682_v5 }
 0x188   : > { %2407 = vmatprep.subr.bf16.mxu0 %v2406_v6 }
 0x189   : > { %v502_v13 = vsel %vm489_vm8, %v2683_v10, %v2678_v1  ;;  %v504_v14 = vsel %vm489_vm8, %v2684_v7, %v2668_v62 }
 0x18a   : > { %v2408_v17 = vpack.c.bf16 %v504_v14, %v502_v13  ;;  %v484_v21 = vpop.permute.xlu0 %483 }
 0x18b   : > { %v488_v19 = vpop.permute.xlu1 %487  ;;  %v506_v24 = vsel %vm489_vm8, %v484_v21, %v486_v4 }
 0x18c   : > { %2409 = vmatpush1.bf16.msra.mxu0 %v2408_v17  ;;  %v507_v22 = vsel %vm489_vm8, %v486_v4, %v488_v19  ;;  %v3901_v17 = vadd.s32 2, %v3724_v9  ;;  %v3904_v19 = vadd.s32 2, %v3722_v8 }
 0x18d   : > { %552 = vmatprep.subr.mxu0 %v507_v22 }
 0x18e   : > { %vm335_vm11 = vcmp.lt.s32.totalorder %v3901_v17, 16  ;;  %vm334_vm12 = vcmp.lt.s32.totalorder %v3904_v19, 16 }
 0x190   : > { %553 = vmatpush1.msra.mxu0 %v506_v24 }
 0x191   : > { %2385 = vmatmul.mubr.msk.f32.vlgmr.msra.gmra.mrb[0].mxu0 %vm526_vm9, %v418_v23 }
 0x192   : > { %606 = vmatprep.mubr.f32.mxu0 %v5786_v0 }
 0x195   : > { %2386 = vmatmul.mubr.msk.f32.gmra.mrb[2].mxu0 %vm526_vm9, %v419_v25 }
 0x196   : > { %612 = vmatprep.mubr.f32.mxu0 %v5786_v0 }
 0x199   : > { %2387 = vmatmul.mubr.msk.f32.gmra.mrb[4].mxu0 %vm526_vm9, %v420_v27 }
 0x19b   : > { %v437_v48 = vpop.permute.xlu0 %436 }
 0x19c   : > { %v427_v28 = vpop.permute.xlu1 %426 }
 0x1a0   : > { %v432_v34 = vpop.permute.xlu1 %431 }
 0x264   : > { %v602_v29 = vpop.f32.mrb[0].mxu0 }
 0x265   : > { %v603_v30 = vadd.f32 %v602_v29, %v427_v28  ;;  %v604_v31 = vpop.f32.mrb[1].mxu0 }
 0x266   : > { %v605_v32 = vadd.f32 %v604_v31, %v427_v28 }
 0x267   : > { %v3842_v33 = vmax.f32 %v603_v30, 0.0 }
 0x268   : > { %v620_v35 = vmax.f32 %v605_v32, 0.0  ;;  %v608_v36 = vpop.f32.mrb[2].mxu0 }
 0x269   : > { %v609_v37 = vadd.f32 %v608_v36, %v432_v34  ;;  %v610_v38 = vpop.f32.mrb[3].mxu0 }
 0x26a   : > { %v2692_v39 = vpack.i.bf16 %v620_v35, %v3842_v33  ;;  %v611_v44 = vadd.f32 %v610_v38, %v432_v34 }
 0x26b   : > { %v621_v40 = vmax.f32 %v609_v37, 0.0 }
 0x26c   : > { %v614_v41 = vpop.f32.mrb[4].mxu0  ;;  %2693 = vrot.lane.b32.xlu0 %v2692_v39, %s3646_s30  ;;  %2688 = vrot.lane.b32.xlu1 %v2692_v39, %s3647_s8  ;;  %v3852_v46 = vmax.f32 %v611_v44, 0.0 }
 0x26d   : > { %v616_v42 = vpop.f32.mrb[5].mxu0  ;;  %v2722_v43 = vpack.i.bf16 %v621_v40, %v620_v35  ;;  %v2707_v45 = vpack.i.bf16 %v621_v40, %v5786_v0  ;;  %v615_v50 = vadd.f32 %v614_v41, %v437_v48 }
 0x26e   : > { %v2742_v47 = vpack.i.bf16 %v3852_v46, %v621_v40  ;;  %v617_v49 = vadd.f32 %v616_v42, %v437_v48 }
 0x26f   : > { %v3865_v52 = vmax.f32 %v615_v50, 0.0 }
 0x270   : > { %2703 = vrot.lane.b32.xlu0 %v2692_v39, %s3649_s10  ;;  %2698 = vrot.lane.b32.xlu1 %v2692_v39, %s3652_s27  ;;  %v3861_v51 = vmax.f32 %v617_v49, 0.0 }
 0x271   : > { %v2752_v55 = vpack.i.bf16 %v3865_v52, %v5786_v0  ;;  %v2757_v57 = vpack.i.bf16 %v3865_v52, %v3852_v46 }
 0x272   : > { %v2772_v53 = vpack.i.bf16 %v3842_v33, %v3861_v51  ;;  %v2782_v54 = vpack.i.bf16 %v3861_v51, %v3865_v52 }
 0x274   : > { %2708 = vrot.lane.b32.xlu0 %v2707_v45, %s3652_s27  ;;  %2723 = vrot.lane.b32.xlu1 %v2722_v43, %s3648_s9 }
 0x278   : > { %2713 = vrot.lane.b32.xlu0 %v2722_v43, %s3653_s28  ;;  %2733 = vrot.lane.b32.xlu1 %v2722_v43, %s3654_s29 }
 0x27c   : > { %2718 = vrot.lane.b32.xlu0 %v2722_v43, %s3655_s12  ;;  %2743 = vrot.lane.b32.xlu1 %v2742_v47, %s3646_s30 }
 0x280   : > { %2728 = vrot.lane.b32.xlu0 %v2722_v43, %s3656_s13  ;;  %740 = vrot.lane.b32.xlu1 %v3852_v46, %s3652_s27 }
 0x284   : > { %2738 = vrot.lane.b32.xlu0 %v2742_v47, %s3647_s8  ;;  %643 = vrot.lane.b32.xlu1 %v3852_v46, %s3653_s28 }
 0x288   : > { %2773 = vrot.lane.b32.xlu0 %v2772_v53, %s3653_s28  ;;  %2748 = vrot.lane.b32.xlu1 %v2742_v47, %s3649_s10 }
 0x28c   : > { %2783 = vrot.lane.b32.xlu0 %v2782_v54, %s3646_s30  ;;  %2753 = vrot.lane.b32.xlu1 %v2752_v55, %s3653_s28 }
 0x290   : > { %744 = vrot.lane.b32.xlu0 %v3861_v51, %s3652_s27  ;;  %742 = vrot.lane.b32.xlu1 %v3865_v52, %s3652_s27 }
 0x294   : > { %2788 = vrot.lane.b32.xlu0 %v2782_v54, %s3649_s10  ;;  %2758 = vrot.lane.b32.xlu1 %v2757_v57, %s3655_s12 }
 0x298   : > { %2763 = vrot.lane.b32.xlu1 %v2757_v57, %s3648_s9 }
 0x29c   : > { %2768 = vrot.lane.b32.xlu1 %v2757_v57, %s3656_s13 }
 0x2a0   : > { %2778 = vrot.lane.b32.xlu1 %v2782_v54, %s3647_s8 }
 0x2de   : > { %v2694_v58 = vpop.permute.xlu0 %2693  ;;  %v2689_v59 = vpop.permute.xlu1 %2688 }
 0x2df   : > { %v2696_v60 = vunpack.i.h.bf16 %v2694_v58  ;;  %v2695_v61 = vunpack.i.l.bf16 %v2694_v58  ;;  %v2691_v62 = vunpack.i.h.bf16 %v2689_v59  ;;  %v2690_v63 = vunpack.i.l.bf16 %v2689_v59 }
 0x2e1   : > { %v680_v1 = vsel %vm353_vm0, %v3732_v15, %v2690_v63  ;;  %v681_v2 = vsel %vm353_vm0, %v2690_v63, %v2691_v62  ;;  %v711_v3 = vsel %vm370_vm3, %v2696_v60, %v3752_v26  ;;  %v710_v4 = vsel %vm370_vm3, %v2695_v61, %v2696_v60 }
 0x2e2   : > { %v3894_v5 = vsel %vm308_vm2, %v680_v1, 0.0  ;;  %v3898_v6 = vsel %vm309_vm1, %v681_v2, 0.0  ;;  %v2704_v7 = vpop.permute.xlu0 %2703  ;;  %v2699_v10 = vpop.permute.xlu1 %2698  ;;  %v3910_v24 = vsel %vm319_vm5, %v711_v3, 0.0  ;;  %v722_v25 = vsel %vm318_vm4, %v710_v4, 0.0 }
 0x2e3   : > { %5915 = vst [vmem:[#allocation10_spill] sm:$0xff] %v3898_v6  ;;  %v2706_v13 = vunpack.i.h.bf16 %v2704_v7  ;;  %v2705_v14 = vunpack.i.l.bf16 %v2704_v7  ;;  %v2701_v21 = vunpack.i.h.bf16 %v2699_v10  ;;  %v2700_v22 = vunpack.i.l.bf16 %v2699_v10  ;;  %5916 = vst [vmem:[#allocation11_spill] sm:$0xff] %v3910_v24 }
 0x2e4   : > { %v2797_v23 = vpack.i.bf16 %v3898_v6, %v3894_v5  ;;  %v2802_v34 = vpack.i.bf16 %v3910_v24, %v722_v25  ;;  %v3942_v43 = vpack.i.bf16 %v722_v25, %v3861_v51  ;;  %v3971_v60 = vadd.s32 4294967294, %v3722_v8 }
 0x2e5   : > { %v947_v27 = vsel %vm411_vm7, %v2705_v14, %v2706_v13  ;;  %v747_v32 = vsel %vm746_vm10, %v2700_v22, %v2701_v21  ;;  %v3974_v61 = vadd.s32 4294967294, %v3724_v9 }
 0x2e6   : > { %2798 = vrot.lane.b32.xlu1 %v2797_v23, %s3649_s10  ;;  %v2709_v28 = vpop.permute.xlu0 %2708  ;;  %v3916_v29 = vpop.permute.xlu1 %2723  ;;  %v2792_v30 = vpack.i.bf16 %v2706_v13, %v947_v27  ;;  %v3933_v39 = vsel %vm334_vm12, %v747_v32, 0.0  ;;  %vm324_vm14 = vcmp.ge.s32.totalorder %v3971_v60, 0 }
 0x2e7   : > { %v2710_v31 = vunpack.i.l.bf16 %v2709_v28  ;;  %v2711_v44 = vunpack.i.h.bf16 %v2709_v28  ;;  %vm325_vm15 = vcmp.ge.s32.totalorder %v3974_v61, 0 }
 0x2e8   : > { %2793 = vrot.lane.b32.xlu0 %v2792_v30, %s3654_s29 }
 0x2e9   : > { %v748_v35 = vsel %vm746_vm10, %v2701_v21, %v2710_v31 }
 0x2ea   : > { %v760_v36 = vsel %vm335_vm11, %v748_v35, 0.0  ;;  %2803 = vrot.lane.b32.xlu1 %v2802_v34, %s3649_s10  ;;  %v3927_v37 = vpop.permute.xlu0 %2713  ;;  %v3929_v38 = vpop.permute.xlu1 %2733 }
 0x2eb   : > { %5917 = vst [vmem:[#allocation12_spill] sm:$0xff] %v3929_v38  ;;  %v2807_v40 = vpack.i.bf16 %v760_v36, %v3933_v39  ;;  %v2715_v3 = vunpack.i.l.bf16 %v3927_v37  ;;  %v2716_v8 = vunpack.i.h.bf16 %v3927_v37 }
 0x2ed   : > { %2808 = vrot.lane.b32.xlu0 %v2807_v40, %s3649_s10 }
 0x2ee   : > { %v3937_v41 = vpop.permute.xlu0 %2718  ;;  %v3939_v42 = vpop.permute.xlu1 %2743 }
 0x2ef   : > { %5918 = vst [vmem:[#allocation13_spill] sm:$0xff] %v3937_v41  ;;  %v2746_v9 = vunpack.i.h.bf16 %v3939_v42 }
 0x2f1   : > { %2818 = vrot.lane.b32.xlu0 %v3942_v43, %s3655_s12  ;;  %v713_v19 = vsel %vm370_vm3, %v2746_v9, %v3752_v26 }
 0x2f2   : > { %v3946_v45 = vpop.permute.xlu0 %2728  ;;  %v741_v47 = vpop.permute.xlu1 %740 }
 0x2f3   : > { %v749_v48 = vsel %vm746_vm10, %v2711_v44, %v741_v47  ;;  %v750_v49 = vsel %vm746_vm10, %v741_v47, %v2710_v31 }
 0x2f4   : > { %v3952_v50 = vsel %vm334_vm12, %v749_v48, 0.0  ;;  %v3956_v53 = vsel %vm335_vm11, %v750_v49, 0.0 }
 0x2f5   : > { %2833 = vrot.lane.b32.xlu0 %v3942_v43, %s3648_s9  ;;  %v3963_v55 = vpack.i.bf16 %v3952_v50, %v760_v36 }
 0x2f6   : > { %v2739_v51 = vpop.permute.xlu0 %2738  ;;  %v3960_v54 = vpop.permute.xlu1 %643 }
 0x2f7   : > { %v2741_v44 = vunpack.i.h.bf16 %v2739_v51  ;;  %v2740_v49 = vunpack.i.l.bf16 %v2739_v51 }
 0x2f9   : > { %2853 = vrot.lane.b32.xlu0 %v3942_v43, %s3654_s29 }
 0x2fa   : > { %v2774_v57 = vpop.permute.xlu0 %2773  ;;  %v3967_v58 = vpop.permute.xlu1 %2748 }
 0x2fb   : > { %v2750_v59 = vunpack.i.l.bf16 %v3967_v58  ;;  %v2776_v62 = vunpack.i.h.bf16 %v2774_v57  ;;  %v2775_v27 = vunpack.i.l.bf16 %v2774_v57 }
 0x2fd   : > { %v2857_v63 = vpack.i.bf16 %v2750_v59, %v2705_v14  ;;  %v651_v7 = vsel %vm649_vm13, %v2776_v62, %v2715_v3  ;;  %v682_v3 = vsel %vm353_vm0, %v3732_v15, %v2740_v49 }
 0x2fe   : > { %v2784_v1 = vpop.permute.xlu0 %2783  ;;  %v3978_v2 = vpop.permute.xlu1 %2753  ;;  %v663_v34 = vsel %vm325_vm15, %v651_v7, 0.0  ;;  %v683_v7 = vsel %vm353_vm0, %v2740_v49, %v2741_v44  ;;  %v2751_v44 = vunpack.i.h.bf16 %v3967_v58 }
 0x2ff   : > { %v3982_v4 = vunpack.i.l.bf16 %v3978_v2  ;;  %2858 = vrot.lane.b32.xlu0 %v2857_v63, %s3654_s29  ;;  %v2786_v13 = vunpack.i.h.bf16 %v2784_v1  ;;  %v2785_v14 = vunpack.i.l.bf16 %v2784_v1  ;;  %v2756_v21 = vunpack.i.h.bf16 %v3978_v2 }
 0x300   : > { %v2745_v1 = vunpack.i.l.bf16 %v3939_v42  ;;  %v948_v37 = vsel %vm411_vm7, %v2750_v59, %v2751_v44 }
 0x301   : > { %v650_v10 = vsel %vm649_vm13, %v3982_v4, %v2776_v62  ;;  %v652_v22 = vsel %vm649_vm13, %v3982_v4, %v2716_v8  ;;  %v714_v57 = vsel %vm370_vm3, %v2785_v14, %v2786_v13  ;;  %v655_v17 = vsel %vm649_vm13, %v2756_v21, %v2775_v27 }
 0x302   : > { %v745_v23 = vpop.permute.xlu0 %744  ;;  %v743_v25 = vpop.permute.xlu1 %742  ;;  %v662_v28 = vsel %vm324_vm14, %v650_v10, 0.0  ;;  %v664_v30 = vsel %vm324_vm14, %v652_v22, 0.0  ;;  %v4030_v51 = vsel %vm318_vm4, %v714_v57, 0.0  ;;  %v667_v63 = vsel %vm325_vm15, %v655_v17, 0.0 }
 0x303   : > { %v752_v32 = vsel %vm746_vm10, %v745_v23, %v2710_v31  ;;  %v751_v36 = vsel %vm746_vm10, %v743_v25, %v745_v23  ;;  %v2862_v40 = vpack.i.bf16 %v664_v30, %v5786_v0  ;;  %v2812_v48 = vpack.i.bf16 %v663_v34, %v662_v28 }
 0x304   : > { %v4006_v35 = vsel %vm335_vm11, %v752_v32, 0.0  ;;  %v4012_v47 = vsel %vm334_vm12, %v751_v36, 0.0  ;;  %v715_v31 = vsel %vm370_vm3, %v2786_v13, %v3752_v26  ;;  %v725_v10 = vsel %vm319_vm5, %v713_v19, 0.0 }
 0x305   : > { %2863 = vrot.lane.b32.xlu0 %v2862_v40, %s3655_s12  ;;  %2813 = vrot.lane.b32.xlu1 %v2812_v48, %s3655_s12  ;;  %v4026_v62 = vsel %vm319_vm5, %v715_v31, 0.0  ;;  %v4043_v13 = vpack.i.bf16 %v4030_v51, %v725_v10  ;;  %v4050_v42 = vpack.i.bf16 %v3894_v5, %v667_v63  ;;  %v4054_v22 = vsel %vm308_vm2, %v682_v3, 0.0 }
 0x306   : > { %v4047_v14 = vpack.i.bf16 %v3933_v39, %v4026_v62  ;;  %v695_v23 = vsel %vm309_vm1, %v683_v7, 0.0  ;;  %v712_v25 = vsel %vm370_vm3, %v2745_v1, %v2746_v9  ;;  %v4066_v5 = vpop.permute.xlu1 %2758  ;;  %v654_v59 = vsel %vm649_vm13, %v3982_v4, %v2756_v21  ;;  %v4135_v60 = vpop.permute.xlu0 %2788 }
 0x307   : > { %v2897_v27 = vpack.i.bf16 %v695_v23, %v4054_v22  ;;  %v4064_v28 = vsel %vm318_vm4, %v712_v25, 0.0  ;;  %v3007_v4 = vpack.i.bf16 %v4006_v35, %v4012_v47  ;;  %v2791_v21 = vunpack.i.h.bf16 %v4135_v60 }
 0x308   : > { %v2902_v32 = vpack.i.bf16 %v725_v10, %v4064_v28  ;;  %v2922_v34 = vpack.i.bf16 %v4064_v28, %v3910_v24  ;;  %v5788_v19 = vunpack.i.l.bf16 %v4135_v60  ;;  %v3002_v25 = vpack.i.bf16 %v4026_v62, %v4030_v51 }
 0x309   : > { %2873 = vrot.lane.b32.xlu0 %v2862_v40, %s3648_s9  ;;  %2823 = vrot.lane.b32.xlu1 %v2812_v48, %s3648_s9  ;;  %vm1018_vm10 = vcmask 654336   ;;  %vm1575_vm11 = vcmask 261120   ;;  %vm1111_vm12 = vcmask 523264  }
 0x30a   : > { %v4073_v9 = vpop.permute.xlu1 %2763  ;;  %v949_v1 = vsel %vm411_vm7, %v5788_v19, %v2791_v21 }
 0x30b   : > { %v2982_v7 = vpack.i.bf16 %v2791_v21, %v949_v1 }
 0x30d   : > { %2883 = vrot.lane.b32.xlu0 %v2862_v40, %s3656_s13  ;;  %2828 = vrot.lane.b32.xlu1 %v2812_v48, %s3656_s13  ;;  %v653_v40 = vsel %vm649_vm13, %v2716_v8, %v3960_v54  ;;  %v2892_v54 = vpack.i.bf16 %v2751_v44, %v948_v37  ;;  %v2761_v37 = vunpack.i.h.bf16 %v4066_v5  ;;  %vm1876_vm13 = vcmask 719872  }
 0x30e   : > { %v4080_v36 = vpop.permute.xlu1 %2768 }
 0x30f   : > { %5919 = vst [vmem:[#allocation14_spill] sm:$0xff] %v4080_v36 }
 0x311   : > { %2898 = vrot.lane.b32.xlu0 %v2897_v27, %s3649_s10  ;;  %2838 = vrot.lane.b32.xlu1 %v3942_v43, %s3656_s13  ;;  %v2867_v43 = vpack.i.bf16 %v4054_v22, %v3898_v6 }
 0x312   : > { %v2779_v49 = vpop.permute.xlu1 %2778 }
 0x313   : > { %v2780_v57 = vunpack.i.l.bf16 %v2779_v49 }
 0x315   : > { %2903 = vrot.lane.b32.xlu0 %v2902_v32, %s3649_s10  ;;  %2843 = vrot.lane.b32.xlu1 %v2812_v48, %s3654_s29  ;;  %v684_v8 = vsel %vm353_vm0, %v3732_v15, %v2780_v57 }
 0x316   : > { %v696_v61 = vsel %vm308_vm2, %v684_v8, 0.0 }
 0x317   : > { %v2957_v58 = vpack.i.bf16 %v696_v61, %v695_v23 }
 0x319   : > { %2923 = vrot.lane.b32.xlu0 %v2922_v34, %s3648_s9  ;;  %2848 = vrot.lane.b32.xlu1 %v2812_v48, %s3649_s10  ;;  %v665_v48 = vsel %vm325_vm15, %v653_v40, 0.0 }
 0x31a   : > { %v2937_v31 = vpack.i.bf16 %v665_v48, %v664_v30  ;;  %v2907_v30 = vpack.i.bf16 %v3956_v53, %v3952_v50  ;;  %v4123_v50 = vsel %vm324_vm14, %v654_v59, 0.0 }
 0x31b   : > { %v2992_v17 = vpack.i.bf16 %v667_v63, %v4123_v50  ;;  %v2952_v2 = vpack.i.bf16 %v4123_v50, %v665_v48  ;;  %v2781_v63 = vunpack.i.h.bf16 %v2779_v49 }
 0x31d   : > { %2928 = vrot.lane.b32.xlu0 %v3963_v55, %s3648_s9  ;;  %2868 = vrot.lane.b32.xlu1 %v2867_v43, %s3655_s12  ;;  %v685_v3 = vsel %vm353_vm0, %v2780_v57, %v2781_v63 }
 0x31e   : > { %v4150_v10 = vsel %vm309_vm1, %v685_v3, 0.0  ;;  %v4212_v3 = vpack.i.bf16 %v4012_v47, %v3956_v53 }
 0x31f   : > { %v2997_v23 = vpack.i.bf16 %v4150_v10, %v696_v61  ;;  %v4160_v27 = vpack.i.bf16 %v3842_v33, %v4150_v10 }
 0x321   : > { %2933 = vrot.lane.b32.xlu0 %v2922_v34, %s3656_s13  ;;  %2878 = vrot.lane.b32.xlu1 %v2867_v43, %s3648_s9 }
 0x325   : > { %2938 = vrot.lane.b32.xlu0 %v2937_v31, %s3654_s29  ;;  %2888 = vrot.lane.b32.xlu1 %v2867_v43, %s3656_s13 }
 0x329   : > { %2943 = vrot.lane.b32.xlu0 %v2937_v31, %s3649_s10  ;;  %2893 = vrot.lane.b32.xlu1 %v2892_v54, %s3654_s29  ;;  %v5789_v54 = vunpack.i.l.bf16 %v4066_v5 }
 0x32d   : > { %1105 = vrot.lane.b32.xlu0 %v3956_v53, %s3656_s13  ;;  %2908 = vrot.lane.b32.xlu1 %v2907_v30, %s3649_s10 }
 0x331   : > { %2958 = vrot.lane.b32.xlu0 %v2957_v58, %s3655_s12  ;;  %2913 = vrot.lane.b32.xlu1 %v2922_v34, %s3655_s12 }
 0x335   : > { %2968 = vrot.lane.b32.xlu0 %v2957_v58, %s3648_s9  ;;  %2918 = vrot.lane.b32.xlu1 %v3963_v55, %s3655_s12 }
 0x339   : > { %2988 = vrot.lane.b32.xlu0 %v2957_v58, %s3654_s29  ;;  %2948 = vrot.lane.b32.xlu1 %v3963_v55, %s3656_s13 }
 0x33d   : > { %2993 = vrot.lane.b32.xlu0 %v2992_v17, %s3649_s10  ;;  %2953 = vrot.lane.b32.xlu1 %v2952_v2, %s3655_s12 }
 0x341   : > { %3008 = vrot.lane.b32.xlu0 %v3007_v4, %s3649_s10  ;;  %2963 = vrot.lane.b32.xlu1 %v2952_v2, %s3648_s9  ;;  %v3037_v4 = vpack.i.bf16 %v3933_v39, %v2761_v37 }
 0x345   : > { %3013 = vrot.lane.b32.xlu0 %v4050_v42, %s3655_s12  ;;  %2973 = vrot.lane.b32.xlu1 %v2952_v2, %s3656_s13 }
 0x349   : > { %2978 = vrot.lane.b32.xlu1 %v2957_v58, %s3656_s13 }
 0x34d   : > { %2983 = vrot.lane.b32.xlu1 %v2982_v7, %s3654_s29 }
 0x351   : > { %2998 = vrot.lane.b32.xlu1 %v2997_v23, %s3649_s10 }
 0x355   : > { %3003 = vrot.lane.b32.xlu1 %v3002_v25, %s3649_s10 }
 0x358   : > { %v4172_v44 = vpop.permute.xlu1 %2798 }
 0x359   : > { %3018 = vrot.lane.b32.xlu1 %v4160_v27, %s3655_s12 }
 0x35a   : > { %v4162_v32 = vpop.permute.xlu0 %2793 }
 0x35b   : > { %5920 = vst [vmem:[#allocation15_spill] sm:$0xff] %v4162_v32 }
 0x35c   : > { %v4178_v49 = vpop.permute.xlu1 %2803 }
 0x35f   : > { %v4166_v34 = vpop.permute.xlu0 %2808 }
 0x363   : > { %v4168_v43 = vpop.permute.xlu0 %2818 }
 0x364   : > { %v5790_v31 = vunpack.i.l.bf16 %v4168_v43 }
 0x366   : > { %v1035_v30 = vsel %vm1018_vm10, %v2761_v37, %v5790_v31 }
 0x367   : > { %v4170_v40 = vpop.permute.xlu0 %2833 }
 0x36b   : > { %v4174_v51 = vpop.permute.xlu0 %2853 }
 0x36c   : > { %5921 = vst [vmem:[#allocation16_spill] sm:$0xff] %v4174_v51 }
 0x371   : > { %v4176_v48 = vpop.permute.xlu0 %2858 }
 0x372   : > { %5922 = vst [vmem:[#allocation17_spill] sm:$0xff] %v4176_v48 }
 0x377   : > { %v4181_v57 = vpop.permute.xlu0 %2863  ;;  %v4188_v61 = vpop.permute.xlu1 %2813 }
 0x378   : > { %v4186_v8 = vunpack.i.l.bf16 %v4181_v57 }
 0x37a   : > { %v1034_v58 = vsel %vm1018_vm10, %v5789_v54, %v4186_v8 }
 0x37b   : > { %v4197_v59 = vpop.permute.xlu0 %2873  ;;  %v3027_v17 = vpack.i.bf16 %v1035_v30, %v1034_v58  ;;  %v4199_v2 = vpop.permute.xlu1 %2823 }
 0x37c   : > { %v4362_v36 = vunpack.i.l.bf16 %v4197_v59 }
 0x37d   : > { %3028 = vrot.lane.b32.xlu1 %v3027_v17, %s3654_s29 }
 0x37f   : > { %v4203_v21 = vpop.permute.xlu0 %2883  ;;  %v4205_v63 = vpop.permute.xlu1 %2828 }
 0x381   : > { %3038 = vrot.lane.b32.xlu1 %v3037_v4, %s3654_s29 }
 0x383   : > { %v4208_v1 = vpop.permute.xlu0 %2898  ;;  %v4214_v7 = vpop.permute.xlu1 %2838 }
 0x384   : > { %5923 = vst [vmem:[#allocation18_spill] sm:$0xff] %v4214_v7  ;;  %v2725_v7 = vunpack.i.l.bf16 %v3916_v29 }
 0x385   : > { %3063 = vrot.lane.b32.xlu1 %v4212_v3, %s3655_s12 }
 0x387   : > { %v4218_v23 = vpop.permute.xlu0 %2903  ;;  %v4220_v39 = vpop.permute.xlu1 %2843 }
 0x388   : > { %5924 = vst [vmem:[#allocation19_spill] sm:$0xff] %v4220_v39  ;;  %v2846_v0 = vunpack.i.h.bf16 %v4220_v39  ;;  %v5804_v19 = vunpack.i.l.bf16 %v4220_v39 }
 0x38a   : > { %v1577_v18 = vsel %vm1575_vm11, %v5804_v19, %v2846_v0 }
 0x38b   : > { %v4222_v25 = vpop.permute.xlu0 %2923  ;;  %v4224_v37 = vpop.permute.xlu1 %2848 }
 0x38c   : > { %5925 = vst [vmem:[#allocation20_spill] sm:$0xff] %v4224_v37  ;;  %v5938_v37 = vunpack.i.l.bf16 %v4168_v43 }
 0x38f   : > { %v4226_v30 = vpop.permute.xlu0 %2928  ;;  %v4228_v58 = vpop.permute.xlu1 %2868 }
 0x390   : > { %5926 = vst [vmem:[#allocation21_spill] sm:$0xff] %v4226_v30  ;;  %v2870_v32 = vunpack.i.l.bf16 %v4228_v58  ;;  %v5813_v0 = vunpack.i.h.bf16 %v4228_v58  ;;  %v2721_v30 = vunpack.i.h.bf16 %v3937_v41 }
 0x393   : > { %v4230_v17 = vpop.permute.xlu0 %2933  ;;  %v4232_v4 = vpop.permute.xlu1 %2878 }
 0x394   : > { %5927 = vst [vmem:[#allocation22_spill] sm:$0xff] %v4230_v17  ;;  %v1036_v17 = vsel %vm1018_vm10, %v5938_v37, %v4186_v8 }
 0x397   : > { %v4236_v54 = vpop.permute.xlu0 %2938  ;;  %v4240_v56 = vpop.permute.xlu1 %2888 }
 0x398   : > { %5928 = vst [vmem:[#allocation23_spill] sm:$0xff] %v4236_v54  ;;  %v2941_v31 = vunpack.i.h.bf16 %v4236_v54  ;;  %v5806_v20 = vunpack.i.l.bf16 %v4236_v54 }
 0x39a   : > { %v1579_v16 = vsel %vm1575_vm11, %v5806_v20, %v2941_v31 }
 0x39b   : > { %v4248_v26 = vpop.permute.xlu0 %2943  ;;  %v2410_v11 = vpack.c.bf16 %v1579_v16, %v1577_v18  ;;  %v4250_v12 = vpop.permute.xlu1 %2893  ;;  %v4265_v16 = vsel %vm1018_vm10, %v2870_v32, %v4186_v8 }
 0x39c   : > { %5929 = vst [vmem:[#allocation24_spill] sm:$0xff] %v4248_v26  ;;  %5930 = vst [vmem:[#allocation25_spill] sm:$0xff] %v4250_v12 }
 0x39d   : > { %2411 = vmatprep.subr.bf16.mxu0 %v2410_v11  ;;  %5932 = vst [vmem:[#allocation27_spill] sm:$0xff] %v4265_v16  ;;  %v2835_v16 = vunpack.i.l.bf16 %v4170_v40 }
 0x39f   : > { %v4252_v15 = vpop.permute.xlu0 %1105  ;;  %v4254_v48 = vpop.permute.xlu1 %2908 }
 0x3a0   : > { %5931 = vst [vmem:[#allocation26_spill] sm:$0xff] %v4252_v15 }
 0x3a3   : > { %v4257_v38 = vpop.permute.xlu0 %2958  ;;  %v4261_v51 = vpop.permute.xlu1 %2913 }
 0x3a4   : > { %v5814_v19 = vunpack.i.l.bf16 %v4257_v38 }
 0x3a6   : > { %v4272_v11 = vsel %vm1018_vm10, %v5813_v0, %v5814_v19 }
 0x3a7   : > { %5933 = vst [vmem:[#allocation28_spill] sm:$0xff] %v4272_v11  ;;  %v4276_v31 = vpop.permute.xlu1 %2918 }
 0x3ab   : > { %v4278_v20 = vpop.permute.xlu1 %2948 }
 0x3ac   : > { %5934 = vst [vmem:[#allocation29_spill] sm:$0xff] %v4278_v20 }
 0x3af   : > { %v4280_v12 = vpop.permute.xlu1 %2953 }
 0x3b3   : > { %v4282_v15 = vpop.permute.xlu1 %2963 }
 0x3b7   : > { %v4284_v54 = vpop.permute.xlu1 %2973 }
 0x3b8   : > { %5935 = vst [vmem:[#allocation30_spill] sm:$0xff] %v4284_v54  ;;  %v2910_v54 = vunpack.i.l.bf16 %v4254_v48 }
 0x3bb   : > { %v4286_v39 = vpop.permute.xlu1 %2978 }
 0x3bf   : > { %v4288_v24 = vpop.permute.xlu1 %2983 }
 0x3c0   : > { %5936 = vst [vmem:[#allocation31_spill] sm:$0xff] %v4288_v24  ;;  %v3032_v24 = vpack.i.bf16 %v2721_v30, %v1036_v17 }
 0x3c3   : > { %v4290_v26 = vpop.permute.xlu1 %2998 }
 0x3c7   : > { %v4292_v0 = vpop.permute.xlu1 %3003 }
 0x3cb   : > { %v4294_v19 = vpop.permute.xlu1 %3018 }
 0x3cc   : > { %5937 = vst [vmem:[#allocation32_spill] sm:$0xff] %v4294_v19  ;;  %v5820_v18 = vunpack.i.h.bf16 %v4294_v19 }
 0x3ce   : > { %v3022_v20 = vpack.i.bf16 %v4064_v28, %v5820_v18  ;;  %v2765_v28 = vunpack.i.l.bf16 %v4073_v9 }
 0x3d0   : > { %3023 = vrot.lane.b32.xlu0 %v3022_v20, %s3654_s29  ;;  %v5821_v20 = vunpack.i.h.bf16 %v3916_v29 }
 0x3d4   : > { %3033 = vrot.lane.b32.xlu0 %v3032_v24, %s3654_s29  ;;  %v866_v24 = vsel %vm393_vm6, %v5821_v20, %v2765_v28 }
 0x3d5   : > { %v3077_v37 = vpack.i.bf16 %v2765_v28, %v866_v24  ;;  %v5940_v28 = vunpack.i.l.bf16 %v4066_v5 }
 0x3d7   : > { %v1033_v24 = vsel %vm1018_vm10, %v2721_v30, %v5940_v28  ;;  %v5828_v30 = vunpack.i.l.bf16 %v4276_v31 }
 0x3d8   : > { %3043 = vrot.lane.b32.xlu0 %v3963_v55, %s3654_s29  ;;  %v4322_v55 = vpop.permute.xlu0 %2968 }
 0x3dc   : > { %3048 = vrot.lane.b32.xlu0 %v4043_v13, %s3655_s12  ;;  %v4327_v17 = vpop.permute.xlu0 %2988 }
 0x3dd   : > { %5939 = vst [vmem:[#allocation33_spill] sm:$0xff] %v4327_v17  ;;  %v5827_v17 = vunpack.i.l.bf16 %v4178_v49 }
 0x3e0   : > { %3053 = vrot.lane.b32.xlu0 %v4047_v14, %s3655_s12  ;;  %v4331_v18 = vpop.permute.xlu0 %2993 }
 0x3e4   : > { %3058 = vrot.lane.b32.xlu0 %v4050_v42, %s3648_s9  ;;  %v4337_v20 = vpop.permute.xlu0 %3008 }
 0x3e8   : > { %1016 = vrot.lane.b32.xlu0 %v4006_v35, %s3655_s12  ;;  %v4346_v41 = vpop.permute.xlu0 %3013  ;;  %s278_s12 = scalar_lea.vmem %s5785_s7, %s2392_s26 }
 0x3e9   : > { %v5830_v19 = vunpack.i.h.bf16 %v4346_v41 }
 0x3eb   : > { %v1025_v28 = vsel %vm1018_vm10, %v5830_v19, %v2870_v32 }
 0x3ec   : > { %3068 = vrot.lane.b32.xlu0 %v4160_v27, %s3648_s9 }
 0x3f0   : > { %3078 = vrot.lane.b32.xlu0 %v3077_v37, %s3654_s29  ;;  %v2806_v37 = vunpack.i.h.bf16 %v4178_v49 }
 0x3f4   : > { %3088 = vrot.lane.b32.xlu0 %v4050_v42, %s3656_s13 }
 0x3f8   : > { %3093 = vrot.lane.b32.xlu0 %v4160_v27, %s3656_s13  ;;  %v3132_v27 = vpack.i.bf16 %v1033_v24, %v4026_v62  ;;  %v5829_v62 = vunpack.i.l.bf16 %v4199_v2  ;;  %v3167_v24 = vpack.i.bf16 %v1025_v28, %v3852_v46 }
 0x3fa   : > { %v851_v32 = vsel %vm393_vm6, %v4362_v36, %v5829_v62  ;;  %v2831_v62 = vunpack.i.h.bf16 %v4205_v63 }
 0x3fc   : > { %3108 = vrot.lane.b32.xlu0 %v4212_v3, %s3648_s9  ;;  %v950_v3 = vsel %vm411_vm7, %v5827_v17, %v2806_v37 }
 0x3fd   : > { %v3157_v5 = vpack.i.bf16 %v2806_v37, %v950_v3  ;;  %v1044_v37 = vsel %vm1018_vm10, %v5828_v30, %v4186_v8 }
 0x400   : > { %3113 = vrot.lane.b32.xlu0 %v4043_v13, %s3656_s13 }
 0x404   : > { %1107 = vrot.lane.b32.xlu0 %v4012_v47, %s3656_s13 }
 0x408   : > { %3133 = vrot.lane.b32.xlu0 %v3132_v27, %s3654_s29  ;;  %v3182_v27 = vpack.i.bf16 %v851_v32, %v1044_v37  ;;  %v5840_v37 = vunpack.i.l.bf16 %v4205_v63  ;;  %v2880_v32 = vunpack.i.l.bf16 %v4232_v4 }
 0x40c   : > { %3158 = vrot.lane.b32.xlu0 %v3157_v5, %s3654_s29 }
 0x410   : > { %3168 = vrot.lane.b32.xlu0 %v3167_v24, %s3654_s29  ;;  %v4387_v24 = vunpack.i.l.bf16 %v4203_v21 }
 0x414   : > { %3183 = vrot.lane.b32.xlu0 %v3182_v27, %s3654_s29 }
 0x442   : > { %v4376_v3 = vpop.permute.xlu0 %3023 }
 0x443   : > { %5941 = vst [vmem:[#allocation34_spill] sm:$0xff] %v4376_v3 }
 0x446   : > { %v4378_v5 = vpop.permute.xlu0 %3033 }
 0x447   : > { %5942 = vst [vmem:[#allocation35_spill] sm:$0xff] %v4378_v5  ;;  %v1113_v5 = vsel %vm1111_vm12, %v2831_v62, %v4387_v24 }
 0x44a   : > { %v4380_v46 = vpop.permute.xlu0 %3043 }
 0x44b   : > { %5943 = vst [vmem:[#allocation36_spill] sm:$0xff] %v4380_v46 }
 0x44e   : > { %v4382_v28 = vpop.permute.xlu0 %3048 }
 0x452   : > { %v4384_v17 = vpop.permute.xlu0 %3053 }
 0x453   : > { %5944 = vst [vmem:[#allocation37_spill] sm:$0xff] %v4384_v17  ;;  %v1112_v17 = vsel %vm1111_vm12, %v5840_v37, %v2831_v62  ;;  %v2916_v37 = vunpack.i.h.bf16 %v4261_v51 }
 0x455   : > { %v3217_v11 = vpack.i.bf16 %v4012_v47, %v2916_v37 }
 0x456   : > { %v4389_v30 = vpop.permute.xlu0 %3058 }
 0x457   : > { %5945 = vst [vmem:[#allocation38_spill] sm:$0xff] %v4389_v30  ;;  %v3061_v27 = vunpack.i.h.bf16 %v4389_v30  ;;  %v3192_v30 = vpack.i.bf16 %v1113_v5, %v1112_v17 }
 0x459   : > { %v858_v19 = vsel %vm393_vm6, %v3061_v27, %v2880_v32 }
 0x45a   : > { %v4396_v46 = vpop.permute.xlu0 %1016  ;;  %v3187_v3 = vpack.i.bf16 %v2880_v32, %v858_v19  ;;  %v2766_v32 = vunpack.i.h.bf16 %v4073_v9 }
 0x45b   : > { %5946 = vst [vmem:[#allocation39_spill] sm:$0xff] %v4396_v46 }
 0x45c   : > { %3188 = vrot.lane.b32.xlu0 %v3187_v3, %s3654_s29  ;;  %v3212_v3 = vpack.i.bf16 %v4123_v50, %v2910_v54  ;;  %v868_v17 = vsel %vm393_vm6, %v2766_v32, %v2835_v16  ;;  %v2905_v50 = vunpack.i.l.bf16 %v4218_v23 }
 0x45d   : > { %v3082_v5 = vpack.i.bf16 %v2835_v16, %v868_v17  ;;  %v2911_v16 = vunpack.i.h.bf16 %v4254_v48  ;;  %v3050_v48 = vunpack.i.l.bf16 %v4382_v28 }
 0x45e   : > { %v4405_v6 = vpop.permute.xlu0 %3068 }
 0x45f   : > { %v5843_v19 = vunpack.i.h.bf16 %v4405_v6 }
 0x460   : > { %3193 = vrot.lane.b32.xlu0 %v3192_v30, %s3654_s29  ;;  %v5846_v30 = vunpack.i.h.bf16 %v4232_v4 }
 0x461   : > { %v864_v62 = vsel %vm393_vm6, %v5843_v19, %v2725_v7  ;;  %v2906_v19 = vunpack.i.h.bf16 %v4218_v23 }
 0x462   : > { %v3072_v46 = vpack.i.bf16 %v2725_v7, %v864_v62  ;;  %v857_v7 = vsel %vm393_vm6, %v4362_v36, %v3061_v27  ;;  %v954_v27 = vsel %vm411_vm7, %v2910_v54, %v2911_v16  ;;  %v5947_v54 = vunpack.i.l.bf16 %v4257_v38 }
 0x463   : > { %v951_v47 = vsel %vm411_vm7, %v2905_v50, %v2906_v19  ;;  %v3237_v17 = vpack.i.bf16 %v2911_v16, %v954_v27  ;;  %v1039_v16 = vsel %vm1018_vm10, %v2916_v37, %v3050_v48  ;;  %v2876_v27 = vunpack.i.h.bf16 %v4197_v59 }
 0x464   : > { %3073 = vrot.lane.b32.xlu1 %v3072_v46, %s3654_s29  ;;  %3213 = vrot.lane.b32.xlu0 %v3212_v3, %s3654_s29  ;;  %v859_v46 = vsel %vm393_vm6, %v4362_v36, %v5846_v30  ;;  %v4438_v3 = vpop.permute.xlu1 %3028  ;;  %v2980_v59 = vunpack.i.l.bf16 %v4286_v39  ;;  %v2956_v30 = vunpack.i.h.bf16 %v4280_v12 }
 0x465   : > { %v3222_v62 = vpack.i.bf16 %v859_v46, %v857_v7  ;;  %v2915_v7 = vunpack.i.l.bf16 %v4261_v51  ;;  %v5948_v46 = vunpack.i.h.bf16 %v4346_v41  ;;  %v2971_v51 = vunpack.i.h.bf16 %v4322_v55 }
 0x468   : > { %3083 = vrot.lane.b32.xlu1 %v3082_v5, %s3654_s29  ;;  %3218 = vrot.lane.b32.xlu0 %v3217_v11, %s3654_s29  ;;  %v3232_v11 = vpack.i.bf16 %v2906_v19, %v951_v47  ;;  %v4447_v5 = vpop.permute.xlu1 %3038  ;;  %v1028_v19 = vsel %vm1018_vm10, %v5947_v54, %v4186_v8  ;;  %v2965_v47 = vunpack.i.l.bf16 %v4282_v15 }
 0x46c   : > { %3098 = vrot.lane.b32.xlu1 %v4043_v13, %s3648_s9  ;;  %3223 = vrot.lane.b32.xlu0 %v3222_v62, %s3654_s29  ;;  %v3252_v62 = vpack.i.bf16 %v5948_v46, %v1028_v19  ;;  %v854_v19 = vsel %vm393_vm6, %v2876_v27, %v2965_v47 }
 0x46d   : > { %v3267_v37 = vpack.i.bf16 %v2965_v47, %v854_v19  ;;  %v1121_v19 = vsel %vm1111_vm12, %v2980_v59, %v4387_v24 }
 0x470   : > { %3103 = vrot.lane.b32.xlu1 %v4047_v14, %s3648_s9  ;;  %3233 = vrot.lane.b32.xlu0 %v3232_v11, %s3654_s29  ;;  %v4464_v11 = vpop.permute.xlu1 %3063 }
 0x471   : > { %v3065_v46 = vunpack.i.l.bf16 %v4464_v11 }
 0x474   : > { %849 = vrot.lane.b32.xlu1 %v4006_v35, %s3648_s9  ;;  %3238 = vrot.lane.b32.xlu0 %v3237_v17, %s3654_s29  ;;  %v1038_v17 = vsel %vm1018_vm10, %v2915_v7, %v4186_v8 }
 0x475   : > { %v3257_v54 = vpack.i.bf16 %v1039_v16, %v1038_v17  ;;  %v1046_v16 = vsel %vm1018_vm10, %v3065_v46, %v4186_v8  ;;  %v2815_v17 = vunpack.i.l.bf16 %v4188_v61 }
 0x478   : > { %3118 = vrot.lane.b32.xlu1 %v4047_v14, %s3656_s13  ;;  %3253 = vrot.lane.b32.xlu0 %v3252_v62, %s3654_s29  ;;  %v5844_v14 = vunpack.i.h.bf16 %v4276_v31 }
 0x47a   : > { %v1045_v62 = vsel %vm1018_vm10, %v5844_v14, %v3065_v46  ;;  %v3137_v46 = vpack.i.bf16 %v4054_v22, %v2815_v17  ;;  %v2801_v22 = vunpack.i.h.bf16 %v4172_v44 }
 0x47c   : > { %3123 = vrot.lane.b32.xlu1 %v4050_v42, %s3654_s29  ;;  %3258 = vrot.lane.b32.xlu0 %v3257_v54, %s3654_s29  ;;  %v5845_v42 = vunpack.i.h.bf16 %v4240_v56  ;;  %v3272_v54 = vpack.i.bf16 %v1046_v16, %v1045_v62  ;;  %v2800_v62 = vunpack.i.l.bf16 %v4172_v44  ;;  %v5950_v16 = vunpack.i.l.bf16 %v4178_v49 }
 0x47d   : > { %v5848_v49 = vunpack.i.l.bf16 %v4292_v0  ;;  %v2816_v44 = vunpack.i.h.bf16 %v4188_v61 }
 0x47e   : > { %v1120_v47 = vsel %vm1111_vm12, %v5845_v42, %v2980_v59  ;;  %v5949_v59 = vunpack.i.l.bf16 %v4135_v60  ;;  %v3302_v60 = vpack.i.bf16 %v3842_v33, %v2956_v30 }
 0x47f   : > { %v3287_v14 = vpack.i.bf16 %v1121_v19, %v1120_v47  ;;  %v5951_v47 = vmov 0.0   ;;  %v3317_v33 = vpack.i.bf16 %v5848_v49, %v2905_v50  ;;  %v1020_v23 = vsel %vm1018_vm10, %v2816_v44, %v4186_v8 }
 0x480   : > { %1109 = vrot.lane.b32.xlu1 %v4006_v35, %s3656_s13  ;;  %3268 = vrot.lane.b32.xlu0 %v3267_v37, %s3654_s29  ;;  %v2995_v37 = vunpack.i.l.bf16 %v4331_v18 }
 0x482   : > { %v3292_v42 = vpack.i.bf16 %v2800_v62, %v2995_v37 }
 0x484   : > { %3128 = vrot.lane.b32.xlu1 %v4043_v13, %s3654_s29  ;;  %3273 = vrot.lane.b32.xlu0 %v3272_v54, %s3654_s29  ;;  %v3142_v13 = vpack.i.bf16 %v5950_v16, %v5949_v59  ;;  %v2810_v54 = vunpack.i.l.bf16 %v4166_v34  ;;  %v4530_v16 = vpop.permute.xlu0 %3078 }
 0x486   : > { %v3147_v19 = vpack.i.bf16 %v2810_v54, %v5951_v47 }
 0x488   : > { %3138 = vrot.lane.b32.xlu1 %v3137_v46, %s3654_s29  ;;  %3288 = vrot.lane.b32.xlu0 %v3287_v14, %s3654_s29  ;;  %v944_v14 = vsel %vm411_vm7, %v2800_v62, %v2801_v22  ;;  %v2811_v46 = vunpack.i.h.bf16 %v4166_v34  ;;  %v5847_v34 = vunpack.i.h.bf16 %v4282_v15 }
 0x489   : > { %v3152_v59 = vpack.i.bf16 %v2801_v22, %v944_v14  ;;  %v4553_v14 = vpop.permute.xlu0 %3088 }
 0x48a   : > { %v953_v62 = vsel %vm411_vm7, %v2810_v54, %v2811_v46 }
 0x48b   : > { %v3162_v22 = vpack.i.bf16 %v2811_v46, %v953_v62  ;;  %v853_v46 = vsel %vm393_vm6, %v4362_v36, %v2876_v27  ;;  %v3091_v27 = vunpack.i.h.bf16 %v4553_v14 }
 0x48c   : > { %3143 = vrot.lane.b32.xlu1 %v3142_v13, %s3654_s29  ;;  %3293 = vrot.lane.b32.xlu0 %v3292_v42, %s3654_s29  ;;  %v3010_v42 = vunpack.i.l.bf16 %v4337_v20  ;;  %v2821_v13 = vunpack.i.h.bf16 %v4168_v43 }
 0x48e   : > { %v3327_v50 = vpack.i.bf16 %v3010_v42, %v1020_v23  ;;  %v1037_v54 = vsel %vm1018_vm10, %v2821_v13, %v2915_v7  ;;  %v5952_v7 = vunpack.i.l.bf16 %v4199_v2  ;;  %v2996_v23 = vunpack.i.h.bf16 %v4331_v18 }
 0x490   : > { %3148 = vrot.lane.b32.xlu1 %v3147_v19, %s3654_s29  ;;  %3303 = vrot.lane.b32.xlu0 %v3302_v60, %s3654_s29  ;;  %v2826_v19 = vunpack.i.h.bf16 %v4199_v2  ;;  %v855_v60 = vsel %vm393_vm6, %v4362_v36, %v5847_v34  ;;  %v5954_v34 = vunpack.i.h.bf16 %v4228_v58  ;;  %v867_v58 = vsel %vm393_vm6, %v4362_v36, %v2766_v32 }
 0x491   : > { %v2955_v32 = vunpack.i.l.bf16 %v4280_v12 }
 0x492   : > { %v852_v62 = vsel %vm393_vm6, %v5952_v7, %v2826_v19  ;;  %v3001_v7 = vunpack.i.h.bf16 %v4290_v26 }
 0x493   : > { %v3177_v18 = vpack.i.bf16 %v852_v62, %v4006_v35  ;;  %v1022_v43 = vsel %vm1018_vm10, %v2955_v32, %v4186_v8 }
 0x494   : > { %3153 = vrot.lane.b32.xlu1 %v3152_v59, %s3654_s29  ;;  %3318 = vrot.lane.b32.xlu0 %v3317_v33, %s3654_s29  ;;  %v3172_v59 = vpack.i.bf16 %v1037_v54, %v3956_v53  ;;  %v3337_v33 = vpack.i.bf16 %v855_v60, %v853_v46  ;;  %v2890_v53 = vunpack.i.l.bf16 %v4240_v56  ;;  %v861_v54 = vsel %vm393_vm6, %v4362_v36, %v2971_v51 }
 0x495   : > { %v943_v46 = vsel %vm411_vm7, %v2995_v37, %v2996_v23 }
 0x496   : > { %v1119_v35 = vsel %vm1111_vm12, %v2890_v53, %v4387_v24  ;;  %v3352_v62 = vpack.i.bf16 %v2996_v23, %v943_v46  ;;  %v5955_v23 = vunpack.i.h.bf16 %v3916_v29  ;;  %v2901_v46 = vunpack.i.h.bf16 %v4208_v1 }
 0x497   : > { %v5956_v29 = vunpack.i.l.bf16 %v4205_v63  ;;  %v5849_v63 = vunpack.i.h.bf16 %v4181_v57 }
 0x498   : > { %3163 = vrot.lane.b32.xlu1 %v3162_v22, %s3654_s29  ;;  %3328 = vrot.lane.b32.xlu0 %v3327_v50, %s3654_s29  ;;  %v5953_v22 = vunpack.i.h.bf16 %v4405_v6 }
 0x49a   : > { %v863_v50 = vsel %vm393_vm6, %v4362_v36, %v5953_v22  ;;  %v3000_v22 = vunpack.i.l.bf16 %v4290_v26 }
 0x49b   : > { %v3347_v60 = vpack.i.bf16 %v863_v50, %v861_v54  ;;  %v2886_v54 = vunpack.i.h.bf16 %v4203_v21 }
 0x49c   : > { %3173 = vrot.lane.b32.xlu1 %v3172_v59, %s3654_s29  ;;  %3338 = vrot.lane.b32.xlu0 %v3337_v33, %s3654_s29  ;;  %v1118_v59 = vsel %vm1111_vm12, %v3091_v27, %v2890_v53  ;;  %v4586_v33 = vpop.permute.xlu0 %3093  ;;  %v946_v37 = vsel %vm411_vm7, %v3000_v22, %v3001_v7  ;;  %v865_v53 = vsel %vm393_vm6, %v4362_v36, %v5955_v23  ;;  %v5851_v23 = vunpack.i.h.bf16 %v4222_v25 }
 0x49d   : > { %v3197_v50 = vpack.i.bf16 %v1119_v35, %v1118_v59  ;;  %v2900_v59 = vunpack.i.l.bf16 %v4208_v1  ;;  %v2925_v35 = vunpack.i.l.bf16 %v4222_v25 }
 0x4a0   : > { %3178 = vrot.lane.b32.xlu1 %v3177_v18, %s3654_s29  ;;  %3348 = vrot.lane.b32.xlu0 %v3347_v60, %s3654_s29  ;;  %v3202_v18 = vpack.i.bf16 %v3865_v52, %v5954_v34  ;;  %v3357_v60 = vpack.i.bf16 %v3001_v7, %v946_v37  ;;  %v4601_v49 = vpop.permute.xlu0 %3108  ;;  %v2836_v52 = vunpack.i.h.bf16 %v4170_v40  ;;  %v3207_v34 = vpack.i.bf16 %v2886_v54, %v5956_v29 }
 0x4a1   : > { %v3362_v7 = vpack.i.bf16 %v867_v58, %v865_v53  ;;  %v2730_v40 = vunpack.i.l.bf16 %v3946_v45  ;;  %v1021_v53 = vsel %vm1018_vm10, %v5849_v63, %v2955_v32 }
 0x4a2   : > { %v870_v9 = vsel %vm393_vm6, %v2836_v52, %v2925_v35 }
 0x4a3   : > { %v1125_v29 = vsel %vm1111_vm12, %v2730_v40, %v4387_v24 }
 0x4a4   : > { %3198 = vrot.lane.b32.xlu1 %v3197_v50, %s3654_s29  ;;  %3353 = vrot.lane.b32.xlu0 %v3352_v62, %s3654_s29  ;;  %v945_v62 = vsel %vm411_vm7, %v2900_v59, %v2901_v46  ;;  %v5850_v50 = vunpack.i.h.bf16 %v4586_v33  ;;  %v4627_v37 = vpop.permute.xlu0 %3113 }
 0x4a6   : > { %v1124_v58 = vsel %vm1111_vm12, %v5850_v50, %v2730_v40  ;;  %v5962_v50 = vunpack.i.h.bf16 %v4232_v4 }
 0x4a8   : > { %3203 = vrot.lane.b32.xlu1 %v3202_v18, %s3654_s29  ;;  %3358 = vrot.lane.b32.xlu0 %v3357_v60, %s3654_s29  ;;  %v3227_v18 = vpack.i.bf16 %v2901_v46, %v945_v62  ;;  %v3372_v60 = vpack.i.bf16 %v2925_v35, %v870_v9  ;;  %v3242_v46 = vpack.i.bf16 %v1021_v53, %v4150_v10  ;;  %v3011_v62 = vunpack.i.h.bf16 %v4337_v20 }
 0x4a9   : > { %v3382_v35 = vpack.i.bf16 %v1125_v29, %v1124_v58  ;;  %v869_v9 = vsel %vm393_vm6, %v4362_v36, %v2836_v52  ;;  %v1040_v53 = vsel %vm1018_vm10, %v3050_v48, %v4186_v8  ;;  %v5957_v52 = vld [vmem:[#allocation28_spill] sm:$0xff]  ;;  %v5958_v29 = vld [vmem:[#allocation27_spill] sm:$0xff] }
 0x4aa   : > { %v955_v10 = vsel %vm411_vm7, %v3010_v42, %v3011_v62  ;;  %v3262_v42 = vpack.i.bf16 %v2821_v13, %v1040_v53  ;;  %v5965_v53 = vld [vmem:[#allocation32_spill] sm:$0xff] }
 0x4ab   : > { %v3020_v32 = vunpack.i.l.bf16 %v5965_v53 }
 0x4ac   : > { %3208 = vrot.lane.b32.xlu1 %v3207_v34, %s3654_s29  ;;  %3363 = vrot.lane.b32.xlu0 %v3362_v7, %s3654_s29  ;;  %v4644_v34 = vpop.permute.xlu0 %1107  ;;  %v871_v7 = vsel %vm393_vm6, %v4362_v36, %v5851_v23 }
 0x4ad   : > { %v3397_v40 = vpack.i.bf16 %v871_v7, %v869_v9  ;;  %v5961_v9 = vld [vmem:[#allocation10_spill] sm:$0xff]  ;;  %v1030_v21 = vsel %vm1018_vm10, %v3020_v32, %v4186_v8 }
 0x4ae   : > { %v3407_v63 = vpack.i.bf16 %v955_v10, %v5961_v9 }
 0x4b0   : > { %3228 = vrot.lane.b32.xlu1 %v3227_v18, %s3654_s29  ;;  %3373 = vrot.lane.b32.xlu0 %v3372_v60, %s3654_s29  ;;  %v2970_v18 = vunpack.i.l.bf16 %v4322_v55  ;;  %v3015_v60 = vunpack.i.l.bf16 %v4346_v41  ;;  %v4667_v58 = vpop.permute.xlu0 %3133  ;;  %v5860_v41 = vunpack.i.h.bf16 %v4601_v49 }
 0x4b2   : > { %v860_v48 = vsel %vm393_vm6, %v5962_v50, %v2970_v18 }
 0x4b3   : > { %v3277_v13 = vpack.i.bf16 %v2970_v18, %v860_v48  ;;  %v5966_v18 = vld [vmem:[#allocation13_spill] sm:$0xff] }
 0x4b4   : > { %3243 = vrot.lane.b32.xlu1 %v3242_v46, %s3654_s29  ;;  %3383 = vrot.lane.b32.xlu0 %v3382_v35, %s3654_s29  ;;  %v5959_v46 = vpack.i.bf16 %v5957_v52, %v5958_v29  ;;  %v5960_v35 = vld [vmem:[#allocation18_spill] sm:$0xff]  ;;  %v1023_v52 = vsel %vm1018_vm10, %v2956_v30, %v3015_v60  ;;  %v4695_v50 = vpop.permute.xlu0 %3158 }
 0x4b5   : > { %v2840_v7 = vunpack.i.l.bf16 %v5960_v35  ;;  %v5963_v29 = vld [vmem:[#allocation30_spill] sm:$0xff]  ;;  %v3412_v12 = vpack.i.bf16 %v1023_v52, %v1022_v43  ;;  %v5967_v52 = vunpack.i.h.bf16 %v5965_v53 }
 0x4b7   : > { %v1129_v30 = vsel %vm1111_vm12, %v2840_v7, %v4387_v24 }
 0x4b8   : > { %3248 = vrot.lane.b32.xlu1 %v5959_v46, %s3654_s29  ;;  %3398 = vrot.lane.b32.xlu0 %v3397_v40, %s3654_s29  ;;  %v2975_v46 = vunpack.i.l.bf16 %v5963_v29  ;;  %v5964_v40 = vld [vmem:[#allocation14_spill] sm:$0xff]  ;;  %v4716_v43 = vpop.permute.xlu0 %3168 }
 0x4b9   : > { %v5854_v23 = vunpack.i.h.bf16 %v5964_v40 }
 0x4ba   : > { %v1114_v10 = vsel %vm1111_vm12, %v2886_v54, %v2975_v46  ;;  %v5968_v54 = vld [vmem:[#allocation37_spill] sm:$0xff] }
 0x4bb   : > { %v1128_v4 = vsel %vm1111_vm12, %v5854_v23, %v2840_v7 }
 0x4bc   : > { %3263 = vrot.lane.b32.xlu1 %v3262_v42, %s3654_s29  ;;  %3408 = vrot.lane.b32.xlu0 %v3407_v63, %s3654_s29  ;;  %v1115_v63 = vsel %vm1111_vm12, %v2975_v46, %v4387_v24  ;;  %v2720_v42 = vunpack.i.l.bf16 %v5966_v18  ;;  %v3427_v48 = vpack.i.bf16 %v1129_v30, %v1128_v4  ;;  %v3055_v46 = vunpack.i.l.bf16 %v5968_v54  ;;  %v5969_v18 = vld [vmem:[#allocation21_spill] sm:$0xff]  ;;  %v4737_v1 = vpop.permute.xlu0 %3183 }
 0x4bd   : > { %v3282_v9 = vpack.i.bf16 %v1115_v63, %v1114_v10  ;;  %v2961_v4 = vunpack.i.h.bf16 %v4257_v38  ;;  %v3110_v63 = vunpack.i.l.bf16 %v4601_v49 }
 0x4be   : > { %v1031_v7 = vsel %vm1018_vm10, %v5967_v52, %v2720_v42  ;;  %v2976_v52 = vunpack.i.h.bf16 %v5963_v29 }
 0x4bf   : > { %v3442_v30 = vpack.i.bf16 %v1031_v7, %v1030_v21 }
 0x4c0   : > { %3278 = vrot.lane.b32.xlu1 %v3277_v13, %s3654_s29  ;;  %3413 = vrot.lane.b32.xlu0 %v3412_v12, %s3654_s29  ;;  %v3051_v13 = vunpack.i.h.bf16 %v4382_v28  ;;  %v3297_v12 = vpack.i.bf16 %v3000_v22, %v2900_v59  ;;  %v2931_v28 = vunpack.i.h.bf16 %v5969_v18  ;;  %v3312_v21 = vpack.i.bf16 %v3091_v27, %v2976_v52 }
 0x4c1   : > { %v1019_v27 = vsel %vm1018_vm10, %v2815_v17, %v2816_v44  ;;  %v5855_v17 = vunpack.i.h.bf16 %v4464_v11 }
 0x4c2   : > { %v1041_v10 = vsel %vm1018_vm10, %v3051_v13, %v3055_v46  ;;  %v878_v59 = vsel %vm393_vm6, %v2931_v28, %v3110_v63  ;;  %v877_v53 = vsel %vm393_vm6, %v4362_v36, %v2931_v28 }
 0x4c3   : > { %v3447_v22 = vpack.i.bf16 %v1041_v10, %v2826_v19  ;;  %v5971_v19 = vld [vmem:[#allocation20_spill] sm:$0xff] }
 0x4c4   : > { %3283 = vrot.lane.b32.xlu1 %v3282_v9, %s3654_s29  ;;  %3428 = vrot.lane.b32.xlu0 %v3427_v48, %s3654_s29  ;;  %v1032_v9 = vsel %vm1018_vm10, %v2720_v42, %v4186_v8  ;;  %v3115_v48 = vunpack.i.l.bf16 %v4627_v37  ;;  %v5970_v42 = vld [vmem:[#allocation22_spill] sm:$0xff]  ;;  %v2850_v10 = vunpack.i.l.bf16 %v5971_v19 }
 0x4c5   : > { %v3307_v26 = vpack.i.bf16 %v2961_v4, %v1032_v9  ;;  %v5853_v7 = vunpack.i.h.bf16 %v5970_v42 }
 0x4c6   : > { %v1133_v9 = vsel %vm1111_vm12, %v3115_v48, %v4387_v24 }
 0x4c7   : > { %v1132_v29 = vsel %vm1111_vm12, %v5853_v7, %v3115_v48 }
 0x4c8   : > { %3298 = vrot.lane.b32.xlu1 %v3297_v12, %s3654_s29  ;;  %3443 = vrot.lane.b32.xlu0 %v3442_v30, %s3654_s29  ;;  %v3472_v12 = vpack.i.bf16 %v3110_v63, %v878_v59  ;;  %v2851_v30 = vunpack.i.h.bf16 %v5971_v19  ;;  %v3322_v63 = vpack.i.bf16 %v1019_v27, %v3011_v62  ;;  %v3477_v59 = vpack.i.bf16 %v1133_v9, %v1132_v29  ;;  %v5985_v19 = vld [vmem:[#allocation38_spill] sm:$0xff] }
 0x4c9   : > { %v5972_v29 = vunpack.i.h.bf16 %v4276_v31 }
 0x4ca   : > { %v941_v48 = vsel %vm411_vm7, %v2850_v10, %v2851_v30 }
 0x4cb   : > { %v3487_v61 = vpack.i.bf16 %v2851_v30, %v941_v48  ;;  %v5852_v30 = vunpack.i.h.bf16 %v4286_v39 }
 0x4cc   : > { %3308 = vrot.lane.b32.xlu1 %v3307_v26, %s3654_s29  ;;  %3448 = vrot.lane.b32.xlu0 %v3447_v22, %s3654_s29  ;;  %v5856_v26 = vunpack.i.h.bf16 %v5968_v54 }
 0x4ce   : > { %v4751_v2 = vpop.permute.xlu0 %3188  ;;  %v3332_v20 = vpack.i.bf16 %v5856_v26, %v3051_v13  ;;  %v3342_v13 = vpack.i.bf16 %v5855_v17, %v5972_v29 }
 0x4d0   : > { %3313 = vrot.lane.b32.xlu1 %v3312_v21, %s3654_s29  ;;  %3473 = vrot.lane.b32.xlu0 %v3472_v12, %s3654_s29  ;;  %v3070_v21 = vunpack.i.l.bf16 %v4405_v6  ;;  %v3090_v6 = vunpack.i.l.bf16 %v4553_v14 }
 0x4d2   : > { %v4770_v22 = vpop.permute.xlu0 %3193  ;;  %v862_v12 = vsel %vm393_vm6, %v2971_v51, %v3070_v21  ;;  %v1116_v55 = vsel %vm1111_vm12, %v2976_v52, %v3090_v6  ;;  %v1117_v14 = vsel %vm1111_vm12, %v3090_v6, %v4387_v24  ;;  %v5973_v51 = vunpack.i.h.bf16 %v4240_v56 }
 0x4d3   : > { %v3492_v9 = vpack.i.bf16 %v3070_v21, %v862_v12  ;;  %v5974_v52 = vunpack.i.h.bf16 %v4222_v25  ;;  %v2731_v25 = vunpack.i.h.bf16 %v3946_v45 }
 0x4d4   : > { %3323 = vrot.lane.b32.xlu1 %v3322_v63, %s3654_s29  ;;  %3478 = vrot.lane.b32.xlu0 %v3477_v59, %s3654_s29  ;;  %v3367_v59 = vpack.i.bf16 %v5852_v30, %v5973_v51 }
 0x4d6   : > { %v4781_v44 = vpop.permute.xlu1 %3073  ;;  %v4783_v62 = vpop.permute.xlu0 %3213 }
 0x4d8   : > { %3333 = vrot.lane.b32.xlu1 %v3332_v20, %s3654_s29  ;;  %3488 = vrot.lane.b32.xlu0 %v3487_v61, %s3654_s29  ;;  %v3497_v61 = vpack.i.bf16 %v1117_v14, %v1116_v55  ;;  %v3006_v20 = vunpack.i.h.bf16 %v4292_v0  ;;  %v2770_v55 = vunpack.i.l.bf16 %v5964_v40 }
 0x4da   : > { %v4796_v27 = vpop.permute.xlu1 %3083  ;;  %v4798_v63 = vpop.permute.xlu0 %3218 }
 0x4dc   : > { %3343 = vrot.lane.b32.xlu1 %v3342_v13, %s3654_s29  ;;  %3493 = vrot.lane.b32.xlu0 %v3492_v9, %s3654_s29  ;;  %v5975_v9 = vunpack.i.l.bf16 %v4292_v0  ;;  %v1126_v0 = vsel %vm1111_vm12, %v2731_v25, %v2770_v55 }
 0x4de   : > { %v3099_v48 = vpop.permute.xlu1 %3098  ;;  %v4809_v21 = vpop.permute.xlu0 %3223  ;;  %v952_v51 = vsel %vm411_vm7, %v5975_v9, %v3006_v20 }
 0x4df   : > { %v3100_v12 = vunpack.i.l.bf16 %v3099_v48  ;;  %v3387_v14 = vpack.i.bf16 %v3006_v20, %v952_v51  ;;  %v3101_v7 = vunpack.i.h.bf16 %v3099_v48 }
 0x4e0   : > { %3368 = vrot.lane.b32.xlu1 %v3367_v59, %s3654_s29  ;;  %3498 = vrot.lane.b32.xlu0 %v3497_v61, %s3654_s29 }
 0x4e1   : > { %v872_v6 = vsel %vm393_vm6, %v5974_v52, %v3100_v12  ;;  %v5976_v52 = vld [vmem:[#allocation29_spill] sm:$0xff] }
 0x4e2   : > { %v3377_v29 = vpack.i.bf16 %v3100_v12, %v872_v6  ;;  %v3104_v56 = vpop.permute.xlu1 %3103  ;;  %v4817_v13 = vpop.permute.xlu0 %3233  ;;  %v1127_v12 = vsel %vm1111_vm12, %v2770_v55, %v4387_v24  ;;  %v2950_v6 = vunpack.i.l.bf16 %v5976_v52 }
 0x4e3   : > { %v3392_v20 = vpack.i.bf16 %v1127_v12, %v1126_v0  ;;  %v3105_v51 = vunpack.i.l.bf16 %v3104_v56  ;;  %v1024_v0 = vsel %vm1018_vm10, %v3015_v60, %v4186_v8 }
 0x4e4   : > { %3378 = vrot.lane.b32.xlu1 %v3377_v29, %s3654_s29  ;;  %v1137_v45 = vsel %vm1111_vm12, %v2950_v6, %v4387_v24 }
 0x4e5   : > { %v874_v48 = vsel %vm393_vm6, %v3101_v7, %v3105_v51 }
 0x4e6   : > { %v4824_v59 = vpop.permute.xlu1 %849  ;;  %v4826_v61 = vpop.permute.xlu0 %3238 }
 0x4e8   : > { %3388 = vrot.lane.b32.xlu1 %v3387_v14, %s3654_s29  ;;  %v5977_v14 = vunpack.i.h.bf16 %v4586_v33 }
 0x4ea   : > { %v4834_v9 = vpop.permute.xlu1 %3118  ;;  %v4836_v29 = vpop.permute.xlu0 %3253  ;;  %v3402_v23 = vpack.i.bf16 %v2731_v25, %v5977_v14  ;;  %v3517_v25 = vpack.i.bf16 %v3105_v51, %v874_v48  ;;  %v2935_v48 = vunpack.i.l.bf16 %v5970_v42 }
 0x4eb   : > { %v5857_v30 = vunpack.i.h.bf16 %v4834_v9 }
 0x4ec   : > { %3393 = vrot.lane.b32.xlu1 %v3392_v20, %s3654_s29  ;;  %v3106_v20 = vunpack.i.h.bf16 %v3104_v56 }
 0x4ed   : > { %v1136_v55 = vsel %vm1111_vm12, %v5857_v30, %v2950_v6  ;;  %v2930_v6 = vunpack.i.l.bf16 %v5969_v18 }
 0x4ee   : > { %v4847_v17 = vpop.permute.xlu1 %3123  ;;  %v4849_v26 = vpop.permute.xlu0 %3258  ;;  %v3512_v12 = vpack.i.bf16 %v1137_v45, %v1136_v55  ;;  %v5978_v45 = vunpack.i.h.bf16 %v4181_v57  ;;  %v875_v60 = vsel %vm393_vm6, %v4362_v36, %v3106_v20 }
 0x4ef   : > { %v876_v56 = vsel %vm393_vm6, %v3106_v20, %v2930_v6  ;;  %v1029_v20 = vsel %vm1018_vm10, %v2961_v4, %v3020_v32  ;;  %v5982_v4 = vld [vmem:[#allocation11_spill] sm:$0xff] }
 0x4f0   : > { %3403 = vrot.lane.b32.xlu1 %v3402_v23, %s3654_s29  ;;  %3513 = vrot.lane.b32.xlu0 %v3512_v12, %s3654_s29  ;;  %v3417_v55 = vpack.i.bf16 %v5978_v45, %v1024_v0  ;;  %v873_v23 = vsel %vm393_vm6, %v4362_v36, %v3101_v7  ;;  %v3422_v57 = vpack.i.bf16 %v2930_v6, %v876_v56  ;;  %v2841_v7 = vunpack.i.h.bf16 %v5960_v35  ;;  %v5980_v6 = vld [vmem:[#allocation24_spill] sm:$0xff] }
 0x4f1   : > { %v3522_v0 = vpack.i.bf16 %v875_v60, %v873_v23  ;;  %v2945_v38 = vunpack.i.l.bf16 %v5980_v6  ;;  %v1131_v23 = vsel %vm1111_vm12, %v2935_v48, %v4387_v24 }
 0x4f2   : > { %v4859_v14 = vpop.permute.xlu1 %1109  ;;  %v4861_v30 = vpop.permute.xlu0 %3268  ;;  %v1130_v56 = vsel %vm1111_vm12, %v2841_v7, %v2935_v48  ;;  %v5984_v48 = vunpack.i.h.bf16 %v5968_v54 }
 0x4f3   : > { %v3437_v28 = vpack.i.bf16 %v1131_v23, %v1130_v56  ;;  %v1140_v54 = vsel %vm1111_vm12, %v4644_v34, %v4859_v14 }
 0x4f4   : > { %3418 = vrot.lane.b32.xlu1 %v3417_v55, %s3654_s29  ;;  %3518 = vrot.lane.b32.xlu0 %v3517_v25, %s3654_s29  ;;  %v879_v25 = vsel %vm393_vm6, %v4362_v36, %v5860_v41  ;;  %v3432_v55 = vpack.i.bf16 %v1029_v20, %v5982_v4  ;;  %v3547_v36 = vpack.i.bf16 %v2945_v38, %v2850_v10 }
 0x4f5   : > { %v3542_v60 = vpack.i.bf16 %v879_v25, %v877_v53  ;;  %v3060_v25 = vunpack.i.l.bf16 %v5985_v19  ;;  %v5991_v19 = vld [vmem:[#allocation39_spill] sm:$0xff] }
 0x4f6   : > { %v4873_v51 = vpop.permute.xlu1 %3128  ;;  %v4875_v12 = vpop.permute.xlu0 %3273 }
 0x4f7   : > { %5979 = vst [vmem:[#allocation28_spill] sm:$0xff] %v4875_v12  ;;  %v6022_v12 = vld [vmem:[#allocation25_spill] sm:$0xff] }
 0x4f8   : > { %3423 = vrot.lane.b32.xlu1 %v3422_v57, %s3654_s29  ;;  %3523 = vrot.lane.b32.xlu0 %v3522_v0, %s3654_s29  ;;  %v1042_v57 = vsel %vm1018_vm10, %v3055_v46, %v4186_v8  ;;  %v5983_v0 = vunpack.i.l.bf16 %v4276_v31 }
 0x4fa   : > { %v4895_v45 = vpop.permute.xlu1 %3138  ;;  %v4897_v32 = vpop.permute.xlu0 %3288  ;;  %v1043_v20 = vsel %vm1018_vm10, %v5984_v48, %v5983_v0 }
 0x4fb   : > { %5981 = vst [vmem:[#allocation27_spill] sm:$0xff] %v4897_v32  ;;  %v3452_v4 = vpack.i.bf16 %v1043_v20, %v1042_v57 }
 0x4fc   : > { %3433 = vrot.lane.b32.xlu1 %v3432_v55, %s3654_s29  ;;  %3543 = vrot.lane.b32.xlu0 %v3542_v60, %s3654_s29  ;;  %v5986_v55 = vunpack.i.h.bf16 %v4282_v15  ;;  %v5987_v60 = vld [vmem:[#allocation19_spill] sm:$0xff] }
 0x4fd   : > { %v5988_v56 = vunpack.i.l.bf16 %v5987_v60 }
 0x4fe   : > { %v4909_v35 = vpop.permute.xlu1 %3143  ;;  %v4911_v18 = vpop.permute.xlu0 %3293  ;;  %v856_v46 = vsel %vm393_vm6, %v5986_v55, %v3060_v25 }
 0x4ff   : > { %v3457_v57 = vpack.i.bf16 %v3060_v25, %v856_v46 }
 0x500   : > { %3438 = vrot.lane.b32.xlu1 %v3437_v28, %s3654_s29  ;;  %3548 = vrot.lane.b32.xlu0 %v3547_v36, %s3654_s29  ;;  %v5989_v36 = vld [vmem:[#allocation23_spill] sm:$0xff] }
 0x501   : > { %v5990_v15 = vunpack.i.l.bf16 %v5989_v36 }
 0x502   : > { %v4925_v10 = vpop.permute.xlu1 %3148  ;;  %v4927_v53 = vpop.permute.xlu0 %3303 }
 0x503   : > { %v4933_v31 = vunpack.i.l.bf16 %v4925_v10 }
 0x504   : > { %3453 = vrot.lane.b32.xlu1 %v3452_v4, %s3654_s29  ;;  %1571 = vrot.lane.b32.xlu0 %v1140_v54, %s3654_s29  ;;  %v5992_v4 = vunpack.i.h.bf16 %v4464_v11  ;;  %v1048_v54 = vsel %vm1018_vm10, %v5991_v19, %v4186_v8  ;;  %v5993_v8 = vunpack.i.h.bf16 %v5964_v40  ;;  %v2946_v40 = vunpack.i.h.bf16 %v5980_v6 }
 0x505   : > { %v1576_v23 = vsel %vm1575_vm11, %v4933_v31, %v5988_v56  ;;  %v1578_v28 = vsel %vm1575_vm11, %v4933_v31, %v5990_v15  ;;  %v5859_v56 = vunpack.i.l.bf16 %v4817_v13  ;;  %v3116_v15 = vunpack.i.h.bf16 %v4627_v37 }
 0x506   : > { %v3154_v0 = vpop.permute.xlu1 %3153  ;;  %v4948_v48 = vpop.permute.xlu0 %3318  ;;  %v2412_v20 = vpack.c.bf16 %v1578_v28, %v1576_v23  ;;  %v1047_v55 = vsel %vm1018_vm10, %v5992_v4, %v5991_v19  ;;  %v3467_v36 = vpack.i.bf16 %v2841_v7, %v5993_v8  ;;  %v5997_v37 = vunpack.i.h.bf16 %v5970_v42 }
 0x507   : > { %v3320_v60 = vunpack.i.l.bf16 %v4948_v48  ;;  %v3462_v25 = vpack.i.bf16 %v1048_v54, %v1047_v55  ;;  %v3156_v42 = vunpack.i.h.bf16 %v3154_v0 }
 0x508   : > { %2413 = vmatpush1.bf16.msra.mxu0 %v2412_v20  ;;  %3458 = vrot.lane.b32.xlu1 %v3457_v57, %s3654_s29  ;;  %v3095_v57 = vunpack.i.l.bf16 %v4586_v33  ;;  %v5858_v20 = vunpack.i.l.bf16 %v4861_v30  ;;  %v3482_v7 = vpack.i.bf16 %v3116_v15, %v5997_v37  ;;  %v1145_v33 = vld [vmem:[%s5781_s3 + $0x18] sm:$0xff] }
 0x509   : > { %1569 = vrot.lane.b32.xlu0 %v4644_v34, %s3654_s29  ;;  %v4969_v23 = vsel %vm1575_vm11, %v3320_v60, %v5859_v56  ;;  %v6000_v60 = vunpack.i.h.bf16 %v4286_v39  ;;  %2015 = vmatprep.mubr.f32.mxu1 %v1145_v33  ;;  %v3296_v39 = vunpack.i.h.bf16 %v4911_v18 }
 0x50a   : > { %v4962_v46 = vpop.permute.xlu1 %3163  ;;  %v4964_v11 = vpop.permute.xlu0 %3328  ;;  %v1123_v8 = vsel %vm1111_vm12, %v3095_v57, %v4387_v24 }
 0x50c   : > { %3463 = vrot.lane.b32.xlu1 %v3462_v25, %s3654_s29  ;;  %v1122_v25 = vsel %vm1111_vm12, %v6000_v60, %v3095_v57  ;;  %v3295_v60 = vunpack.i.l.bf16 %v4911_v18  ;;  %v6002_v18 = vld [vmem:[#allocation16_spill] sm:$0xff] }
 0x50d   : > { %v3502_v56 = vpack.i.bf16 %v1123_v8, %v1122_v25 }
 0x50e   : > { %v4975_v28 = vpop.permute.xlu1 %3173  ;;  %v4977_v34 = vpop.permute.xlu0 %3338 }
 0x50f   : > { %5994 = vst [vmem:[#allocation18_spill] sm:$0xff] %v4975_v28  ;;  %5995 = vst [vmem:[#allocation10_spill] sm:$0xff] %v4977_v34  ;;  %v3340_v19 = vunpack.i.l.bf16 %v4977_v34 }
 0x510   : > { %3468 = vrot.lane.b32.xlu1 %v3467_v36, %s3654_s29  ;;  %v3155_v36 = vunpack.i.l.bf16 %v3154_v0 }
 0x511   : > { %v4986_v4 = vsel %vm1575_vm11, %v3340_v19, %v5858_v20  ;;  %v942_v19 = vsel %vm411_vm7, %v2945_v38, %v2946_v40 }
 0x512   : > { %5996 = vst [vmem:[#allocation30_spill] sm:$0xff] %v4986_v4  ;;  %v4991_v55 = vpop.permute.xlu1 %3178  ;;  %v4993_v54 = vpop.permute.xlu0 %3348  ;;  %v1643_v0 = vsel %vm1575_vm11, %v3155_v36, %v3156_v42  ;;  %v1642_v38 = vsel %vm1575_vm11, %v3296_v39, %v3155_v36 }
 0x513   : > { %5998 = vst [vmem:[#allocation14_spill] sm:$0xff] %v4991_v55  ;;  %5999 = vst [vmem:[#allocation32_spill] sm:$0xff] %v4993_v54  ;;  %v5862_v54 = vunpack.i.h.bf16 %v6002_v18  ;;  %v3306_v55 = vunpack.i.h.bf16 %v4927_v53 }
 0x514   : > { %3483 = vrot.lane.b32.xlu1 %v3482_v7, %s3654_s29  ;;  %v3507_v7 = vpack.i.bf16 %v2946_v40, %v942_v19 }
 0x515   : > { %v5032_v40 = vsel %vm1575_vm11, %v4933_v31, %v5862_v54 }
 0x516   : > { %v5007_v37 = vpop.permute.xlu1 %3198  ;;  %v3354_v20 = vpop.permute.xlu0 %3353  ;;  %6004 = vst [vmem:[#allocation37_spill] sm:$0xff] %v5032_v40 }
 0x517   : > { %v3356_v41 = vunpack.i.h.bf16 %v3354_v20  ;;  %v3355_v47 = vunpack.i.l.bf16 %v3354_v20  ;;  %v3120_v20 = vunpack.i.l.bf16 %v4834_v9 }
 0x518   : > { %3503 = vrot.lane.b32.xlu1 %v3502_v56, %s3654_s29  ;;  %v6003_v56 = vunpack.i.h.bf16 %v4601_v49 }
 0x519   : > { %v1641_v57 = vsel %vm1575_vm11, %v3355_v47, %v3356_v41  ;;  %v1640_v6 = vsel %vm1575_vm11, %v3295_v60, %v3355_v47  ;;  %v2951_v60 = vunpack.i.h.bf16 %v5976_v52  ;;  %v1143_v52 = vld [vmem:[%s5781_s3 + $0x8] sm:$0xff] }
 0x51a   : > { %v5016_v33 = vpop.permute.xlu1 %3203  ;;  %v5018_v25 = vpop.permute.xlu0 %3358  ;;  %v2474_v8 = vpack.c.bf16 %v1643_v0, %v1641_v57  ;;  %v2476_v4 = vpack.c.bf16 %v1642_v38, %v1640_v6  ;;  %v880_v41 = vsel %vm393_vm6, %v6003_v56, %v4824_v59  ;;  %v1134_v57 = vsel %vm1111_vm12, %v3116_v15, %v3120_v20  ;;  %1944 = vmatprep.mubr.f32.mxu0 %v1143_v52 }
 0x51b   : > { %6001 = vst [vmem:[#allocation13_spill] sm:$0xff] %v5016_v33  ;;  %v5863_v47 = vunpack.i.h.bf16 %v5016_v33  ;;  %v3527_v42 = vpack.i.bf16 %v4824_v59, %v880_v41  ;;  %v1135_v0 = vsel %vm1111_vm12, %v3120_v20, %v4387_v24  ;;  %v5866_v59 = vunpack.i.l.bf16 %v5018_v25 }
 0x51c   : > { %3508 = vrot.lane.b32.xlu1 %v3507_v7, %s3654_s29  ;;  %2475 = vmatprep.subr.bf16.mxu1 %v2474_v8  ;;  %v3532_v7 = vpack.i.bf16 %v1135_v0, %v1134_v57  ;;  %v6008_v8 = vld [vmem:[#allocation26_spill] sm:$0xff] }
 0x51d   : > { %v5038_v49 = vsel %vm1575_vm11, %v4933_v31, %v5863_v47  ;;  %2477 = vmatpush1.bf16.msra.mxu1 %v2476_v4  ;;  %v3361_v4 = vunpack.i.h.bf16 %v5018_v25  ;;  %v1138_v15 = vsel %vm1111_vm12, %v2951_v60, %v6008_v8  ;;  %v1139_v20 = vsel %vm1111_vm12, %v6008_v8, %v4387_v24  ;;  %v6010_v8 = vld [vmem:[#allocation33_spill] sm:$0xff] }
 0x51e   : > { %6005 = vst [vmem:[#allocation21_spill] sm:$0xff] %v5038_v49  ;;  %v5043_v19 = vpop.permute.xlu1 %3208  ;;  %v5045_v39 = vpop.permute.xlu0 %3363  ;;  %v3537_v54 = vpack.i.bf16 %v1139_v20, %v1138_v15  ;;  %v2991_v47 = vunpack.i.h.bf16 %v6010_v8  ;;  %v3261_v15 = vunpack.i.h.bf16 %v4849_v26  ;;  %v3260_v49 = vunpack.i.l.bf16 %v4849_v26 }
 0x51f   : > { %6006 = vst [vmem:[#allocation22_spill] sm:$0xff] %v5045_v39  ;;  %v1647_v57 = vsel %vm1575_vm11, %v5866_v59, %v3361_v4  ;;  %v2990_v39 = vunpack.i.l.bf16 %v6010_v8  ;;  %v6011_v4 = vunpack.i.h.bf16 %v4834_v9  ;;  %v3126_v9 = vunpack.i.h.bf16 %v4847_v17 }
 0x520   : > { %3528 = vrot.lane.b32.xlu1 %v3527_v42, %s3654_s29 }
 0x521   : > { %v3552_v59 = vpack.i.bf16 %v2951_v60, %v6011_v4  ;;  %v3176_v60 = vunpack.i.h.bf16 %v4975_v28  ;;  %v6012_v4 = vunpack.i.h.bf16 %v4716_v43 }
 0x522   : > { %v5054_v6 = vpop.permute.xlu1 %3228  ;;  %v5056_v38 = vpop.permute.xlu0 %3373 }
 0x523   : > { %6007 = vst [vmem:[#allocation20_spill] sm:$0xff] %v5056_v38  ;;  %v3231_v56 = vunpack.i.h.bf16 %v5054_v6  ;;  %v5865_v41 = vunpack.i.l.bf16 %v5054_v6 }
 0x524   : > { %3533 = vrot.lane.b32.xlu1 %v3532_v7, %s3654_s29  ;;  %v3256_v7 = vunpack.i.h.bf16 %v4836_v29 }
 0x525   : > { %v1645_v42 = vsel %vm1575_vm11, %v5865_v41, %v3231_v56  ;;  %v3216_v41 = vunpack.i.h.bf16 %v4783_v62  ;;  %v3220_v56 = vunpack.i.l.bf16 %v4798_v63 }
 0x526   : > { %v5075_v0 = vpop.permute.xlu1 %3243  ;;  %v5077_v36 = vpop.permute.xlu0 %3383  ;;  %v2478_v52 = vpack.c.bf16 %v1647_v57, %v1645_v42  ;;  %v5104_v34 = vsel %vm1575_vm11, %v3256_v7, %v6012_v4  ;;  %v1141_v7 = vsel %vm1111_vm12, %v4859_v14, %v4387_v24  ;;  %v1582_v14 = vsel %vm1575_vm11, %v4933_v31, %v3126_v9 }
 0x527   : > { %6009 = vst [vmem:[#allocation29_spill] sm:$0xff] %v5077_v36  ;;  %v3125_v36 = vunpack.i.l.bf16 %v4847_v17  ;;  %6013 = vst [vmem:[#allocation24_spill] sm:$0xff] %v5104_v34  ;;  %v3245_v57 = vunpack.i.l.bf16 %v5075_v0  ;;  %v1580_v24 = vsel %vm1575_vm11, %v4933_v31, %v3216_v41 }
 0x528   : > { %3538 = vrot.lane.b32.xlu1 %v3537_v54, %s3654_s29  ;;  %2479 = vmatprep.subr.bf16.mxu1 %v2478_v52  ;;  %v3205_v54 = vunpack.i.l.bf16 %v5016_v33  ;;  %v6014_v52 = vunpack.i.l.bf16 %v5056_v38 }
 0x529   : > { %v1581_v26 = vsel %vm1575_vm11, %v3216_v41, %v3125_v36  ;;  %v5138_v36 = vsel %vm1575_vm11, %v3176_v60, %v3260_v49  ;;  %v1587_v4 = vsel %vm1575_vm11, %v2991_v47, %v3245_v57  ;;  %v3170_v41 = vunpack.i.l.bf16 %v4716_v43  ;;  %v6021_v57 = vld [vmem:[#allocation12_spill] sm:$0xff] }
 0x52a   : > { %v5089_v20 = vpop.permute.xlu1 %3248  ;;  %v5091_v42 = vpop.permute.xlu0 %3398 }
 0x52b   : > { %v3400_v8 = vunpack.i.l.bf16 %v5091_v42  ;;  %v6016_v17 = vunpack.i.h.bf16 %v5089_v20 }
 0x52c   : > { %3553 = vrot.lane.b32.xlu1 %v3552_v59, %s3654_s29 }
 0x52d   : > { %v5111_v40 = vsel %vm1575_vm11, %v3400_v8, %v6014_v52  ;;  %v5116_v32 = vsel %vm1575_vm11, %v3205_v54, %v6016_v17  ;;  %v5127_v52 = vsel %vm1575_vm11, %v3220_v56, %v3261_v15  ;;  %v3141_v8 = vunpack.i.h.bf16 %v4895_v45  ;;  %v1147_v56 = vld [vmem:[%s5782_s4] sm:$0xff] }
 0x52e   : > { %6015 = vst [vmem:[#allocation11_spill] sm:$0xff] %v5111_v40  ;;  %6017 = vst [vmem:[#allocation38_spill] sm:$0xff] %v5116_v32  ;;  %v3264_v59 = vpop.permute.xlu1 %3263  ;;  %v5118_v33 = vpop.permute.xlu0 %3408 }
 0x52f   : > { %6018 = vst [vmem:[#allocation19_spill] sm:$0xff] %v5127_v52  ;;  %v3266_v38 = vunpack.i.h.bf16 %v3264_v59  ;;  %v3265_v54 = vunpack.i.l.bf16 %v3264_v59  ;;  %v3410_v17 = vunpack.i.l.bf16 %v5118_v33 }
 0x530   : > { %1573 = vrot.lane.b32.xlu1 %v1141_v7, %s3654_s29 }
 0x531   : > { %v1583_v59 = vsel %vm1575_vm11, %v3126_v9, %v3410_v17  ;;  %v5146_v34 = vsel %vm1575_vm11, %v3261_v15, %v3265_v54  ;;  %v5149_v7 = vsel %vm1575_vm11, %v3266_v38, %v3176_v60  ;;  %v2735_v17 = vunpack.i.l.bf16 %v6021_v57 }
 0x532   : > { %6019 = vst [vmem:[#allocation23_spill] sm:$0xff] %v5149_v7  ;;  %v5152_v32 = vpop.permute.xlu1 %3278  ;;  %v5154_v49 = vpop.permute.xlu0 %3413  ;;  %v2414_v28 = vpack.c.bf16 %v1583_v59, %v1581_v26  ;;  %v2416_v15 = vpack.c.bf16 %v1582_v14, %v1580_v24  ;;  %v1585_v54 = vsel %vm1575_vm11, %v3141_v8, %v2990_v39  ;;  %v2736_v38 = vunpack.i.h.bf16 %v6021_v57  ;;  %v6029_v7 = vld [vmem:[#allocation31_spill] sm:$0xff] }
 0x533   : > { %6020 = vst [vmem:[#allocation39_spill] sm:$0xff] %v5152_v32  ;;  %v2418_v60 = vpack.c.bf16 %v1587_v4, %v1585_v54  ;;  %v1584_v32 = vsel %vm1575_vm11, %v4933_v31, %v3141_v8  ;;  %v1586_v26 = vsel %vm1575_vm11, %v4933_v31, %v2991_v47  ;;  %v3210_v59 = vunpack.i.l.bf16 %v5043_v19 }
 0x534   : > { %1150 = vperm.xlu1 %2685, %v1147_v56   ;;  %2415 = vmatprep.subr.bf16.mxu0 %v2414_v28  ;;  %v1589_v9 = vsel %vm1575_vm11, %v3306_v55, %v2735_v17  ;;  %v2896_v24 = vunpack.i.h.bf16 %v6022_v12  ;;  %v1591_v28 = vsel %vm1575_vm11, %v2736_v38, %v3170_v41  ;;  %v5881_v4 = vunpack.i.l.bf16 %v4770_v22 }
 0x535   : > { %2417 = vmatpush1.bf16.msra.mxu0 %v2416_v15  ;;  %v3211_v8 = vunpack.i.h.bf16 %v5043_v19  ;;  %v2420_v56 = vpack.c.bf16 %v1586_v26, %v1584_v32  ;;  %v2895_v57 = vunpack.i.l.bf16 %v6022_v12  ;;  %v1590_v17 = vsel %vm1575_vm11, %v4933_v31, %v2736_v38  ;;  %v6027_v32 = vld [vmem:[#allocation15_spill] sm:$0xff] }
 0x536   : > { %v5170_v14 = vpop.permute.xlu1 %3283  ;;  %v5172_v39 = vpop.permute.xlu0 %3428  ;;  %2419 = vmatprep.subr.bf16.mxu0 %v2418_v60  ;;  %v1588_v15 = vsel %vm1575_vm11, %v4933_v31, %v3306_v55  ;;  %v2422_v54 = vpack.c.bf16 %v1591_v28, %v1589_v9  ;;  %v5186_v41 = vsel %vm1575_vm11, %v3210_v59, %v5881_v4  ;;  %v2796_v12 = vunpack.i.h.bf16 %v6027_v32 }
 0x537   : > { %6023 = vst [vmem:[#allocation16_spill] sm:$0xff] %v5170_v14  ;;  %6024 = vst [vmem:[#allocation26_spill] sm:$0xff] %v5172_v39  ;;  %v5882_v47 = vunpack.i.l.bf16 %v5170_v14  ;;  %v2795_v60 = vunpack.i.l.bf16 %v6027_v32  ;;  %v3161_v38 = vunpack.i.h.bf16 %v4695_v50  ;;  %v3160_v59 = vunpack.i.l.bf16 %v4695_v50 }
 0x538   : > { %6025 = vst [vmem:[#allocation33_spill] sm:$0xff] %v5186_v41  ;;  %v2424_v28 = vpack.c.bf16 %v1590_v17, %v1588_v15  ;;  %v1651_v32 = vsel %vm1575_vm11, %v2895_v57, %v2896_v24  ;;  %v2986_v52 = vunpack.i.h.bf16 %v6029_v7  ;;  %v2985_v14 = vunpack.i.l.bf16 %v6029_v7 }
 0x539   : > { %2421 = vmatpush1.bf16.msra.mxu0 %v2420_v56  ;;  %v5191_v19 = vsel %vm1575_vm11, %v3211_v8, %v5882_v47  ;;  %v6028_v8 = vld [vmem:[#allocation17_spill] sm:$0xff]  ;;  %v6031_v50 = vunpack.i.l.bf16 %v5018_v25  ;;  %v1649_v24 = vsel %vm1575_vm11, %v2795_v60, %v2796_v12  ;;  %v3146_v7 = vunpack.i.h.bf16 %v4909_v35 }
 0x53a   : > { %6026 = vst [vmem:[#allocation12_spill] sm:$0xff] %v5191_v19  ;;  %v3299_v26 = vpop.permute.xlu1 %3298  ;;  %v5196_v55 = vpop.permute.xlu0 %3443  ;;  %2423 = vmatprep.subr.bf16.mxu0 %v2422_v54  ;;  %v2861_v47 = vunpack.i.h.bf16 %v6028_v8  ;;  %v2860_v39 = vunpack.i.l.bf16 %v6028_v8  ;;  %v6030_v54 = vunpack.i.l.bf16 %v5054_v6  ;;  %v2482_v6 = vpack.c.bf16 %v1651_v32, %v1649_v24 }
 0x53b   : > { %v3301_v56 = vunpack.i.h.bf16 %v3299_v26  ;;  %v3300_v4 = vunpack.i.l.bf16 %v3299_v26 }
 0x53c   : > { %v1650_v41 = vsel %vm1575_vm11, %v2861_v47, %v2895_v57  ;;  %v1648_v25 = vsel %vm1575_vm11, %v2860_v39, %v2795_v60  ;;  %v5889_v47 = vunpack.i.l.bf16 %v5007_v37 }
 0x53d   : > { %2425 = vmatpush1.bf16.msra.mxu0 %v2424_v28  ;;  %v1644_v9 = vsel %vm1575_vm11, %v3300_v4, %v6030_v54  ;;  %v1646_v17 = vsel %vm1575_vm11, %v3301_v56, %v6031_v50  ;;  %v3145_v28 = vunpack.i.l.bf16 %v4909_v35  ;;  %v1655_v4 = vsel %vm1575_vm11, %v3160_v59, %v3161_v38 }
 0x53e   : > { %v5212_v15 = vpop.permute.xlu1 %3308  ;;  %v5214_v26 = vpop.permute.xlu0 %3448  ;;  %v2480_v8 = vpack.c.bf16 %v1646_v17, %v1644_v9  ;;  %v1653_v56 = vsel %vm1575_vm11, %v2985_v14, %v2986_v52  ;;  %v2484_v9 = vpack.c.bf16 %v1650_v41, %v1648_v25  ;;  %v1654_v35 = vsel %vm1575_vm11, %v3146_v7, %v3160_v59 }
 0x53f   : > { %v2486_v12 = vpack.c.bf16 %v1655_v4, %v1653_v56  ;;  %v1652_v17 = vsel %vm1575_vm11, %v3145_v28, %v2985_v14  ;;  %v3031_v4 = vunpack.i.h.bf16 %v4438_v3  ;;  %v3030_v56 = vunpack.i.l.bf16 %v4438_v3 }
 0x540   : > { %2481 = vmatpush1.bf16.msra.mxu1 %v2480_v8  ;;  %v2488_v41 = vpack.c.bf16 %v1654_v35, %v1652_v17  ;;  %v3040_v8 = vunpack.i.l.bf16 %v4447_v5  ;;  %v6041_v35 = vld [vmem:[#allocation34_spill] sm:$0xff]  ;;  %v3166_v17 = vunpack.i.h.bf16 %v4962_v46  ;;  %v3240_v25 = vunpack.i.l.bf16 %v4826_v61 }
 0x541   : > { %2483 = vmatprep.subr.bf16.mxu1 %v2482_v6 }
 0x542   : > { %v3314_v54 = vpop.permute.xlu1 %3313  ;;  %v5223_v50 = vpop.permute.xlu0 %3473 }
 0x543   : > { %6032 = vst [vmem:[#allocation25_spill] sm:$0xff] %v5223_v50  ;;  %v3316_v57 = vunpack.i.h.bf16 %v3314_v54  ;;  %v3315_v28 = vunpack.i.l.bf16 %v3314_v54 }
 0x544   : > { %2485 = vmatpush1.bf16.msra.mxu1 %v2484_v9  ;;  %v6039_v9 = vld [vmem:[#allocation35_spill] sm:$0xff] }
 0x545   : > { %2487 = vmatprep.subr.bf16.mxu1 %v2486_v12  ;;  %v5231_v39 = vsel %vm1575_vm11, %v3316_v57, %v5889_v47  ;;  %v3035_v12 = vunpack.i.l.bf16 %v6039_v9  ;;  %v5265_v47 = vsel %vm1575_vm11, %v3040_v8, %v3031_v4  ;;  %v3165_v8 = vunpack.i.l.bf16 %v4962_v46 }
 0x546   : > { %6033 = vst [vmem:[#allocation15_spill] sm:$0xff] %v5231_v39  ;;  %v5233_v52 = vpop.permute.xlu1 %3323  ;;  %v5235_v60 = vpop.permute.xlu0 %3478  ;;  %v3036_v50 = vunpack.i.h.bf16 %v6039_v9 }
 0x547   : > { %6034 = vst [vmem:[#allocation17_spill] sm:$0xff] %v5235_v60  ;;  %v3401_v60 = vunpack.i.h.bf16 %v5091_v42  ;;  %v5285_v42 = vsel %vm1575_vm11, %v3031_v4, %v3035_v12  ;;  %v1661_v12 = vsel %vm1575_vm11, %v3165_v8, %v3166_v17 }
 0x548   : > { %2489 = vmatpush1.bf16.msra.mxu1 %v2488_v41  ;;  %v3236_v41 = vunpack.i.h.bf16 %v4817_v13 }
 0x54a   : > { %v5237_v38 = vpop.permute.xlu1 %3333  ;;  %v5239_v32 = vpop.permute.xlu0 %3488 }
 0x54b   : > { %6035 = vst [vmem:[#allocation31_spill] sm:$0xff] %v5239_v32  ;;  %v6043_v32 = vld [vmem:[#allocation36_spill] sm:$0xff] }
 0x54c   : > { %v3045_v19 = vunpack.i.l.bf16 %v6043_v32 }
 0x54e   : > { %v5241_v14 = vpop.permute.xlu1 %3343  ;;  %v5243_v59 = vpop.permute.xlu0 %3493 }
 0x54f   : > { %6036 = vst [vmem:[#allocation40_spill] sm:$0xff] %v5243_v59  ;;  %v6045_v59 = vunpack.i.h.bf16 %v4447_v5 }
 0x551   : > { %v5304_v46 = vsel %vm1575_vm11, %v6045_v59, %v3045_v19  ;;  %v3330_v19 = vunpack.i.l.bf16 %v4964_v11  ;;  %v3411_v59 = vunpack.i.h.bf16 %v5118_v33 }
 0x552   : > { %v5246_v24 = vpop.permute.xlu1 %3368  ;;  %v5248_v7 = vpop.permute.xlu0 %3498 }
 0x553   : > { %6037 = vst [vmem:[#allocation41_spill] sm:$0xff] %v5246_v24  ;;  %6038 = vst [vmem:[#allocation42_spill] sm:$0xff] %v5248_v7  ;;  %v5893_v6 = vunpack.i.l.bf16 %v5248_v7  ;;  %v3241_v24 = vunpack.i.h.bf16 %v4826_v61  ;;  %v3326_v61 = vunpack.i.h.bf16 %v5233_v52 }
 0x555   : > { %v5258_v57 = vsel %vm1575_vm11, %v3315_v28, %v5893_v6  ;;  %v3136_v6 = vunpack.i.h.bf16 %v4667_v58  ;;  %v1667_v33 = vsel %vm1575_vm11, %v3326_v61, %v3330_v19  ;;  %v3250_v19 = vunpack.i.l.bf16 %v5089_v20 }
 0x556   : > { %6040 = vst [vmem:[#allocation35_spill] sm:$0xff] %v5258_v57  ;;  %v5262_v54 = vpop.permute.xlu1 %3378  ;;  %v3081_v57 = vunpack.i.h.bf16 %v4530_v16 }
 0x557   : > { %6042 = vst [vmem:[#allocation34_spill] sm:$0xff] %v5262_v54  ;;  %v5902_v28 = vunpack.i.l.bf16 %v5262_v54  ;;  %v3321_v54 = vunpack.i.h.bf16 %v4948_v48  ;;  %v5299_v39 = vsel %vm1575_vm11, %v3136_v6, %v3030_v56  ;;  %v3325_v48 = vunpack.i.l.bf16 %v5233_v52 }
 0x558   : > { %v5315_v40 = vsel %vm1575_vm11, %v3036_v50, %v3136_v6  ;;  %v1663_v52 = vsel %vm1575_vm11, %v3240_v25, %v3241_v24  ;;  %v3225_v24 = vunpack.i.l.bf16 %v4809_v21 }
 0x559   : > { %v5282_v3 = vsel %vm1575_vm11, %v3401_v60, %v5902_v28  ;;  %v6044_v28 = vunpack.i.l.bf16 %v4817_v13  ;;  %v1665_v6 = vsel %vm1575_vm11, %v3411_v59, %v3325_v48  ;;  %v3190_v48 = vunpack.i.l.bf16 %v4751_v2 }
 0x55a   : > { %v3389_v9 = vpop.permute.xlu1 %3388 }
 0x55b   : > { %v3391_v7 = vunpack.i.h.bf16 %v3389_v9  ;;  %v3390_v60 = vunpack.i.l.bf16 %v3389_v9  ;;  %v1657_v4 = vsel %vm1575_vm11, %v6044_v28, %v3236_v41  ;;  %v3151_v41 = vunpack.i.h.bf16 %v4925_v10 }
 0x55c   : > { %v3135_v10 = vunpack.i.l.bf16 %v4667_v58  ;;  %v6057_v58 = vunpack.i.l.bf16 %v6041_v35 }
 0x55d   : > { %v1659_v9 = vsel %vm1575_vm11, %v3390_v60, %v3391_v7  ;;  %v1658_v13 = vsel %vm1575_vm11, %v3321_v54, %v3390_v60  ;;  %v6046_v7 = vunpack.i.l.bf16 %v4530_v16  ;;  %v3215_v60 = vunpack.i.l.bf16 %v4783_v62 }
 0x55e   : > { %v5311_v28 = vpop.permute.xlu1 %3393  ;;  %v2490_v17 = vpack.c.bf16 %v1659_v9, %v1657_v4  ;;  %v2492_v56 = vpack.c.bf16 %v1658_v13, %v4969_v23  ;;  %v2494_v23 = vpack.c.bf16 %v1663_v52, %v1661_v12  ;;  %v1660_v50 = vsel %vm1575_vm11, %v3151_v41, %v3165_v8 }
 0x55f   : > { %v5323_v54 = vsel %vm1575_vm11, %v6046_v7, %v3081_v57  ;;  %v3191_v9 = vunpack.i.h.bf16 %v4751_v2  ;;  %v3140_v62 = vunpack.i.l.bf16 %v4895_v45  ;;  %v1662_v8 = vsel %vm1575_vm11, %v3215_v60, %v3240_v25 }
 0x560   : > { %2491 = vmatprep.subr.bf16.mxu1 %v2490_v17  ;;  %v3086_v13 = vunpack.i.h.bf16 %v4796_v27  ;;  %v5906_v41 = vunpack.i.l.bf16 %v4796_v27  ;;  %v2496_v17 = vpack.c.bf16 %v1662_v8, %v1660_v50  ;;  %v2498_v52 = vpack.c.bf16 %v1667_v33, %v1665_v6 }
 0x561   : > { %2493 = vmatpush1.bf16.msra.mxu1 %v2492_v56  ;;  %v3331_v56 = vunpack.i.h.bf16 %v4964_v11  ;;  %v1666_v7 = vsel %vm1575_vm11, %v3140_v62, %v3326_v61  ;;  %v3196_v45 = vunpack.i.h.bf16 %v4770_v22  ;;  %v3416_v25 = vunpack.i.h.bf16 %v5154_v49 }
 0x562   : > { %v5337_v12 = vpop.permute.xlu1 %3403  ;;  %2495 = vmatprep.subr.bf16.mxu1 %v2494_v23  ;;  %v3076_v23 = vunpack.i.h.bf16 %v4781_v44  ;;  %v3415_v2 = vunpack.i.l.bf16 %v5154_v49  ;;  %v5905_v60 = vunpack.i.l.bf16 %v4781_v44  ;;  %v3255_v50 = vunpack.i.l.bf16 %v4836_v29 }
 0x563   : > { %v3305_v11 = vunpack.i.l.bf16 %v4927_v53  ;;  %v1664_v6 = vsel %vm1575_vm11, %v3331_v56, %v3411_v59  ;;  %v3246_v61 = vunpack.i.h.bf16 %v5075_v0  ;;  %v6047_v49 = vunpack.i.h.bf16 %v4716_v43 }
 0x564   : > { %v2500_v57 = vpack.c.bf16 %v1666_v7, %v1664_v6  ;;  %v6048_v4 = vunpack.i.h.bf16 %v5089_v20  ;;  %v5365_v53 = vsel %vm1575_vm11, %v5906_v41, %v3086_v13  ;;  %v3130_v20 = vunpack.i.l.bf16 %v4873_v51 }
 0x565   : > { %2497 = vmatpush1.bf16.msra.mxu1 %v2496_v17  ;;  %v1673_v17 = vsel %vm1575_vm11, %v6047_v49, %v3250_v19  ;;  %v1669_v0 = vsel %vm1575_vm11, %v3246_v61, %v3415_v2  ;;  %v1670_v43 = vsel %vm1575_vm11, %v3305_v11, %v3416_v25  ;;  %v3131_v19 = vunpack.i.h.bf16 %v4873_v51 }
 0x566   : > { %v3419_v8 = vpop.permute.xlu1 %3418  ;;  %2499 = vmatprep.subr.bf16.mxu1 %v2498_v52  ;;  %v1675_v29 = vsel %vm1575_vm11, %v6048_v4, %v3255_v50  ;;  %v6049_v2 = vunpack.i.l.bf16 %v4770_v22  ;;  %v3446_v11 = vunpack.i.h.bf16 %v5196_v55  ;;  %v5395_v22 = vsel %vm1575_vm11, %v3225_v24, %v3190_v48 }
 0x567   : > { %v3421_v33 = vunpack.i.h.bf16 %v3419_v8  ;;  %v3420_v62 = vunpack.i.l.bf16 %v3419_v8  ;;  %v2506_v8 = vpack.c.bf16 %v1675_v29, %v1673_v17  ;;  %v6051_v17 = vunpack.i.h.bf16 %v6041_v35 }
 0x568   : > { %v5382_v50 = vsel %vm1575_vm11, %v6049_v2, %v3196_v45  ;;  %v3271_v45 = vunpack.i.h.bf16 %v4861_v30  ;;  %v1599_v24 = vsel %vm1575_vm11, %v3131_v19, %v3135_v10  ;;  %v1678_v10 = vsel %vm1575_vm11, %v6057_v58, %v3446_v11 }
 0x569   : > { %2501 = vmatpush1.bf16.msra.mxu1 %v2500_v57  ;;  %v1671_v59 = vsel %vm1575_vm11, %v3416_v25, %v3420_v62  ;;  %v1668_v56 = vsel %vm1575_vm11, %v3421_v33, %v3246_v61  ;;  %v5377_v57 = vsel %vm1575_vm11, %v3190_v48, %v3191_v9  ;;  %v5387_v25 = vsel %vm1575_vm11, %v5905_v60, %v3076_v23  ;;  %v6050_v23 = vld [vmem:[#allocation28_spill] sm:$0xff]  ;;  %v6055_v9 = vld [vmem:[#allocation13_spill] sm:$0xff] }
 0x56a   : > { %v5373_v52 = vpop.permute.xlu1 %3423  ;;  %v2502_v4 = vpack.c.bf16 %v1671_v59, %v1669_v0  ;;  %v2504_v7 = vpack.c.bf16 %v1670_v43, %v1668_v56  ;;  %v3310_v61 = vunpack.i.l.bf16 %v5212_v15  ;;  %v3276_v33 = vunpack.i.h.bf16 %v6050_v23  ;;  %v6052_v43 = vld [vmem:[#allocation18_spill] sm:$0xff] }
 0x56b   : > { %v3275_v62 = vunpack.i.l.bf16 %v6050_v23  ;;  %v1597_v29 = vsel %vm1575_vm11, %v6051_v17, %v3130_v20  ;;  %v3445_v48 = vunpack.i.l.bf16 %v5196_v55  ;;  %v3311_v0 = vunpack.i.h.bf16 %v5212_v15  ;;  %v6058_v17 = vld [vmem:[#allocation38_spill] sm:$0xff]  ;;  %v6059_v55 = vld [vmem:[#allocation24_spill] sm:$0xff] }
 0x56c   : > { %2503 = vmatprep.subr.bf16.mxu1 %v2502_v4  ;;  %v3175_v4 = vunpack.i.l.bf16 %v6052_v43  ;;  %v6056_v6 = vunpack.i.h.bf16 %v6055_v9  ;;  %v6060_v60 = vpack.c.bf16 %v6058_v17, %v6059_v55  ;;  %v6061_v15 = vunpack.i.h.bf16 %v6002_v18  ;;  %v6068_v55 = vld [vmem:[#allocation37_spill] sm:$0xff] }
 0x56d   : > { %2505 = vmatpush1.bf16.msra.mxu1 %v2504_v7  ;;  %v6053_v7 = vld [vmem:[#allocation14_spill] sm:$0xff]  ;;  %v1679_v41 = vsel %vm1575_vm11, %v3446_v11, %v3310_v61  ;;  %v6062_v58 = vunpack.i.l.bf16 %v4861_v30  ;;  %v1598_v11 = vsel %vm1575_vm11, %v4933_v31, %v3131_v19  ;;  %v6064_v61 = vunpack.i.h.bf16 %v4447_v5 }
 0x56e   : > { %v3434_v49 = vpop.permute.xlu1 %3433  ;;  %2507 = vmatprep.subr.bf16.mxu1 %v2506_v8  ;;  %v3181_v2 = vunpack.i.h.bf16 %v6053_v7  ;;  %v6054_v8 = vunpack.i.l.bf16 %v6002_v18  ;;  %v6063_v18 = vunpack.i.h.bf16 %v6041_v35  ;;  %v3180_v35 = vunpack.i.l.bf16 %v6053_v7 }
 0x56f   : > { %v3436_v59 = vunpack.i.h.bf16 %v3434_v49  ;;  %v3435_v56 = vunpack.i.l.bf16 %v3434_v49  ;;  %v5433_v17 = vsel %vm1575_vm11, %v6062_v58, %v3271_v45  ;;  %v6066_v45 = vld [vmem:[#allocation27_spill] sm:$0xff]  ;;  %v5454_v19 = vsel %vm1575_vm11, %v3275_v62, %v3276_v33  ;;  %v6072_v33 = vld [vmem:[#allocation10_spill] sm:$0xff] }
 0x570   : > { %v1593_v20 = vsel %vm1575_vm11, %v6056_v6, %v6054_v8  ;;  %v3290_v5 = vunpack.i.l.bf16 %v6066_v45  ;;  %v6074_v58 = vunpack.i.h.bf16 %v4798_v63  ;;  %v6080_v63 = vld [vmem:[#allocation39_spill] sm:$0xff]  ;;  %v6093_v23 = vunpack.i.l.bf16 %v4781_v44 }
 0x571   : > { %2509 = vmatpush1.bf16.msra.mxu1 %v6060_v60  ;;  %v1595_v49 = vsel %vm1575_vm11, %v6061_v15, %v3435_v56  ;;  %v1677_v43 = vsel %vm1575_vm11, %v3436_v59, %v3445_v48  ;;  %v1676_v9 = vsel %vm1575_vm11, %v3311_v0, %v3436_v59  ;;  %v1596_v60 = vsel %vm1575_vm11, %v4933_v31, %v6063_v18  ;;  %v6069_v15 = vld [vmem:[#allocation21_spill] sm:$0xff] }
 0x572   : > { %v5428_v13 = vpop.permute.xlu1 %3438  ;;  %v2426_v6 = vpack.c.bf16 %v1595_v49, %v1593_v20  ;;  %v2510_v8 = vpack.c.bf16 %v1679_v41, %v1677_v43  ;;  %v2512_v51 = vpack.c.bf16 %v1678_v10, %v1676_v9  ;;  %v1600_v48 = vsel %vm1575_vm11, %v4933_v31, %v6064_v61 }
 0x573   : > { %v6065_v41 = vunpack.i.h.bf16 %v6043_v32  ;;  %v3291_v0 = vunpack.i.h.bf16 %v6066_v45  ;;  %v2430_v59 = vpack.c.bf16 %v1599_v24, %v1597_v29  ;;  %v6067_v56 = vunpack.i.h.bf16 %v4737_v1 }
 0x574   : > { %2427 = vmatprep.subr.bf16.mxu0 %v2426_v6  ;;  %2511 = vmatprep.subr.bf16.mxu1 %v2510_v8  ;;  %v3450_v10 = vunpack.i.l.bf16 %v5214_v26  ;;  %v6070_v7 = vpack.c.bf16 %v6068_v55, %v6069_v15  ;;  %v3341_v49 = vunpack.i.h.bf16 %v6072_v33  ;;  %v6073_v9 = vpack.c.bf16 %v5285_v42, %v5299_v39  ;;  %v6083_v33 = vld [vmem:[#allocation16_spill] sm:$0xff] }
 0x575   : > { %v1602_v30 = vsel %vm1575_vm11, %v4933_v31, %v6065_v41  ;;  %v5460_v20 = vsel %vm1575_vm11, %v6067_v56, %v3181_v2  ;;  %2513 = vmatpush1.bf16.msra.mxu1 %v2512_v51  ;;  %v6071_v29 = vmov %v6065_v41  ;;  %v2432_v6 = vpack.c.bf16 %v1598_v11, %v1596_v60  ;;  %v6075_v51 = vld [vmem:[#allocation22_spill] sm:$0xff]  ;;  %v6076_v56 = vld [vmem:[#allocation32_spill] sm:$0xff] }
 0x576   : > { %2429 = vmatpush1.bf16.msra.mxu0 %v6070_v7  ;;  %v1603_v24 = vsel %vm1575_vm11, %v6071_v29, %v3175_v4  ;;  %v3454_v43 = vpop.permute.xlu1 %3453  ;;  %2515 = vmatprep.subr.bf16.mxu1 %v6073_v9  ;;  %v2436_v8 = vpack.c.bf16 %v1602_v30, %v1600_v48  ;;  %v1604_v18 = vsel %vm1575_vm11, %v4933_v31, %v6074_v58  ;;  %v3366_v61 = vunpack.i.h.bf16 %v6075_v51 }
 0x577   : > { %2431 = vmatprep.subr.bf16.mxu0 %v2430_v59  ;;  %v3451_v32 = vunpack.i.h.bf16 %v5214_v26  ;;  %v3456_v4 = vunpack.i.h.bf16 %v3454_v43  ;;  %v3455_v41 = vunpack.i.l.bf16 %v3454_v43  ;;  %v3351_v55 = vunpack.i.h.bf16 %v6076_v56 }
 0x578   : > { %v2434_v59 = vpack.c.bf16 %v1603_v24, %v5304_v46  ;;  %v6077_v39 = vmov %v6074_v58  ;;  %v2440_v60 = vpack.c.bf16 %v5460_v20, %v1604_v18  ;;  %v3365_v11 = vunpack.i.l.bf16 %v6075_v51  ;;  %v6085_v18 = vld [vmem:[#allocation19_spill] sm:$0xff] }
 0x579   : > { %v1605_v42 = vsel %vm1575_vm11, %v6077_v39, %v3180_v35  ;;  %v6078_v31 = vpack.c.bf16 %v5265_v47, %v5315_v40  ;;  %v1607_v26 = vsel %vm1575_vm11, %v3181_v2, %v3450_v10  ;;  %v1689_v48 = vsel %vm1575_vm11, %v3451_v32, %v3455_v41  ;;  %v6086_v51 = vld [vmem:[#allocation23_spill] sm:$0xff] }
 0x57a   : > { %2433 = vmatpush1.bf16.msra.mxu0 %v2432_v6  ;;  %v6079_v30 = vunpack.i.l.bf16 %v4737_v1  ;;  %v3281_v15 = vunpack.i.h.bf16 %v6080_v63  ;;  %v3280_v35 = vunpack.i.l.bf16 %v6080_v63  ;;  %v3336_v20 = vunpack.i.h.bf16 %v5237_v38  ;;  %v3459_v29 = vpop.permute.xlu1 %3458 }
 0x57b   : > { %2517 = vmatpush1.bf16.msra.mxu1 %v6078_v31  ;;  %v3335_v7 = vunpack.i.l.bf16 %v5237_v38  ;;  %2435 = vmatprep.subr.bf16.mxu0 %v2434_v59  ;;  %v6081_v40 = vpack.c.bf16 %v5146_v34, %v5138_v36  ;;  %v3201_v47 = vunpack.i.h.bf16 %v5007_v37  ;;  %v6082_v1 = vunpack.i.l.bf16 %v4796_v27  ;;  %v6088_v59 = vld [vmem:[#allocation20_spill] sm:$0xff] }
 0x57c   : > { %v1691_v46 = vsel %vm1575_vm11, %v3456_v4, %v6079_v30  ;;  %v3461_v10 = vunpack.i.h.bf16 %v3459_v29  ;;  %v3460_v24 = vunpack.i.l.bf16 %v3459_v29  ;;  %v3286_v43 = vunpack.i.h.bf16 %v6083_v33 }
 0x57d   : > { %2519 = vmatprep.subr.bf16.mxu1 %v6081_v40  ;;  %v5505_v2 = vsel %vm1575_vm11, %v3366_v61, %v6082_v1  ;;  %v2438_v9 = vpack.c.bf16 %v1607_v26, %v1605_v42  ;;  %v2522_v6 = vpack.c.bf16 %v1691_v46, %v1689_v48  ;;  %v1690_v38 = vsel %vm1575_vm11, %v3336_v20, %v3456_v4  ;;  %v5521_v42 = vpop.permute.xlu0 %3513  ;;  %v6089_v4 = vld [vmem:[#allocation30_spill] sm:$0xff]  ;;  %v6090_v46 = vld [vmem:[#allocation40_spill] sm:$0xff] }
 0x57e   : > { %v6084_v58 = vunpack.i.l.bf16 %v4530_v16  ;;  %v3345_v36 = vunpack.i.l.bf16 %v5241_v14  ;;  %v1610_v27 = vsel %vm1575_vm11, %v3341_v49, %v3460_v24  ;;  %2437 = vmatpush1.bf16.msra.mxu0 %v2436_v8  ;;  %v6087_v61 = vpack.c.bf16 %v6085_v18, %v6086_v51  ;;  %v3464_v31 = vpop.permute.xlu1 %3463 }
 0x57f   : > { %v1611_v41 = vsel %vm1575_vm11, %v3460_v24, %v3461_v10  ;;  %v3376_v39 = vunpack.i.h.bf16 %v6088_v59  ;;  %v2444_v16 = vpack.c.bf16 %v1610_v27, %v6089_v4  ;;  %2439 = vmatprep.subr.bf16.mxu0 %v2438_v9  ;;  %v1615_v49 = vsel %vm1575_vm11, %v3280_v35, %v3281_v15  ;;  %v6092_v10 = vld [vmem:[#allocation42_spill] sm:$0xff] }
 0x580   : > { %v5512_v34 = vsel %vm1575_vm11, %v3365_v11, %v6084_v58  ;;  %2521 = vmatpush1.bf16.msra.mxu1 %v6087_v61  ;;  %v1688_v11 = vsel %vm1575_vm11, %v3335_v7, %v3451_v32  ;;  %v3346_v8 = vunpack.i.h.bf16 %v5241_v14  ;;  %v3466_v26 = vunpack.i.h.bf16 %v3464_v31  ;;  %v6096_v58 = vld [vmem:[#allocation29_spill] sm:$0xff] }
 0x581   : > { %2523 = vmatprep.subr.bf16.mxu1 %v2522_v6  ;;  %v3465_v48 = vunpack.i.l.bf16 %v3464_v31  ;;  %v2524_v30 = vpack.c.bf16 %v1690_v38, %v1688_v11  ;;  %v3496_v63 = vunpack.i.h.bf16 %v6090_v46  ;;  %v3495_v20 = vunpack.i.l.bf16 %v6090_v46  ;;  %v5567_v27 = vpop.permute.xlu0 %3518  ;;  %v6101_v31 = vld [vmem:[#allocation26_spill] sm:$0xff] }
 0x582   : > { %v2442_v29 = vpack.c.bf16 %v1611_v41, %v5433_v17  ;;  %v6091_v40 = vunpack.i.l.bf16 %v6083_v33  ;;  %v3501_v24 = vunpack.i.h.bf16 %v6092_v10  ;;  %2441 = vmatpush1.bf16.msra.mxu0 %v2440_v60  ;;  %v1692_v14 = vsel %vm1575_vm11, %v3345_v36, %v3275_v62  ;;  %v5540_v9 = vpop.permute.xlu1 %3468 }
 0x583   : > { %v1695_v32 = vsel %vm1575_vm11, %v3465_v48, %v3466_v26  ;;  %v1694_v15 = vsel %vm1575_vm11, %v3346_v8, %v3465_v48  ;;  %v3350_v7 = vunpack.i.l.bf16 %v6076_v56  ;;  %v5548_v60 = vsel %vm1575_vm11, %v3290_v5, %v3291_v0  ;;  %v6102_v48 = vld [vmem:[#allocation25_spill] sm:$0xff] }
 0x584   : > { %v1699_v1 = vsel %vm1575_vm11, %v6091_v40, %v3286_v43  ;;  %2525 = vmatpush1.bf16.msra.mxu1 %v2524_v30  ;;  %2443 = vmatprep.subr.bf16.mxu0 %v2442_v29  ;;  %v2526_v17 = vpack.c.bf16 %v1695_v32, %v5454_v19  ;;  %v2528_v33 = vpack.c.bf16 %v1694_v15, %v1692_v14  ;;  %v6094_v43 = vunpack.i.l.bf16 %v5007_v37 }
 0x585   : > { %v1618_v62 = vsel %vm1575_vm11, %v3351_v55, %v6093_v23  ;;  %v2456_v56 = vpack.c.bf16 %v5505_v2, %v5512_v34  ;;  %v6095_v19 = vunpack.i.l.bf16 %v6088_v59  ;;  %v3386_v36 = vunpack.i.h.bf16 %v6096_v58  ;;  %v6100_v59 = vld [vmem:[#allocation34_spill] sm:$0xff] }
 0x586   : > { %v1703_v6 = vsel %vm1575_vm11, %v6094_v43, %v3201_v47  ;;  %v6097_v0 = vunpack.i.h.bf16 %v4809_v21  ;;  %2527 = vmatprep.subr.bf16.mxu1 %v2526_v17  ;;  %v2446_v55 = vpack.c.bf16 %v1615_v49, %v5377_v57  ;;  %v2530_v37 = vpack.c.bf16 %v1699_v1, %v5382_v50  ;;  %2445 = vmatpush1.bf16.msra.mxu0 %v2444_v16  ;;  %v5581_v4 = vpop.permute.xlu1 %3483  ;;  %v6104_v1 = vld [vmem:[#allocation12_spill] sm:$0xff] }
 0x587   : > { %v5561_v38 = vsel %vm1575_vm11, %v6095_v19, %v3376_v39  ;;  %v3385_v47 = vunpack.i.l.bf16 %v6096_v58  ;;  %v1616_v18 = vsel %vm1575_vm11, %v3350_v7, %v3495_v20  ;;  %v1617_v51 = vsel %vm1575_vm11, %v3495_v20, %v3496_v63  ;;  %v6103_v20 = vld [vmem:[#allocation17_spill] sm:$0xff] }
 0x588   : > { %v1614_v44 = vsel %vm1575_vm11, %v6097_v0, %v3280_v35  ;;  %2529 = vmatpush1.bf16.msra.mxu1 %v2528_v33  ;;  %v6098_v61 = vunpack.i.l.bf16 %v6092_v10  ;;  %v6099_v35 = vld [vmem:[#allocation41_spill] sm:$0xff]  ;;  %v3381_v39 = vunpack.i.h.bf16 %v6100_v59  ;;  %v3396_v57 = vunpack.i.h.bf16 %v5311_v28  ;;  %2447 = vmatprep.subr.bf16.mxu0 %v2446_v55 }
 0x589   : > { %v3370_v41 = vunpack.i.l.bf16 %v6099_v35  ;;  %v3395_v50 = vunpack.i.l.bf16 %v5311_v28  ;;  %2531 = vmatprep.subr.bf16.mxu1 %v2530_v37  ;;  %v2448_v16 = vpack.c.bf16 %v1614_v44, %v5395_v22  ;;  %v3431_v11 = vunpack.i.h.bf16 %v6101_v31  ;;  %v6105_v10 = vld [vmem:[#allocation33_spill] sm:$0xff]  ;;  %v6108_v37 = vld [vmem:[#allocation15_spill] sm:$0xff] }
 0x58a   : > { %v1701_v21 = vsel %vm1575_vm11, %v6098_v61, %v3501_v24  ;;  %v3406_v49 = vunpack.i.h.bf16 %v5337_v12  ;;  %v3405_v8 = vunpack.i.l.bf16 %v5337_v12  ;;  %v3430_v26 = vunpack.i.l.bf16 %v6101_v31  ;;  %v3504_v14 = vpop.permute.xlu1 %3503 }
 0x58b   : > { %v3476_v30 = vunpack.i.h.bf16 %v6102_v48  ;;  %v2450_v46 = vpack.c.bf16 %v5387_v25, %v1617_v51  ;;  %v2534_v63 = vpack.c.bf16 %v1703_v6, %v1701_v21  ;;  %v3475_v28 = vunpack.i.l.bf16 %v6102_v48  ;;  %2449 = vmatpush1.bf16.msra.mxu0 %v2448_v16  ;;  %v3524_v25 = vpop.permute.xlu0 %3523 }
 0x58c   : > { %v3481_v29 = vunpack.i.h.bf16 %v6103_v20  ;;  %v3480_v40 = vunpack.i.l.bf16 %v6103_v20  ;;  %v2452_v22 = vpack.c.bf16 %v1618_v62, %v1616_v18  ;;  %v6106_v24 = vpack.c.bf16 %v6104_v1, %v6105_v10  ;;  %v6109_v18 = vld [vmem:[#allocation35_spill] sm:$0xff] }
 0x58d   : > { %v3371_v12 = vunpack.i.h.bf16 %v6099_v35  ;;  %v1704_v32 = vsel %vm1575_vm11, %v3370_v41, %v3290_v5  ;;  %2451 = vmatprep.subr.bf16.mxu0 %v2450_v46  ;;  %v6107_v15 = vunpack.i.l.bf16 %v6100_v59  ;;  %v1711_v17 = vsel %vm1575_vm11, %v3395_v50, %v3396_v57 }
 0x58e   : > { %2533 = vmatpush1.bf16.msra.mxu1 %v6106_v24  ;;  %v1708_v33 = vsel %vm1575_vm11, %v3405_v8, %v3385_v47  ;;  %v1710_v23 = vsel %vm1575_vm11, %v3406_v49, %v3395_v50  ;;  %v3506_v62 = vunpack.i.h.bf16 %v3504_v14  ;;  %v3505_v43 = vunpack.i.l.bf16 %v3504_v14  ;;  %v5620_v41 = vpop.permute.xlu1 %3508  ;;  %v6113_v24 = vld [vmem:[#allocation31_spill] sm:$0xff] }
 0x58f   : > { %2535 = vmatprep.subr.bf16.mxu1 %v2534_v63  ;;  %v1627_v7 = vsel %vm1575_vm11, %v6107_v15, %v3381_v39  ;;  %v3521_v45 = vunpack.i.h.bf16 %v5567_v27  ;;  %v3520_v5 = vunpack.i.l.bf16 %v5567_v27  ;;  %v3426_v6 = vunpack.i.h.bf16 %v5373_v52  ;;  %2453 = vmatpush1.bf16.msra.mxu0 %v2452_v22  ;;  %v1144_v27 = vld [vmem:[%s5781_s3 + $0x10] sm:$0xff]  ;;  %v3544_v49 = vpop.permute.xlu0 %3543  ;;  %v6114_v14 = vld [vmem:[#allocation11_spill] sm:$0xff] }
 0x590   : > { %v3425_v19 = vunpack.i.l.bf16 %v5373_v52  ;;  %v3441_v0 = vunpack.i.h.bf16 %v5428_v13  ;;  %v3440_v44 = vunpack.i.l.bf16 %v5428_v13  ;;  %v1706_v55 = vsel %vm1575_vm11, %v3371_v12, %v3505_v43 }
 0x591   : > { %v6110_v51 = vpack.c.bf16 %v6108_v37, %v6109_v18  ;;  %v1707_v61 = vsel %vm1575_vm11, %v3505_v43, %v3506_v62  ;;  %v3526_v21 = vunpack.i.h.bf16 %v3524_v25  ;;  %v3525_v35 = vunpack.i.l.bf16 %v3524_v25 }
 0x592   : > { %v2540_v52 = vpack.c.bf16 %v1706_v55, %v1704_v32  ;;  %v6111_v13 = vpack.c.bf16 %v5365_v53, %v5323_v54  ;;  %v2538_v59 = vpack.c.bf16 %v1707_v61, %v5548_v60  ;;  %v2458_v39 = vpack.c.bf16 %v1627_v7, %v5561_v38  ;;  %v3529_v8 = vpop.permute.xlu1 %3528 }
 0x593   : > { %2537 = vmatpush1.bf16.msra.mxu1 %v6110_v51  ;;  %v1709_v57 = vsel %vm1575_vm11, %v3385_v47, %v3386_v36  ;;  %v1713_v50 = vsel %vm1575_vm11, %v3430_v26, %v3431_v11  ;;  %v1633_v16 = vsel %vm1575_vm11, %v3475_v28, %v3476_v30  ;;  %v3471_v54 = vunpack.i.h.bf16 %v5540_v9  ;;  %v3549_v62 = vpop.permute.xlu0 %3548 }
 0x594   : > { %2455 = vmatprep.subr.bf16.mxu0 %v6111_v13  ;;  %v3470_v53 = vunpack.i.l.bf16 %v5540_v9  ;;  %2539 = vmatprep.subr.bf16.mxu1 %v2538_v59  ;;  %v2542_v60 = vpack.c.bf16 %v1711_v17, %v1709_v57  ;;  %v1631_v38 = vsel %vm1575_vm11, %v3425_v19, %v3426_v6  ;;  %v2544_v58 = vpack.c.bf16 %v1710_v23, %v1708_v33 }
 0x595   : > { %2457 = vmatpush1.bf16.msra.mxu0 %v2456_v56  ;;  %v1715_v36 = vsel %vm1575_vm11, %v3440_v44, %v3441_v0  ;;  %v1717_v47 = vsel %vm1575_vm11, %v3480_v40, %v3481_v29  ;;  %v1630_v11 = vsel %vm1575_vm11, %v3526_v21, %v3425_v19  ;;  %v1628_v9 = vsel %vm1575_vm11, %v3525_v35, %v3520_v5 }
 0x596   : > { %2016 = vmatmul.mubr.f32.vlgmr.msra.gmra.mrb[0].mxu1 %v1144_v27  ;;  %2459 = vmatprep.subr.bf16.mxu0 %v2458_v39  ;;  %v1629_v30 = vsel %vm1575_vm11, %v3520_v5, %v3521_v45  ;;  %v3545_v46 = vunpack.i.l.bf16 %v3544_v49  ;;  %v3531_v63 = vunpack.i.h.bf16 %v3529_v8  ;;  %v3530_v2 = vunpack.i.l.bf16 %v3529_v8  ;;  %v3534_v23 = vpop.permute.xlu1 %3533 }
 0x597   : > { %2541 = vmatpush1.bf16.msra.mxu1 %v2540_v52  ;;  %v2462_v34 = vpack.c.bf16 %v1631_v38, %v1629_v30  ;;  %v6112_v56 = vmov 0.0   ;;  %v1712_v22 = vsel %vm1575_vm11, %v3470_v53, %v3430_v26  ;;  %v1714_v29 = vsel %vm1575_vm11, %v3471_v54, %v3440_v44  ;;  %v1572_v39 = vpop.permute.xlu0 %1571  ;;  %v1142_v38 = vld [vmem:[%s5781_s3] sm:$0xff] }
 0x598   : > { %2543 = vmatprep.subr.bf16.mxu1 %v2542_v60  ;;  %2086 = vmatprep.mubr.f32.mxu1 %v6112_v56  ;;  %v3485_v1 = vunpack.i.l.bf16 %v5581_v4  ;;  %v2546_v10 = vpack.c.bf16 %v1715_v36, %v1713_v50  ;;  %v3491_v12 = vunpack.i.h.bf16 %v6113_v24  ;;  %v3511_v32 = vunpack.i.h.bf16 %v5620_v41 }
 0x599   : > { %v3510_v25 = vunpack.i.l.bf16 %v5620_v41  ;;  %v6115_v15 = vpack.c.bf16 %v5282_v3, %v6114_v14  ;;  %v1635_v31 = vsel %vm1575_vm11, %v3530_v2, %v3531_v63  ;;  %v3490_v26 = vunpack.i.l.bf16 %v6113_v24 }
 0x59a   : > { %v3516_v7 = vunpack.i.h.bf16 %v5521_v42  ;;  %v2464_v17 = vpack.c.bf16 %v1630_v11, %v1628_v9  ;;  %v3546_v33 = vunpack.i.h.bf16 %v3544_v49  ;;  %v2548_v43 = vpack.c.bf16 %v1714_v29, %v1712_v22  ;;  %v3539_v61 = vpop.permute.xlu1 %3538  ;;  %v1146_v9 = vld [vmem:[%s5781_s3 + $0x20] sm:$0xff] }
 0x59b   : > { %2461 = vmatpush1.bf16.msra.mxu0 %v6115_v15  ;;  %2545 = vmatpush1.bf16.msra.mxu1 %v2544_v58  ;;  %v3486_v45 = vunpack.i.h.bf16 %v5581_v4  ;;  %v3536_v5 = vunpack.i.h.bf16 %v3534_v23  ;;  %v3535_v6 = vunpack.i.l.bf16 %v3534_v23  ;;  %v1632_v3 = vsel %vm1575_vm11, %v3545_v46, %v3475_v28  ;;  %v1570_v11 = vpop.permute.xlu0 %1569  ;;  %v6116_v15 = vld [vmem:[#allocation4_spill] sm:$0xff] }
 0x59c   : > { %2463 = vmatprep.subr.bf16.mxu0 %v2462_v34  ;;  %2547 = vmatprep.subr.bf16.mxu1 %v2546_v10  ;;  %v1716_v19 = vsel %vm1575_vm11, %v3485_v1, %v3480_v40  ;;  %v1634_v0 = vsel %vm1575_vm11, %v3546_v33, %v3530_v2  ;;  %v2466_v44 = vpack.c.bf16 %v1635_v31, %v1633_v16  ;;  %v3515_v55 = vunpack.i.l.bf16 %v5521_v42 }
 0x59d   : > { %v1718_v37 = vsel %vm1575_vm11, %v3486_v45, %v3535_v6  ;;  %v1719_v4 = vsel %vm1575_vm11, %v3535_v6, %v3536_v5  ;;  %v1639_v18 = vsel %vm1575_vm11, %v3510_v25, %v3511_v32  ;;  %v3551_v48 = vunpack.i.h.bf16 %v3549_v62  ;;  %v6119_v5 = vld [vmem:[#allocation7_spill] sm:$0xff] }
 0x59e   : > { %v3550_v51 = vunpack.i.l.bf16 %v3549_v62  ;;  %v2552_v28 = vpack.c.bf16 %v1718_v37, %v1716_v19  ;;  %v2550_v20 = vpack.c.bf16 %v1719_v4, %v1717_v47  ;;  %v2468_v40 = vpack.c.bf16 %v1634_v0, %v1632_v3  ;;  %v3554_v57 = vpop.permute.xlu1 %3553 }
 0x59f   : > { %2465 = vmatpush1.bf16.msra.mxu0 %v2464_v17  ;;  %2549 = vmatpush1.bf16.msra.mxu1 %v2548_v43  ;;  %v3541_v27 = vunpack.i.h.bf16 %v3539_v61  ;;  %v3540_v21 = vunpack.i.l.bf16 %v3539_v61  ;;  %v1637_v35 = vsel %vm1575_vm11, %v3490_v26, %v3491_v12  ;;  %v1638_v42 = vsel %vm1575_vm11, %v3551_v48, %v3510_v25 }
 0x5a0   : > { %2467 = vmatprep.subr.bf16.mxu0 %v2466_v44  ;;  %2551 = vmatprep.subr.bf16.mxu1 %v2550_v20  ;;  %v2470_v52 = vpack.c.bf16 %v1639_v18, %v1637_v35  ;;  %v1721_v41 = vsel %vm1575_vm11, %v3515_v55, %v3516_v7  ;;  %v1636_v59 = vsel %vm1575_vm11, %v3550_v51, %v3490_v26  ;;  %v3556_v49 = vunpack.i.h.bf16 %v3554_v57 }
 0x5a1   : > { %v1723_v13 = vsel %vm1575_vm11, %v3540_v21, %v3541_v27  ;;  %v2472_v16 = vpack.c.bf16 %v1638_v42, %v1636_v59  ;;  %v3555_v54 = vunpack.i.l.bf16 %v3554_v57  ;;  %v1724_v8 = vsel %vm1575_vm11, %v1570_v11, %v1572_v39 }
 0x5a2   : > { %v2554_v50 = vpack.c.bf16 %v1723_v13, %v1721_v41  ;;  %v1722_v60 = vsel %vm1575_vm11, %v3556_v49, %v3540_v21  ;;  %v1574_v36 = vpop.permute.xlu1 %1573 }
 0x5a3   : > { %2469 = vmatpush1.bf16.msra.mxu0 %v2468_v40  ;;  %2553 = vmatpush1.bf16.msra.mxu1 %v2552_v28  ;;  %v1720_v53 = vsel %vm1575_vm11, %v3555_v54, %v3515_v55  ;;  %v1725_v47 = vsel %vm1575_vm11, %v1572_v39, %v1574_v36 }
 0x5a4   : > { %2471 = vmatprep.subr.bf16.mxu0 %v2470_v52  ;;  %2555 = vmatprep.subr.bf16.mxu1 %v2554_v50  ;;  %v2556_v58 = vpack.c.bf16 %v1722_v60, %v1720_v53  ;;  %v6122_v60 = vld [vmem:[#allocation8_spill] sm:$0xff] }
 0x5a7   : > { %2473 = vmatpush1.bf16.msra.mxu0 %v2472_v16  ;;  %2557 = vmatpush1.bf16.msra.mxu1 %v2556_v58 }
 0x5a8   : > { %2042 = vmatprep.subr.mxu1 %v1725_v47 }
 0x5aa   : > { %1945 = vmatmul.mubr.f32.vlgmr.msra.gmra.mrb[6].mxu0 %v1142_v38 }
 0x5ab   : > { %2312 = vmatprep.mubr.f32.mxu0 %v6112_v56  ;;  %2043 = vmatpush1.msra.mxu1 %v1724_v8 }
 0x5ac   : > { %2388 = vmatmul.mubr.msk.f32.vlgmr.msra.gmra.mrb[0].mxu1 %vm1876_vm13, %v1146_v9 }
 0x5b3   : > { %v1151_v63 = vpop.permute.xlu1 %1150 }
 0x67d   : > { %v1946_v30 = vpop.f32.mrb[6].mxu0 }
 0x67e   : > { %v1948_v46 = vpop.f32.mrb[7].mxu0  ;;  %v1947_v2 = vadd.f32 %v1946_v30, %v1151_v63 }
 0x67f   : > { %v1949_v34 = vadd.f32 %v1948_v46, %v1151_v63  ;;  %v2088_v22 = vpop.f32.mrb[0].mxu1 }
 0x680   : > { %v2575_v29 = vadd.f32 %v2088_v22, %v1947_v2  ;;  %v2090_v1 = vpop.f32.mrb[1].mxu1 }
 0x681   : > { %v2577_v10 = vadd.f32 %v2090_v1, %v1949_v34  ;;  %v6123_v1 = vld [vmem:[#allocation9_spill] sm:$0xff] }
 0x682   : > { %v2093_v24 = vmax.f32 %v2575_v29, 0.0 }
 0x683   : > { %v2094_v56 = vmax.f32 %v2577_v10, 0.0 }
 0x684   : > { %2107 = vrot.lane.b32.xlu1 %v2093_v24, %s3646_s30 }
 0x685   : > { %v3557_v12 = vpack.i.bf16 %v2094_v56, %v2093_v24 }
 0x687   : > { %3558 = vrot.lane.b32.xlu0 %v3557_v12, %s3647_s8 }
 0x68b   : > { %2109 = vrot.lane.b32.xlu0 %v2094_v56, %s3646_s30 }
 0x68f   : > { %3563 = vrot.lane.b32.xlu0 %v3557_v12, %s3648_s9 }
 0x6f6   : > { %v2108_v7 = vpop.permute.xlu1 %2107 }
 0x6f9   : > { %v3559_v32 = vpop.permute.xlu0 %3558 }
 0x6fa   : > { %v3561_v25 = vunpack.i.h.bf16 %v3559_v32  ;;  %v3560_v14 = vunpack.i.l.bf16 %v3559_v32 }
 0x6fc   : > { %v2101_v31 = vsel %vm353_vm0, %v6116_v15, %v3560_v14  ;;  %v2102_v26 = vsel %vm353_vm0, %v3560_v14, %v3561_v25 }
 0x6fd   : > { %v2105_v33 = vsel %vm308_vm2, %v2101_v31, 0.0  ;;  %v2106_v62 = vsel %vm309_vm1, %v2102_v26, 0.0  ;;  %v2110_v43 = vpop.permute.xlu0 %2109  ;;  %v2155_v31 = vld [vmem:[%s5784_s6] sm:$0xff] }
 0x6fe   : > { %v2111_v45 = vsel %vm370_vm3, %v2108_v7, %v2110_v43  ;;  %v2112_v6 = vsel %vm370_vm3, %v2110_v43, %v6119_v5  ;;  %v3577_v3 = vpack.i.bf16 %v2106_v62, %v2105_v33 }
 0x6ff   : > { %v2115_v0 = vsel %vm318_vm4, %v2111_v45, 0.0  ;;  %v2116_v55 = vsel %vm319_vm5, %v2112_v6, 0.0 }
 0x700   : > { %3578 = vrot.lane.b32.xlu0 %v3577_v3, %s3649_s10  ;;  %3568 = vrot.lane.b32.xlu1 %v3577_v3, %s3648_s9  ;;  %v3572_v37 = vpack.i.bf16 %v2116_v55, %v2115_v0 }
 0x701   : > { %v3564_v4 = vpop.permute.xlu0 %3563 }
 0x702   : > { %v3566_v18 = vunpack.i.h.bf16 %v3564_v4  ;;  %v3565_v48 = vunpack.i.l.bf16 %v3564_v4 }
 0x704   : > { %2144 = vrot.lane.b32.xlu0 %v2115_v0, %s3649_s10  ;;  %3573 = vrot.lane.b32.xlu1 %v3572_v37, %s3648_s9  ;;  %v2134_v40 = vsel %vm393_vm6, %v3565_v48, %v3566_v18 }
 0x708   : > { %3593 = vrot.lane.b32.xlu0 %v3577_v3, %s3650_s11  ;;  %3583 = vrot.lane.b32.xlu1 %v3557_v12, %s3649_s10 }
 0x70c   : > { %3598 = vrot.lane.b32.xlu0 %v3572_v37, %s3650_s11  ;;  %2146 = vrot.lane.b32.xlu1 %v2116_v55, %s3649_s10 }
 0x710   : > { %3588 = vrot.lane.b32.xlu1 %v3557_v12, %s3650_s11 }
 0x772   : > { %v3579_v51 = vpop.permute.xlu0 %3578  ;;  %v3569_v28 = vpop.permute.xlu1 %3568 }
 0x773   : > { %v3571_v61 = vunpack.i.h.bf16 %v3569_v28  ;;  %v3570_v20 = vunpack.i.l.bf16 %v3569_v28  ;;  %v3581_v59 = vunpack.i.h.bf16 %v3579_v51  ;;  %v3580_v39 = vunpack.i.l.bf16 %v3579_v51 }
 0x775   : > { %v2133_v27 = vsel %vm393_vm6, %v3570_v20, %v3571_v61  ;;  %v3602_v21 = vpack.i.bf16 %v2134_v40, %v3570_v20  ;;  %v2149_v38 = vsel %vm411_vm7, %v3581_v59, %v6122_v60  ;;  %v2148_v58 = vsel %vm411_vm7, %v3580_v39, %v3581_v59 }
 0x776   : > { %v3612_v35 = vpack.i.bf16 %v3571_v61, %v2133_v27  ;;  %v3574_v42 = vpop.permute.xlu1 %3573  ;;  %v2145_v13 = vpop.permute.xlu0 %2144 }
 0x777   : > { %v3576_v52 = vunpack.i.h.bf16 %v3574_v42  ;;  %v3575_v41 = vunpack.i.l.bf16 %v3574_v42  ;;  %3603 = vrot.lane.b32.xlu0 %v3602_v21, %s3650_s11 }
 0x778   : > { %3613 = vrot.lane.b32.xlu1 %v3612_v35, %s3650_s11 }
 0x779   : > { %v3607_v57 = vpack.i.bf16 %v3565_v48, %v3576_v52  ;;  %v2135_v50 = vsel %vm393_vm6, %v3575_v41, %v3576_v52  ;;  %v3622_v47 = vpack.i.bf16 %v2148_v58, %v3575_v41 }
 0x77a   : > { %v3617_v16 = vpack.i.bf16 %v2135_v50, %v3566_v18  ;;  %v3584_v49 = vpop.permute.xlu1 %3583  ;;  %v3594_v11 = vpop.permute.xlu0 %3593 }
 0x77b   : > { %v3586_v54 = vunpack.i.h.bf16 %v3584_v49  ;;  %v3585_v53 = vunpack.i.l.bf16 %v3584_v49  ;;  %3608 = vrot.lane.b32.xlu0 %v3607_v57, %s3650_s11  ;;  %v3596_v46 = vunpack.i.h.bf16 %v3594_v11  ;;  %v3595_v63 = vunpack.i.l.bf16 %v3594_v11 }
 0x77c   : > { %3618 = vrot.lane.b32.xlu1 %v3617_v16, %s3650_s11 }
 0x77d   : > { %v2150_v36 = vsel %vm411_vm7, %v3585_v53, %v3586_v54  ;;  %v2151_v30 = vsel %vm411_vm7, %v3586_v54, %v6122_v60  ;;  %v2209_v10 = vsel %vm489_vm8, %v6123_v1, %v3595_v63  ;;  %v2210_v56 = vsel %vm489_vm8, %v3595_v63, %v3596_v46  ;;  %v2154_v46 = vld [vmem:[%s5783_s5] sm:$0xff] }
 0x77e   : > { %v3632_v9 = vpack.i.bf16 %v2150_v36, %v2149_v38  ;;  %v2147_v8 = vpop.permute.xlu1 %2146  ;;  %v3627_v2 = vpack.i.bf16 %v3580_v39, %v2151_v30  ;;  %v3599_v26 = vpop.permute.xlu0 %3598 }
 0x77f   : > { %v2152_v14 = vsel %vm411_vm7, %v2145_v13, %v2147_v8  ;;  %v2153_v15 = vsel %vm411_vm7, %v2147_v8, %v6122_v60  ;;  %v3601_v7 = vunpack.i.h.bf16 %v3599_v26  ;;  %v3600_v17 = vunpack.i.l.bf16 %v3599_v26 }
 0x780   : > { %3623 = vrot.lane.b32.xlu1 %v3622_v47, %s3650_s11  ;;  %3633 = vrot.lane.b32.xlu0 %v3632_v9, %s3650_s11 }
 0x781   : > { %v2213_v5 = vsel %vm489_vm8, %v6123_v1, %v3600_v17  ;;  %v2214_v19 = vsel %vm489_vm8, %v3600_v17, %v3601_v7 }
 0x782   : > { %v3589_v34 = vpop.permute.xlu1 %3588 }
 0x783   : > { %v3591_v22 = vunpack.i.h.bf16 %v3589_v34  ;;  %v3590_v29 = vunpack.i.l.bf16 %v3589_v34 }
 0x784   : > { %3628 = vrot.lane.b32.xlu1 %v3627_v2, %s3650_s11  ;;  %2197 = vrot.lane.b32.xlu0 %v3585_v53, %s3650_s11 }
 0x785   : > { %v2211_v24 = vsel %vm489_vm8, %v6123_v1, %v3590_v29  ;;  %v2212_v12 = vsel %vm489_vm8, %v3590_v29, %v3591_v22 }
 0x786   : > { %v2560_v32 = vpack.c.bf16 %v2211_v24, %v2209_v10  ;;  %v2558_v25 = vpack.c.bf16 %v2212_v12, %v2210_v56 }
 0x788   : > { %2559 = vmatprep.subr.bf16.mxu0 %v2558_v25  ;;  %2205 = vrot.lane.b32.xlu1 %v2152_v14, %s3650_s11 }
 0x789   : > { %2207 = vrot.lane.b32.xlu0 %v2153_v15, %s3650_s11  ;;  %2561 = vmatpush1.bf16.msra.mxu0 %v2560_v32 }
 0x78c   : > { %2203 = vrot.lane.b32.xlu1 %v2145_v13, %s3650_s11 }
 0x78d   : > { %2158 = vperm.xlu0 %2686, %v2155_v31  }
 0x7e9   : > { %v3604_v33 = vpop.permute.xlu0 %3603 }
 0x7ea   : > { %v3605_v23 = vunpack.i.l.bf16 %v3604_v33  ;;  %v3614_v62 = vpop.permute.xlu1 %3613  ;;  %v3606_v18 = vunpack.i.h.bf16 %v3604_v33 }
 0x7eb   : > { %v3616_v43 = vunpack.i.h.bf16 %v3614_v62  ;;  %v3615_v45 = vunpack.i.l.bf16 %v3614_v62 }
 0x7ed   : > { %v2215_v6 = vsel %vm489_vm8, %v3605_v23, %v3615_v45  ;;  %v3609_v3 = vpop.permute.xlu0 %3608  ;;  %v2216_v0 = vsel %vm489_vm8, %v3615_v45, %v3616_v43 }
 0x7ee   : > { %v2564_v44 = vpack.c.bf16 %v2215_v6, %v2213_v5  ;;  %v3610_v55 = vunpack.i.l.bf16 %v3609_v3  ;;  %v3619_v37 = vpop.permute.xlu1 %3618  ;;  %v2562_v4 = vpack.c.bf16 %v2216_v0, %v2214_v19  ;;  %v3611_v28 = vunpack.i.h.bf16 %v3609_v3 }
 0x7ef   : > { %v3621_v48 = vunpack.i.h.bf16 %v3619_v37  ;;  %v3620_v51 = vunpack.i.l.bf16 %v3619_v37 }
 0x7f0   : > { %2563 = vmatprep.subr.bf16.mxu0 %v2562_v4  ;;  %v2217_v42 = vsel %vm489_vm8, %v3611_v28, %v3606_v18 }
 0x7f1   : > { %2565 = vmatpush1.bf16.msra.mxu0 %v2564_v44  ;;  %v2218_v61 = vsel %vm489_vm8, %v3606_v18, %v3620_v51  ;;  %v2220_v20 = vsel %vm489_vm8, %v3621_v48, %v3610_v55 }
 0x7f2   : > { %v3624_v40 = vpop.permute.xlu1 %3623  ;;  %v3634_v27 = vpop.permute.xlu0 %3633  ;;  %v2566_v21 = vpack.c.bf16 %v2220_v20, %v2218_v61 }
 0x7f3   : > { %v3625_v35 = vunpack.i.l.bf16 %v3624_v40  ;;  %v3626_v52 = vunpack.i.h.bf16 %v3624_v40  ;;  %v3635_v13 = vunpack.i.l.bf16 %v3634_v27  ;;  %v3636_v50 = vunpack.i.h.bf16 %v3634_v27 }
 0x7f4   : > { %2567 = vmatprep.subr.bf16.mxu0 %v2566_v21 }
 0x7f5   : > { %v2219_v41 = vsel %vm489_vm8, %v3625_v35, %v3621_v48  ;;  %v2222_v60 = vsel %vm489_vm8, %v3626_v52, %v3635_v13 }
 0x7f6   : > { %v2568_v59 = vpack.c.bf16 %v2219_v41, %v2217_v42  ;;  %v3629_v39 = vpop.permute.xlu1 %3628  ;;  %v2198_v57 = vpop.permute.xlu0 %2197 }
 0x7f7   : > { %v3631_v16 = vunpack.i.h.bf16 %v3629_v39  ;;  %v3630_v49 = vunpack.i.l.bf16 %v3629_v39  ;;  %v2223_v53 = vsel %vm489_vm8, %v2198_v57, %v3636_v50 }
 0x7f8   : > { %2569 = vmatpush1.bf16.msra.mxu0 %v2568_v59 }
 0x7f9   : > { %v2221_v54 = vsel %vm489_vm8, %v3631_v16, %v3626_v52  ;;  %v2224_v38 = vsel %vm489_vm8, %v3636_v50, %v3630_v49 }
 0x7fa   : > { %v2572_v58 = vpack.c.bf16 %v2223_v53, %v2221_v54  ;;  %v2206_v36 = vpop.permute.xlu1 %2205  ;;  %v2570_v47 = vpack.c.bf16 %v2224_v38, %v2222_v60 }
 0x7fb   : > { %v2208_v11 = vpop.permute.xlu0 %2207 }
 0x7fc   : > { %2571 = vmatprep.subr.bf16.mxu0 %v2570_v47  ;;  %v2226_v9 = vsel %vm489_vm8, %v2206_v36, %v2208_v11 }
 0x7fd   : > { %2573 = vmatpush1.bf16.msra.mxu0 %v2572_v58 }
 0x7fe   : > { %v2204_v8 = vpop.permute.xlu1 %2203  ;;  %2264 = vmatprep.subr.mxu0 %v2226_v9 }
 0x7ff   : > { %v2225_v30 = vsel %vm489_vm8, %v2204_v8, %v2206_v36 }
 0x801   : > { %2265 = vmatpush1.msra.mxu0 %v2225_v30 }
 0x802   : > { %2389 = vmatmul.mubr.msk.f32.vlgmr.msra.gmra.mrb[8].mxu0 %vm526_vm9, %v2154_v46 }
 0x80c   : > { %v2159_v63 = vpop.permute.xlu0 %2158 }
 0x8d5   : > { %v2314_v2 = vpop.f32.mrb[8].mxu0 }
 0x8d6   : > { %v2315_v34 = vadd.f32 %v2314_v2, %v2159_v63  ;;  %v2316_v22 = vpop.f32.mrb[9].mxu0 }
 0x8d7   : > { %v2317_v29 = vadd.f32 %v2316_v22, %v2159_v63 }
 0x8d8   : > { %2319 = vst [vmem:[%s278_s12] sm:$0xff] %v2315_v34 }
 0x8d9   : > { %2320 = vst [vmem:[%s278_s12 + $0x8] sm:$0xff] %v2317_v29 }
 0x8da PF: > { %s17_s24 = sadd.s32 1, %s3643_s24  }
 0x8db   : > { %p14_p4 = scmp.ge.s32.totalorder %s17_s24, 4  }
 0x8dd   :  { %16 = sbr.rel (!%p14_p4) target bundleno = 1 (0x1), region = 78 }

</bundles_post_ra>
